<compile_context>
chip_gen: v7x
topology: tpu7x:2x2x1
jax: 0.10.0
libtpu: 0.0.40
codegen_flags: <defaults>
</compile_context>

<pallas_src>
import functools

import jax
import jax.numpy as jnp
from jax import lax
from jax.experimental import pallas as pl
from jax.experimental.pallas import tpu as pltpu

BN_EPS = 1e-5
_BARRIER_DTYPE = jnp.bfloat16      # dtype of the HBM round-trips between passes


def _vmem_limit_bytes():
    """~75% of this generation's per-core VMEM (v7x ~48MiB, v5e/v6e ~96MiB)."""
    cap = 64 * 1024 * 1024                      # conservative fallback
    try:
        cap = int(pltpu.get_tpu_info().vmem_capacity_bytes) or cap
    except Exception:
        pass
    return max(32 << 20, min((cap * 3) // 4, 100 << 20))


def _largest_tile(m, cap=512):
    """Largest multiple of 128 that divides m (<= cap); else the full extent."""
    t = (min(cap, m) // 128) * 128
    while t >= 128:
        if m % t == 0:
            return t
        t -= 128
    return m


# ----------------------------------------------------------------------------
# in-kernel helpers
# ----------------------------------------------------------------------------
def _pad_hw1(x):
    """Zero-pad a (H, W, C) VMEM tile by 1 on each spatial side (in-kernel)."""
    H, W, C = x.shape
    zr = jnp.zeros((1, W, C), x.dtype)
    x = jnp.concatenate([zr, x, zr], axis=0)
    zc = jnp.zeros((H + 2, 1, C), x.dtype)
    return jnp.concatenate([zc, x, zc], axis=1)


def _conv3x3_parity_rows(planes_pad, w_ref, p, q, H, W):
    """One output parity (p, q) of a 3x3 / stride-1 / pad-1 conv.

    planes_pad[ky][kx]: (H+2, W+2, C) zero-padded plane of full-res pixels
                        (2i+ky, 2j+kx).
    w_ref             : (3, 3*C, Cout) ref; chunk r holds taps (dy=r-1, dx, ci).
    Returns (H*W, Cout) f32; row i*W+j is full-res pixel (2i+p, 2j+q).
    K-chunked: three K=3*C MXU matmuls accumulated (no (HW, 9C) im2col buffer).
    """
    acc = None
    for r, dy in enumerate((-1, 0, 1)):
        ky = (p + dy) % 2
        fy = (p + dy - ky) // 2                 # plane-row shift in {-1, 0, 1}
        pieces = []
        for dx in (-1, 0, 1):
            kx = (q + dx) % 2
            fx = (q + dx - kx) // 2
            pieces.append(planes_pad[ky][kx][fy + 1:fy + 1 + H,
                                             fx + 1:fx + 1 + W, :])
        C = pieces[0].shape[-1]
        chunk = jnp.concatenate(pieces, axis=-1).reshape(H * W, 3 * C)
        part = jnp.dot(chunk, w_ref[r], preferred_element_type=jnp.float32)
        acc = part if acc is None else acc + part
    return acc


# ----------------------------------------------------------------------------
# pass 1: transpose-conv + crop_concat + convr1 (pre-BN) + identity 1x1 + stats
# ----------------------------------------------------------------------------
def _stage1_kernel(x_ref, dpl_ref, wt_ref, bt_ref, w1_ref, wd_ref,
                   z1_ref, zid_ref, st_ref):
    _, H, W, Cin = x_ref.shape
    Cout = dpl_ref.shape[-1]
    HW = H * W

    dfull = dpl_ref[0]                                        # (4H, W, Cout), parity-planar

    # identity path: 1x1 conv on the skip tensor (bias bd dropped: cancelled by BN).
    d_rows = dfull.reshape(4 * HW, Cout)
    zid = jnp.dot(d_rows, wd_ref[...], preferred_element_type=jnp.float32)

    # ConvTranspose2d(k=2, s=2): one small lane-aligned matmul per output
    # parity; its 4 taps ARE the parity planes of the upsampled image.
    xm = x_ref[0].reshape(HW, Cin)
    planes = [[None, None], [None, None]]
    for ky in range(2):
        for kx in range(2):
            t = ky * 2 + kx
            up_p = (jnp.dot(xm, wt_ref[t], preferred_element_type=jnp.float32)
                    .reshape(H, W, Cout) + bt_ref[...])
            dn_p = dfull[t * H:(t + 1) * H]                   # (H, W, Cout)
            # crop_concat (margin 0) in parity-planar form, zero-padded in VMEM.
            planes[ky][kx] = _pad_hw1(jnp.concatenate([up_p, dn_p], axis=-1))

    # convr1 (pre-BN; conv bias dropped, exactly cancelled by training-mode BN).
    z1 = jnp.concatenate(
        [_conv3x3_parity_rows(planes, w1_ref, p, q, H, W)
         for p in range(2) for q in range(2)], axis=0)        # (4*HW, Cout)

    # per-image centred BN partial statistics from the f32 values (pre-cast).
    m1 = jnp.mean(z1, axis=0, keepdims=True)
    v1 = jnp.sum((z1 - m1) ** 2, axis=0, keepdims=True)
    mi = jnp.mean(zid, axis=0, keepdims=True)
    vi = jnp.sum((zid - mi) ** 2, axis=0, keepdims=True)
    st_ref[0] = jnp.concatenate([m1, v1, mi, vi], axis=0)     # (4, Cout)

    z1_ref[0] = z1.astype(z1_ref.dtype)                       # row-major (feeds conv2)
    zid_ref[0] = zid.T.astype(zid_ref.dtype)                  # channel-major (lane-dense)


# ----------------------------------------------------------------------------
# pass 2: BN1+ReLU folded into convr2 prologue, convr2 (pre-BN) + stats
# ----------------------------------------------------------------------------
def _stage2_kernel(H, W, z1_ref, s1_ref, t1_ref, w2_ref, z2_ref, st_ref):
    Cout = z1_ref.shape[-1]
    HW = H * W
    h1 = jnp.maximum(z1_ref[0].astype(jnp.float32) * s1_ref[...] + t1_ref[...],
                     0.0)                                     # BN1 + ReLU
    planes = [[None, None], [None, None]]
    for p in range(2):
        for q in range(2):
            t = p * 2 + q
            planes[p][q] = _pad_hw1(h1[t * HW:(t + 1) * HW].reshape(H, W, Cout))

    z2 = jnp.concatenate(
        [_conv3x3_parity_rows(planes, w2_ref, p, q, H, W)
         for p in range(2) for q in range(2)], axis=0)        # (4*HW, Cout)

    m2 = jnp.mean(z2, axis=0, keepdims=True)
    v2 = jnp.sum((z2 - m2) ** 2, axis=0, keepdims=True)
    st_ref[0] = jnp.concatenate([m2, v2], axis=0)             # (2, Cout)
    z2_ref[0] = z2.T.astype(z2_ref.dtype)                     # channel-major (lane-dense)


# ----------------------------------------------------------------------------
# pass 3: BN2+ReLU, identity BN, residual combine (lane-dense both sides)
# ----------------------------------------------------------------------------
def _stage3_elem_kernel(mode, z2_ref, zid_ref, s2_ref, t2_ref, si_ref, ti_ref,
                        out_ref):
    h2 = jnp.maximum(z2_ref[0].astype(jnp.float32) * s2_ref[...] + t2_ref[...],
                     0.0)                                     # BN2 + ReLU
    idn = zid_ref[0].astype(jnp.float32) * si_ref[...] + ti_ref[...]   # down_Bn
    out_ref[0] = h2 + idn if mode == "sum" else h2 * idn


def _stage3_concat_kernel(z2_ref, zid_ref, s2_ref, t2_ref, si_ref, ti_ref,
                          wl_ref, wr_ref, buc_ref, out_ref):
    h2 = jnp.maximum(z2_ref[0].astype(jnp.float32) * s2_ref[...] + t2_ref[...],
                     0.0)
    idn = zid_ref[0].astype(jnp.float32) * si_ref[...] + ti_ref[...]
    # down_useconcat(cat([h2, idn], C)) expanded by linearity (no concat needed)
    out_ref[0] = (jnp.dot(wl_ref[...], h2, preferred_element_type=jnp.float32)
                  + jnp.dot(wr_ref[...], idn, preferred_element_type=jnp.float32)
                  + buc_ref[...])


# ----------------------------------------------------------------------------
# host-side glue
# ----------------------------------------------------------------------------
def _finalize_bn(mean_b, ssq_b, n_per_image, gamma, beta):
    """Combine per-image centred stats into a fused BN scale/shift (training)."""
    mean = jnp.mean(mean_b, axis=0)                           # (C,)
    total = mean_b.shape[0] * n_per_image
    var = (jnp.sum(ssq_b, axis=0)
           + n_per_image * jnp.sum((mean_b - mean[None, :]) ** 2, axis=0)) / total
    scale = gamma * lax.rsqrt(var + BN_EPS)
    shift = beta - mean * scale
    return scale.astype(jnp.float32), shift.astype(jnp.float32)


def prepack_stack_decoder_params(params):
    """One-time repack of PyTorch-layout weights into kernel matmul layout
    (hoisted out of the jitted forward so it does not run on every call)."""
    f32 = jnp.float32
    Cin, Cout = params["wt"].shape[0], params["wt"].shape[1]
    return {
        # ConvTranspose2d taps: one (Cin, Cout) matrix per output parity.
        "wt_p": jnp.transpose(params["wt"], (2, 3, 0, 1)).reshape(4, Cin, Cout).astype(f32),
        "bt": params["bt"].reshape(1, Cout).astype(f32),
        # 3x3 convs as 3 dy-chunks of (3*C, Cout), rows ordered (dx, ci).
        "w1k": jnp.transpose(params["w1"], (2, 3, 1, 0)).reshape(3, 3 * Cin, Cout).astype(f32),
        "w2k": jnp.transpose(params["w2"], (2, 3, 1, 0)).reshape(3, 3 * Cout, Cout).astype(f32),
        "wdT": params["wd"][:, :, 0, 0].T.astype(f32),
        # 1x1 'concat' head split by linearity, channel-major layout.
        "wl": params["w_uc"][:, :Cout, 0, 0].astype(f32),
        "wr": params["w_uc"][:, Cout:, 0, 0].astype(f32),
        "buc": params["b_uc"].reshape(Cout, 1).astype(f32),
        # conv biases b1/b2/bd intentionally omitted: a bias added right before
        # a training-mode BatchNorm is exactly removed by the mean subtraction.
        "gamma1": params["gamma1"].astype(f32), "beta1": params["beta1"].astype(f32),
        "gamma2": params["gamma2"].astype(f32), "beta2": params["beta2"].astype(f32),
        "gamma_d": params["gamma_d"].astype(f32), "beta_d": params["beta_d"].astype(f32),
    }


@functools.partial(jax.jit, static_argnames=("calculate", "padding"))
def stack_decoder_skip_forward(x, down_tensor, packed, calculate="sum", padding=1):
    """Pallas forward of StackDecoder_skip. x, down_tensor, result are NCHW."""
    assert padding == 1, "only padding=1 (shape-preserving 3x3 conv) is implemented"
    B, Cin, H, W = x.shape
    Bd, Cout, Hh, Wh = down_tensor.shape
    assert Bd == B and Cin == 2 * Cout and Hh == 2 * H and Wh == 2 * W
    f32, bar = jnp.float32, _BARRIER_DTYPE
    M = 4 * H * W                                   # parity rows per image (= Hh*Wh)

    # activation layout, done once by XLA: NCHW -> NHWC for x, and
    # space-to-depth parity planes (B, 4*H, W, Cout) for the skip tensor.
    xh = jnp.transpose(x, (0, 2, 3, 1)).astype(f32)
    dpl = jnp.transpose(down_tensor.reshape(B, Cout, H, 2, W, 2),
                        (0, 3, 5, 2, 4, 1)).reshape(B, 4 * H, W, Cout).astype(f32)

    vmem = _vmem_limit_bytes()
    full = lambda a: pl.BlockSpec(a.shape, lambda *_: (0,) * a.ndim)
    cp12 = pltpu.CompilerParams(dimension_semantics=("parallel",),
                                vmem_limit_bytes=vmem)

    # ---- pass 1 -------------------------------------------------------------
    z1, zid, st1 = pl.pallas_call(
        _stage1_kernel,
        grid=(B,),
        in_specs=[
            pl.BlockSpec((1, H, W, Cin), lambda b: (b, 0, 0, 0)),
            pl.BlockSpec((1, 4 * H, W, Cout), lambda b: (b, 0, 0, 0)),
            full(packed["wt_p"]), full(packed["bt"]),
            full(packed["w1k"]), full(packed["wdT"]),
        ],
        out_specs=[
            pl.BlockSpec((1, M, Cout), lambda b: (b, 0, 0)),
            pl.BlockSpec((1, Cout, M), lambda b: (b, 0, 0)),
            pl.BlockSpec((1, 4, Cout), lambda b: (b, 0, 0)),
        ],
        out_shape=[
            jax.ShapeDtypeStruct((B, M, Cout), bar),
            jax.ShapeDtypeStruct((B, Cout, M), bar),
            jax.ShapeDtypeStruct((B, 4, Cout), f32),
        ],
        compiler_params=cp12,
    )(xh, dpl, packed["wt_p"], packed["bt"], packed["w1k"], packed["wdT"])

    s1, t1 = _finalize_bn(st1[:, 0], st1[:, 1], M, packed["gamma1"], packed["beta1"])
    si, ti = _finalize_bn(st1[:, 2], st1[:, 3], M, packed["gamma_d"], packed["beta_d"])
    s1r, t1r = s1.reshape(1, Cout), t1.reshape(1, Cout)

    # ---- pass 2 -------------------------------------------------------------
    z2, st2 = pl.pallas_call(
        functools.partial(_stage2_kernel, H, W),
        grid=(B,),
        in_specs=[pl.BlockSpec((1, M, Cout), lambda b: (b, 0, 0)),
                  full(s1r), full(t1r), full(packed["w2k"])],
        out_specs=[pl.BlockSpec((1, Cout, M), lambda b: (b, 0, 0)),
                   pl.BlockSpec((1, 2, Cout), lambda b: (b, 0, 0))],
        out_shape=[jax.ShapeDtypeStruct((B, Cout, M), bar),
                   jax.ShapeDtypeStruct((B, 2, Cout), f32)],
        compiler_params=cp12,
    )(z1, s1r, t1r, packed["w2k"])

    s2, t2 = _finalize_bn(st2[:, 0], st2[:, 1], M, packed["gamma2"], packed["beta2"])

    # ---- pass 3 (row-tiled, lane-dense channel-major in AND out) -------------
    TM = _largest_tile(M, 512)
    cp3 = pltpu.CompilerParams(dimension_semantics=("parallel", "parallel"),
                               vmem_limit_bytes=vmem)
    tile = pl.BlockSpec((1, Cout, TM), lambda b, m: (b, 0, m))
    scales = (s2.reshape(Cout, 1), t2.reshape(Cout, 1),
              si.reshape(Cout, 1), ti.reshape(Cout, 1))

    if calculate in ("sum", "multiple"):
        kern = functools.partial(_stage3_elem_kernel, calculate)
        extra_args, extra_specs = (), ()
    elif calculate == "concat":
        kern = _stage3_concat_kernel
        extra_args = (packed["wl"], packed["wr"], packed["buc"])
        extra_specs = (full(packed["wl"]), full(packed["wr"]), full(packed["buc"]))
    else:
        raise ValueError(f"unknown calculate mode: {calculate}")

    out_cm = pl.pallas_call(
        kern,
        grid=(B, M // TM),
        in_specs=[tile, tile, *(full(s) for s in scales), *extra_specs],
        out_specs=tile,
        out_shape=jax.ShapeDtypeStruct((B, Cout, M), f32),
        compiler_params=cp3,
    )(z2, zid, *scales, *extra_args)

    # parity-planar, channel-major -> NCHW (pure layout, done once by XLA)
    out = out_cm.reshape(B, Cout, 2, 2, H, W)
    out = jnp.transpose(out, (0, 1, 4, 2, 5, 3)).reshape(B, Cout, Hh, Wh)
    return out


# ----------------------------------------------------------------------------
# parameters (PyTorch layouts) and a pure-JAX/XLA reference for verification
# ----------------------------------------------------------------------------
def init_stack_decoder_skip_params(key, in_channels, out_channels):
    Ci, Co = in_channels, out_channels
    ks = jax.random.split(key, 16)
    nrm = lambda k, s, fan: jax.random.normal(k, s, jnp.float32) / jnp.sqrt(float(fan))
    sml = lambda k, s: 0.1 * jax.random.normal(k, s, jnp.float32)
    return {
        "wt": nrm(ks[0], (Ci, Co, 2, 2), Ci), "bt": sml(ks[1], (Co,)),
        "wd": nrm(ks[2], (Co, Co, 1, 1), Co), "bd": sml(ks[3], (Co,)),
        "gamma_d": 1.0 + sml(ks[4], (Co,)), "beta_d": sml(ks[5], (Co,)),
        "w1": nrm(ks[6], (Co, Ci, 3, 3), 9 * Ci), "b1": sml(ks[7], (Co,)),
        "gamma1": 1.0 + sml(ks[8], (Co,)), "beta1": sml(ks[9], (Co,)),
        "w2": nrm(ks[10], (Co, Co, 3, 3), 9 * Co), "b2": sml(ks[11], (Co,)),
        "gamma2": 1.0 + sml(ks[12], (Co,)), "beta2": sml(ks[13], (Co,)),
        "w_uc": nrm(ks[14], (Co, 2 * Co, 1, 1), 2 * Co), "b_uc": sml(ks[15], (Co,)),
    }


def _bn_train_ref(y, gamma, beta):
    mean = jnp.mean(y, axis=(0, 2, 3), keepdims=True)
    var = jnp.mean((y - mean) ** 2, axis=(0, 2, 3), keepdims=True)
    return ((y - mean) * lax.rsqrt(var + BN_EPS) * gamma.reshape(1, -1, 1, 1)
            + beta.reshape(1, -1, 1, 1))


def stack_decoder_skip_reference(x, down_tensor, params, calculate="sum"):
    """Independent pure-JAX reference of the PyTorch module (training-mode BN)."""
    hp = lax.Precision.HIGHEST
    B, _, H, W = x.shape
    Co = down_tensor.shape[1]
    up = jnp.einsum("nchw,cokl->nohkwl", x, params["wt"], precision=hp)
    up = up.reshape(B, Co, 2 * H, 2 * W) + params["bt"].reshape(1, -1, 1, 1)
    idn = (jnp.einsum("nchw,oc->nohw", down_tensor, params["wd"][:, :, 0, 0],
                      precision=hp) + params["bd"].reshape(1, -1, 1, 1))
    idn = _bn_train_ref(idn, params["gamma_d"], params["beta_d"])
    cat = jnp.concatenate([up, down_tensor], axis=1)

    def convbnrelu(t, w, b, gamma, beta):
        y = lax.conv_general_dilated(
            t, w, (1, 1), ((1, 1), (1, 1)),
            dimension_numbers=("NCHW", "OIHW", "NCHW"), precision=hp)
        y = y + b.reshape(1, -1, 1, 1)
        return jax.nn.relu(_bn_train_ref(y, gamma, beta))

    h = convbnrelu(cat, params["w1"], params["b1"], params["gamma1"], params["beta1"])
    h = convbnrelu(h, params["w2"], params["b2"], params["gamma2"], params["beta2"])
    if calculate == "sum":
        return h + idn
    if calculate == "multiple":
        return h * idn
    cc = jnp.concatenate([h, idn], axis=1)
    return (jnp.einsum("nchw,oc->nohw", cc, params["w_uc"][:, :, 0, 0], precision=hp)
            + params["b_uc"].reshape(1, -1, 1, 1))


if __name__ == "__main__":
    key = jax.random.PRNGKey(0)
    kx, kd, kp = jax.random.split(key, 3)

    B, Cout, H, W = 2, 8, 8, 8            # x: (B, 2*Cout, H, W); skip: (B, Cout, 2H, 2W)
    Cin = 2 * Cout
    x = jax.random.normal(kx, (B, Cin, H, W), jnp.float32)
    down = jax.random.normal(kd, (B, Cout, 2 * H, 2 * W), jnp.float32)
    params = init_stack_decoder_skip_params(kp, Cin, Cout)
    packed = prepack_stack_decoder_params(params)

    out = stack_decoder_skip_forward(x, down, packed, calculate="sum")
    out = jax.block_until_ready(out)
    assert out.shape == (B, Cout, 2 * H, 2 * W), out.shape
    assert bool(jnp.all(jnp.isfinite(out)))

    ref = stack_decoder_skip_reference(x, down, params, calculate="sum")
    max_err = float(jnp.max(jnp.abs(out - ref)))
    mean_err = float(jnp.mean(jnp.abs(out - ref)))
    # bf16 HBM-barrier tensors bound the error (~2^-9 relative per round trip).
    assert max_err < 1e-1 and mean_err < 2e-2, (max_err, mean_err)
    print("KERNEL_OK")
</pallas_src>

<mosaic_0001>
module attributes {stable_mosaic.version = 11 : i64} {
  func.func @_stage1_kernel(%arg0: i32, %arg1: memref<1x8x8x16xf32, #tpu.memory_space<vmem>>, %arg2: memref<1x32x8x8xf32, #tpu.memory_space<vmem>>, %arg3: memref<4x16x8xf32, #tpu.memory_space<vmem>>, %arg4: memref<1x8xf32, #tpu.memory_space<vmem>>, %arg5: memref<3x48x8xf32, #tpu.memory_space<vmem>>, %arg6: memref<8x8xf32, #tpu.memory_space<vmem>>, %arg7: memref<1x256x8xbf16, #tpu.memory_space<vmem>>, %arg8: memref<1x8x256xbf16, #tpu.memory_space<vmem>>, %arg9: memref<1x4x8xf32, #tpu.memory_space<vmem>>) attributes {dimension_semantics = [#tpu.dimension_semantics<parallel>], iteration_bounds = array<i64: 2>, scalar_prefetch = 0 : i64, scratch_operands = 0 : i64, tpu.core_type = #tpu.core_type<tc>, window_params = [{transform_indices = @transform_0, window_bounds = array<i64: 1, 8, 8, 16>}, {transform_indices = @transform_1, window_bounds = array<i64: 1, 32, 8, 8>}, {pipeline_mode = #tpu.pipeline_mode<synchronous>, transform_indices = @transform_2, window_bounds = array<i64: 4, 16, 8>}, {pipeline_mode = #tpu.pipeline_mode<synchronous>, transform_indices = @transform_3, window_bounds = array<i64: 1, 8>}, {pipeline_mode = #tpu.pipeline_mode<synchronous>, transform_indices = @transform_4, window_bounds = array<i64: 3, 48, 8>}, {pipeline_mode = #tpu.pipeline_mode<synchronous>, transform_indices = @transform_5, window_bounds = array<i64: 8, 8>}, {transform_indices = @transform_6, window_bounds = array<i64: 1, 256, 8>}, {transform_indices = @transform_7, window_bounds = array<i64: 1, 8, 256>}, {transform_indices = @transform_8, window_bounds = array<i64: 1, 4, 8>}]} {
    %c0 = arith.constant 0 : index
    %c0_0 = arith.constant 0 : index
    %c0_1 = arith.constant 0 : index
    %c0_2 = arith.constant 0 : index
    %0 = vector.load %arg2[%c0, %c0_0, %c0_1, %c0_2] : memref<1x32x8x8xf32, #tpu.memory_space<vmem>>, vector<1x32x8x8xf32>
    %1 = vector.shape_cast %0 : vector<1x32x8x8xf32> to vector<32x8x8xf32>
    %2 = vector.shape_cast %1 : vector<32x8x8xf32> to vector<256x8xf32>
    %c0_3 = arith.constant 0 : index
    %c0_4 = arith.constant 0 : index
    %3 = vector.load %arg6[%c0_3, %c0_4] : memref<8x8xf32, #tpu.memory_space<vmem>>, vector<8x8xf32>
    %cst = arith.constant dense<0.000000e+00> : vector<256x8xf32>
    %4 = tpu.matmul %2, %3, %cst {dimension_numbers = #tpu.dot_dimension_numbers<[1], [0], [0], [1], [0, 0, 1, 1], [], []>} : vector<256x8xf32>, vector<8x8xf32>, vector<256x8xf32> -> vector<256x8xf32>
    %c0_5 = arith.constant 0 : index
    %c0_6 = arith.constant 0 : index
    %c0_7 = arith.constant 0 : index
    %c0_8 = arith.constant 0 : index
    %5 = vector.load %arg1[%c0_5, %c0_6, %c0_7, %c0_8] : memref<1x8x8x16xf32, #tpu.memory_space<vmem>>, vector<1x8x8x16xf32>
    %6 = vector.shape_cast %5 : vector<1x8x8x16xf32> to vector<8x8x16xf32>
    %7 = vector.shape_cast %6 : vector<8x8x16xf32> to vector<64x16xf32>
    %c0_9 = arith.constant 0 : index
    %c0_10 = arith.constant 0 : index
    %c0_11 = arith.constant 0 : index
    %8 = vector.load %arg3[%c0_9, %c0_10, %c0_11] : memref<4x16x8xf32, #tpu.memory_space<vmem>>, vector<1x16x8xf32>
    %9 = vector.shape_cast %8 : vector<1x16x8xf32> to vector<16x8xf32>
    %cst_12 = arith.constant dense<0.000000e+00> : vector<64x8xf32>
    %10 = tpu.matmul %7, %9, %cst_12 {dimension_numbers = #tpu.dot_dimension_numbers<[1], [0], [0], [1], [0, 0, 1, 1], [], []>} : vector<64x16xf32>, vector<16x8xf32>, vector<64x8xf32> -> vector<64x8xf32>
    %11 = vector.shape_cast %10 : vector<64x8xf32> to vector<8x8x8xf32>
    %c0_13 = arith.constant 0 : index
    %c0_14 = arith.constant 0 : index
    %12 = vector.load %arg4[%c0_13, %c0_14] : memref<1x8xf32, #tpu.memory_space<vmem>>, vector<1x8xf32>
    %13 = vector.shape_cast %12 : vector<1x8xf32> to vector<1x1x8xf32>
    %14 = vector.broadcast %13 : vector<1x1x8xf32> to vector<8x8x8xf32>
    %15 = arith.addf %11, %14 : vector<8x8x8xf32>
    %16 = vector.extract_strided_slice %1 {offsets = [0, 0, 0], sizes = [8, 8, 8], strides = [1, 1, 1]} : vector<32x8x8xf32> to vector<8x8x8xf32>
    %17 = tpu.concatenate %15, %16 in 2 : vector<8x8x8xf32>, vector<8x8x8xf32> -> vector<8x8x16xf32>
    %cst_15 = arith.constant 0.000000e+00 : f32
    %18 = vector.broadcast %cst_15 : f32 to vector<1x8x16xf32>
    %19 = tpu.concatenate %18, %17, %18 in 0 : vector<1x8x16xf32>, vector<8x8x16xf32>, vector<1x8x16xf32> -> vector<10x8x16xf32>
    %cst_16 = arith.constant 0.000000e+00 : f32
    %20 = vector.broadcast %cst_16 : f32 to vector<10x1x16xf32>
    %21 = tpu.concatenate %20, %19, %20 in 1 : vector<10x1x16xf32>, vector<10x8x16xf32>, vector<10x1x16xf32> -> vector<10x10x16xf32>
    %c1 = arith.constant 1 : index
    %c0_17 = arith.constant 0 : index
    %c0_18 = arith.constant 0 : index
    %22 = vector.load %arg3[%c1, %c0_17, %c0_18] : memref<4x16x8xf32, #tpu.memory_space<vmem>>, vector<1x16x8xf32>
    %23 = vector.shape_cast %22 : vector<1x16x8xf32> to vector<16x8xf32>
    %cst_19 = arith.constant dense<0.000000e+00> : vector<64x8xf32>
    %24 = tpu.matmul %7, %23, %cst_19 {dimension_numbers = #tpu.dot_dimension_numbers<[1], [0], [0], [1], [0, 0, 1, 1], [], []>} : vector<64x16xf32>, vector<16x8xf32>, vector<64x8xf32> -> vector<64x8xf32>
    %25 = vector.shape_cast %24 : vector<64x8xf32> to vector<8x8x8xf32>
    %c0_20 = arith.constant 0 : index
    %c0_21 = arith.constant 0 : index
    %26 = vector.load %arg4[%c0_20, %c0_21] : memref<1x8xf32, #tpu.memory_space<vmem>>, vector<1x8xf32>
    %27 = vector.shape_cast %26 : vector<1x8xf32> to vector<1x1x8xf32>
    %28 = vector.broadcast %27 : vector<1x1x8xf32> to vector<8x8x8xf32>
    %29 = arith.addf %25, %28 : vector<8x8x8xf32>
    %30 = vector.extract_strided_slice %1 {offsets = [8, 0, 0], sizes = [8, 8, 8], strides = [1, 1, 1]} : vector<32x8x8xf32> to vector<8x8x8xf32>
    %31 = tpu.concatenate %29, %30 in 2 : vector<8x8x8xf32>, vector<8x8x8xf32> -> vector<8x8x16xf32>
    %cst_22 = arith.constant 0.000000e+00 : f32
    %32 = vector.broadcast %cst_22 : f32 to vector<1x8x16xf32>
    %33 = tpu.concatenate %32, %31, %32 in 0 : vector<1x8x16xf32>, vector<8x8x16xf32>, vector<1x8x16xf32> -> vector<10x8x16xf32>
    %cst_23 = arith.constant 0.000000e+00 : f32
    %34 = vector.broadcast %cst_23 : f32 to vector<10x1x16xf32>
    %35 = tpu.concatenate %34, %33, %34 in 1 : vector<10x1x16xf32>, vector<10x8x16xf32>, vector<10x1x16xf32> -> vector<10x10x16xf32>
    %c2 = arith.constant 2 : index
    %c0_24 = arith.constant 0 : index
    %c0_25 = arith.constant 0 : index
    %36 = vector.load %arg3[%c2, %c0_24, %c0_25] : memref<4x16x8xf32, #tpu.memory_space<vmem>>, vector<1x16x8xf32>
    %37 = vector.shape_cast %36 : vector<1x16x8xf32> to vector<16x8xf32>
    %cst_26 = arith.constant dense<0.000000e+00> : vector<64x8xf32>
    %38 = tpu.matmul %7, %37, %cst_26 {dimension_numbers = #tpu.dot_dimension_numbers<[1], [0], [0], [1], [0, 0, 1, 1], [], []>} : vector<64x16xf32>, vector<16x8xf32>, vector<64x8xf32> -> vector<64x8xf32>
    %39 = vector.shape_cast %38 : vector<64x8xf32> to vector<8x8x8xf32>
    %c0_27 = arith.constant 0 : index
    %c0_28 = arith.constant 0 : index
    %40 = vector.load %arg4[%c0_27, %c0_28] : memref<1x8xf32, #tpu.memory_space<vmem>>, vector<1x8xf32>
    %41 = vector.shape_cast %40 : vector<1x8xf32> to vector<1x1x8xf32>
    %42 = vector.broadcast %41 : vector<1x1x8xf32> to vector<8x8x8xf32>
    %43 = arith.addf %39, %42 : vector<8x8x8xf32>
    %44 = vector.extract_strided_slice %1 {offsets = [16, 0, 0], sizes = [8, 8, 8], strides = [1, 1, 1]} : vector<32x8x8xf32> to vector<8x8x8xf32>
    %45 = tpu.concatenate %43, %44 in 2 : vector<8x8x8xf32>, vector<8x8x8xf32> -> vector<8x8x16xf32>
    %cst_29 = arith.constant 0.000000e+00 : f32
    %46 = vector.broadcast %cst_29 : f32 to vector<1x8x16xf32>
    %47 = tpu.concatenate %46, %45, %46 in 0 : vector<1x8x16xf32>, vector<8x8x16xf32>, vector<1x8x16xf32> -> vector<10x8x16xf32>
    %cst_30 = arith.constant 0.000000e+00 : f32
    %48 = vector.broadcast %cst_30 : f32 to vector<10x1x16xf32>
    %49 = tpu.concatenate %48, %47, %48 in 1 : vector<10x1x16xf32>, vector<10x8x16xf32>, vector<10x1x16xf32> -> vector<10x10x16xf32>
    %c3 = arith.constant 3 : index
    %c0_31 = arith.constant 0 : index
    %c0_32 = arith.constant 0 : index
    %50 = vector.load %arg3[%c3, %c0_31, %c0_32] : memref<4x16x8xf32, #tpu.memory_space<vmem>>, vector<1x16x8xf32>
    %51 = vector.shape_cast %50 : vector<1x16x8xf32> to vector<16x8xf32>
    %cst_33 = arith.constant dense<0.000000e+00> : vector<64x8xf32>
    %52 = tpu.matmul %7, %51, %cst_33 {dimension_numbers = #tpu.dot_dimension_numbers<[1], [0], [0], [1], [0, 0, 1, 1], [], []>} : vector<64x16xf32>, vector<16x8xf32>, vector<64x8xf32> -> vector<64x8xf32>
    %53 = vector.shape_cast %52 : vector<64x8xf32> to vector<8x8x8xf32>
    %c0_34 = arith.constant 0 : index
    %c0_35 = arith.constant 0 : index
    %54 = vector.load %arg4[%c0_34, %c0_35] : memref<1x8xf32, #tpu.memory_space<vmem>>, vector<1x8xf32>
    %55 = vector.shape_cast %54 : vector<1x8xf32> to vector<1x1x8xf32>
    %56 = vector.broadcast %55 : vector<1x1x8xf32> to vector<8x8x8xf32>
    %57 = arith.addf %53, %56 : vector<8x8x8xf32>
    %58 = vector.extract_strided_slice %1 {offsets = [24, 0, 0], sizes = [8, 8, 8], strides = [1, 1, 1]} : vector<32x8x8xf32> to vector<8x8x8xf32>
    %59 = tpu.concatenate %57, %58 in 2 : vector<8x8x8xf32>, vector<8x8x8xf32> -> vector<8x8x16xf32>
    %cst_36 = arith.constant 0.000000e+00 : f32
    %60 = vector.broadcast %cst_36 : f32 to vector<1x8x16xf32>
    %61 = tpu.concatenate %60, %59, %60 in 0 : vector<1x8x16xf32>, vector<8x8x16xf32>, vector<1x8x16xf32> -> vector<10x8x16xf32>
    %cst_37 = arith.constant 0.000000e+00 : f32
    %62 = vector.broadcast %cst_37 : f32 to vector<10x1x16xf32>
    %63 = tpu.concatenate %62, %61, %62 in 1 : vector<10x1x16xf32>, vector<10x8x16xf32>, vector<10x1x16xf32> -> vector<10x10x16xf32>
    %64 = vector.extract_strided_slice %63 {offsets = [0, 0, 0], sizes = [8, 8, 16], strides = [1, 1, 1]} : vector<10x10x16xf32> to vector<8x8x16xf32>
    %65 = vector.extract_strided_slice %49 {offsets = [0, 1, 0], sizes = [8, 8, 16], strides = [1, 1, 1]} : vector<10x10x16xf32> to vector<8x8x16xf32>
    %66 = vector.extract_strided_slice %63 {offsets = [0, 1, 0], sizes = [8, 8, 16], strides = [1, 1, 1]} : vector<10x10x16xf32> to vector<8x8x16xf32>
    %67 = tpu.concatenate %64, %65, %66 in 2 : vector<8x8x16xf32>, vector<8x8x16xf32>, vector<8x8x16xf32> -> vector<8x8x48xf32>
    %68 = vector.shape_cast %67 : vector<8x8x48xf32> to vector<64x48xf32>
    %c0_38 = arith.constant 0 : index
    %c0_39 = arith.constant 0 : index
    %c0_40 = arith.constant 0 : index
    %69 = vector.load %arg5[%c0_38, %c0_39, %c0_40] : memref<3x48x8xf32, #tpu.memory_space<vmem>>, vector<1x48x8xf32>
    %70 = vector.shape_cast %69 : vector<1x48x8xf32> to vector<48x8xf32>
    %cst_41 = arith.constant dense<0.000000e+00> : vector<64x8xf32>
    %71 = tpu.matmul %68, %70, %cst_41 {dimension_numbers = #tpu.dot_dimension_numbers<[1], [0], [0], [1], [0, 0, 1, 1], [], []>} : vector<64x48xf32>, vector<48x8xf32>, vector<64x8xf32> -> vector<64x8xf32>
    %72 = vector.extract_strided_slice %35 {offsets = [1, 0, 0], sizes = [8, 8, 16], strides = [1, 1, 1]} : vector<10x10x16xf32> to vector<8x8x16xf32>
    %73 = vector.extract_strided_slice %21 {offsets = [1, 1, 0], sizes = [8, 8, 16], strides = [1, 1, 1]} : vector<10x10x16xf32> to vector<8x8x16xf32>
    %74 = vector.extract_strided_slice %35 {offsets = [1, 1, 0], sizes = [8, 8, 16], strides = [1, 1, 1]} : vector<10x10x16xf32> to vector<8x8x16xf32>
    %75 = tpu.concatenate %72, %73, %74 in 2 : vector<8x8x16xf32>, vector<8x8x16xf32>, vector<8x8x16xf32> -> vector<8x8x48xf32>
    %76 = vector.shape_cast %75 : vector<8x8x48xf32> to vector<64x48xf32>
    %c1_42 = arith.constant 1 : index
    %c0_43 = arith.constant 0 : index
    %c0_44 = arith.constant 0 : index
    %77 = vector.load %arg5[%c1_42, %c0_43, %c0_44] : memref<3x48x8xf32, #tpu.memory_space<vmem>>, vector<1x48x8xf32>
    %78 = vector.shape_cast %77 : vector<1x48x8xf32> to vector<48x8xf32>
    %cst_45 = arith.constant dense<0.000000e+00> : vector<64x8xf32>
    %79 = tpu.matmul %76, %78, %cst_45 {dimension_numbers = #tpu.dot_dimension_numbers<[1], [0], [0], [1], [0, 0, 1, 1], [], []>} : vector<64x48xf32>, vector<48x8xf32>, vector<64x8xf32> -> vector<64x8xf32>
    %80 = arith.addf %71, %79 : vector<64x8xf32>
    %81 = vector.extract_strided_slice %63 {offsets = [1, 0, 0], sizes = [8, 8, 16], strides = [1, 1, 1]} : vector<10x10x16xf32> to vector<8x8x16xf32>
    %82 = vector.extract_strided_slice %49 {offsets = [1, 1, 0], sizes = [8, 8, 16], strides = [1, 1, 1]} : vector<10x10x16xf32> to vector<8x8x16xf32>
    %83 = vector.extract_strided_slice %63 {offsets = [1, 1, 0], sizes = [8, 8, 16], strides = [1, 1, 1]} : vector<10x10x16xf32> to vector<8x8x16xf32>
    %84 = tpu.concatenate %81, %82, %83 in 2 : vector<8x8x16xf32>, vector<8x8x16xf32>, vector<8x8x16xf32> -> vector<8x8x48xf32>
    %85 = vector.shape_cast %84 : vector<8x8x48xf32> to vector<64x48xf32>
    %c2_46 = arith.constant 2 : index
    %c0_47 = arith.constant 0 : index
    %c0_48 = arith.constant 0 : index
    %86 = vector.load %arg5[%c2_46, %c0_47, %c0_48] : memref<3x48x8xf32, #tpu.memory_space<vmem>>, vector<1x48x8xf32>
    %87 = vector.shape_cast %86 : vector<1x48x8xf32> to vector<48x8xf32>
    %cst_49 = arith.constant dense<0.000000e+00> : vector<64x8xf32>
    %88 = tpu.matmul %85, %87, %cst_49 {dimension_numbers = #tpu.dot_dimension_numbers<[1], [0], [0], [1], [0, 0, 1, 1], [], []>} : vector<64x48xf32>, vector<48x8xf32>, vector<64x8xf32> -> vector<64x8xf32>
    %89 = arith.addf %80, %88 : vector<64x8xf32>
    %90 = vector.extract_strided_slice %49 {offsets = [0, 1, 0], sizes = [8, 8, 16], strides = [1, 1, 1]} : vector<10x10x16xf32> to vector<8x8x16xf32>
    %91 = vector.extract_strided_slice %63 {offsets = [0, 1, 0], sizes = [8, 8, 16], strides = [1, 1, 1]} : vector<10x10x16xf32> to vector<8x8x16xf32>
    %92 = vector.extract_strided_slice %49 {offsets = [0, 2, 0], sizes = [8, 8, 16], strides = [1, 1, 1]} : vector<10x10x16xf32> to vector<8x8x16xf32>
    %93 = tpu.concatenate %90, %91, %92 in 2 : vector<8x8x16xf32>, vector<8x8x16xf32>, vector<8x8x16xf32> -> vector<8x8x48xf32>
    %94 = vector.shape_cast %93 : vector<8x8x48xf32> to vector<64x48xf32>
    %c0_50 = arith.constant 0 : index
    %c0_51 = arith.constant 0 : index
    %c0_52 = arith.constant 0 : index
    %95 = vector.load %arg5[%c0_50, %c0_51, %c0_52] : memref<3x48x8xf32, #tpu.memory_space<vmem>>, vector<1x48x8xf32>
    %96 = vector.shape_cast %95 : vector<1x48x8xf32> to vector<48x8xf32>
    %cst_53 = arith.constant dense<0.000000e+00> : vector<64x8xf32>
    %97 = tpu.matmul %94, %96, %cst_53 {dimension_numbers = #tpu.dot_dimension_numbers<[1], [0], [0], [1], [0, 0, 1, 1], [], []>} : vector<64x48xf32>, vector<48x8xf32>, vector<64x8xf32> -> vector<64x8xf32>
    %98 = vector.extract_strided_slice %21 {offsets = [1, 1, 0], sizes = [8, 8, 16], strides = [1, 1, 1]} : vector<10x10x16xf32> to vector<8x8x16xf32>
    %99 = vector.extract_strided_slice %35 {offsets = [1, 1, 0], sizes = [8, 8, 16], strides = [1, 1, 1]} : vector<10x10x16xf32> to vector<8x8x16xf32>
    %100 = vector.extract_strided_slice %21 {offsets = [1, 2, 0], sizes = [8, 8, 16], strides = [1, 1, 1]} : vector<10x10x16xf32> to vector<8x8x16xf32>
    %101 = tpu.concatenate %98, %99, %100 in 2 : vector<8x8x16xf32>, vector<8x8x16xf32>, vector<8x8x16xf32> -> vector<8x8x48xf32>
    %102 = vector.shape_cast %101 : vector<8x8x48xf32> to vector<64x48xf32>
    %c1_54 = arith.constant 1 : index
    %c0_55 = arith.constant 0 : index
    %c0_56 = arith.constant 0 : index
    %103 = vector.load %arg5[%c1_54, %c0_55, %c0_56] : memref<3x48x8xf32, #tpu.memory_space<vmem>>, vector<1x48x8xf32>
    %104 = vector.shape_cast %103 : vector<1x48x8xf32> to vector<48x8xf32>
    %cst_57 = arith.constant dense<0.000000e+00> : vector<64x8xf32>
    %105 = tpu.matmul %102, %104, %cst_57 {dimension_numbers = #tpu.dot_dimension_numbers<[1], [0], [0], [1], [0, 0, 1, 1], [], []>} : vector<64x48xf32>, vector<48x8xf32>, vector<64x8xf32> -> vector<64x8xf32>
    %106 = arith.addf %97, %105 : vector<64x8xf32>
    %107 = vector.extract_strided_slice %49 {offsets = [1, 1, 0], sizes = [8, 8, 16], strides = [1, 1, 1]} : vector<10x10x16xf32> to vector<8x8x16xf32>
    %108 = vector.extract_strided_slice %63 {offsets = [1, 1, 0], sizes = [8, 8, 16], strides = [1, 1, 1]} : vector<10x10x16xf32> to vector<8x8x16xf32>
    %109 = vector.extract_strided_slice %49 {offsets = [1, 2, 0], sizes = [8, 8, 16], strides = [1, 1, 1]} : vector<10x10x16xf32> to vector<8x8x16xf32>
    %110 = tpu.concatenate %107, %108, %109 in 2 : vector<8x8x16xf32>, vector<8x8x16xf32>, vector<8x8x16xf32> -> vector<8x8x48xf32>
    %111 = vector.shape_cast %110 : vector<8x8x48xf32> to vector<64x48xf32>
    %c2_58 = arith.constant 2 : index
    %c0_59 = arith.constant 0 : index
    %c0_60 = arith.constant 0 : index
    %112 = vector.load %arg5[%c2_58, %c0_59, %c0_60] : memref<3x48x8xf32, #tpu.memory_space<vmem>>, vector<1x48x8xf32>
    %113 = vector.shape_cast %112 : vector<1x48x8xf32> to vector<48x8xf32>
    %cst_61 = arith.constant dense<0.000000e+00> : vector<64x8xf32>
    %114 = tpu.matmul %111, %113, %cst_61 {dimension_numbers = #tpu.dot_dimension_numbers<[1], [0], [0], [1], [0, 0, 1, 1], [], []>} : vector<64x48xf32>, vector<48x8xf32>, vector<64x8xf32> -> vector<64x8xf32>
    %115 = arith.addf %106, %114 : vector<64x8xf32>
    %116 = vector.extract_strided_slice %35 {offsets = [1, 0, 0], sizes = [8, 8, 16], strides = [1, 1, 1]} : vector<10x10x16xf32> to vector<8x8x16xf32>
    %117 = vector.extract_strided_slice %21 {offsets = [1, 1, 0], sizes = [8, 8, 16], strides = [1, 1, 1]} : vector<10x10x16xf32> to vector<8x8x16xf32>
    %118 = vector.extract_strided_slice %35 {offsets = [1, 1, 0], sizes = [8, 8, 16], strides = [1, 1, 1]} : vector<10x10x16xf32> to vector<8x8x16xf32>
    %119 = tpu.concatenate %116, %117, %118 in 2 : vector<8x8x16xf32>, vector<8x8x16xf32>, vector<8x8x16xf32> -> vector<8x8x48xf32>
    %120 = vector.shape_cast %119 : vector<8x8x48xf32> to vector<64x48xf32>
    %c0_62 = arith.constant 0 : index
    %c0_63 = arith.constant 0 : index
    %c0_64 = arith.constant 0 : index
    %121 = vector.load %arg5[%c0_62, %c0_63, %c0_64] : memref<3x48x8xf32, #tpu.memory_space<vmem>>, vector<1x48x8xf32>
    %122 = vector.shape_cast %121 : vector<1x48x8xf32> to vector<48x8xf32>
    %cst_65 = arith.constant dense<0.000000e+00> : vector<64x8xf32>
    %123 = tpu.matmul %120, %122, %cst_65 {dimension_numbers = #tpu.dot_dimension_numbers<[1], [0], [0], [1], [0, 0, 1, 1], [], []>} : vector<64x48xf32>, vector<48x8xf32>, vector<64x8xf32> -> vector<64x8xf32>
    %124 = vector.extract_strided_slice %63 {offsets = [1, 0, 0], sizes = [8, 8, 16], strides = [1, 1, 1]} : vector<10x10x16xf32> to vector<8x8x16xf32>
    %125 = vector.extract_strided_slice %49 {offsets = [1, 1, 0], sizes = [8, 8, 16], strides = [1, 1, 1]} : vector<10x10x16xf32> to vector<8x8x16xf32>
    %126 = vector.extract_strided_slice %63 {offsets = [1, 1, 0], sizes = [8, 8, 16], strides = [1, 1, 1]} : vector<10x10x16xf32> to vector<8x8x16xf32>
    %127 = tpu.concatenate %124, %125, %126 in 2 : vector<8x8x16xf32>, vector<8x8x16xf32>, vector<8x8x16xf32> -> vector<8x8x48xf32>
    %128 = vector.shape_cast %127 : vector<8x8x48xf32> to vector<64x48xf32>
    %c1_66 = arith.constant 1 : index
    %c0_67 = arith.constant 0 : index
    %c0_68 = arith.constant 0 : index
    %129 = vector.load %arg5[%c1_66, %c0_67, %c0_68] : memref<3x48x8xf32, #tpu.memory_space<vmem>>, vector<1x48x8xf32>
    %130 = vector.shape_cast %129 : vector<1x48x8xf32> to vector<48x8xf32>
    %cst_69 = arith.constant dense<0.000000e+00> : vector<64x8xf32>
    %131 = tpu.matmul %128, %130, %cst_69 {dimension_numbers = #tpu.dot_dimension_numbers<[1], [0], [0], [1], [0, 0, 1, 1], [], []>} : vector<64x48xf32>, vector<48x8xf32>, vector<64x8xf32> -> vector<64x8xf32>
    %132 = arith.addf %123, %131 : vector<64x8xf32>
    %133 = vector.extract_strided_slice %35 {offsets = [2, 0, 0], sizes = [8, 8, 16], strides = [1, 1, 1]} : vector<10x10x16xf32> to vector<8x8x16xf32>
    %134 = vector.extract_strided_slice %21 {offsets = [2, 1, 0], sizes = [8, 8, 16], strides = [1, 1, 1]} : vector<10x10x16xf32> to vector<8x8x16xf32>
    %135 = vector.extract_strided_slice %35 {offsets = [2, 1, 0], sizes = [8, 8, 16], strides = [1, 1, 1]} : vector<10x10x16xf32> to vector<8x8x16xf32>
    %136 = tpu.concatenate %133, %134, %135 in 2 : vector<8x8x16xf32>, vector<8x8x16xf32>, vector<8x8x16xf32> -> vector<8x8x48xf32>
    %137 = vector.shape_cast %136 : vector<8x8x48xf32> to vector<64x48xf32>
    %c2_70 = arith.constant 2 : index
    %c0_71 = arith.constant 0 : index
    %c0_72 = arith.constant 0 : index
    %138 = vector.load %arg5[%c2_70, %c0_71, %c0_72] : memref<3x48x8xf32, #tpu.memory_space<vmem>>, vector<1x48x8xf32>
    %139 = vector.shape_cast %138 : vector<1x48x8xf32> to vector<48x8xf32>
    %cst_73 = arith.constant dense<0.000000e+00> : vector<64x8xf32>
    %140 = tpu.matmul %137, %139, %cst_73 {dimension_numbers = #tpu.dot_dimension_numbers<[1], [0], [0], [1], [0, 0, 1, 1], [], []>} : vector<64x48xf32>, vector<48x8xf32>, vector<64x8xf32> -> vector<64x8xf32>
    %141 = arith.addf %132, %140 : vector<64x8xf32>
    %142 = vector.extract_strided_slice %21 {offsets = [1, 1, 0], sizes = [8, 8, 16], strides = [1, 1, 1]} : vector<10x10x16xf32> to vector<8x8x16xf32>
    %143 = vector.extract_strided_slice %35 {offsets = [1, 1, 0], sizes = [8, 8, 16], strides = [1, 1, 1]} : vector<10x10x16xf32> to vector<8x8x16xf32>
    %144 = vector.extract_strided_slice %21 {offsets = [1, 2, 0], sizes = [8, 8, 16], strides = [1, 1, 1]} : vector<10x10x16xf32> to vector<8x8x16xf32>
    %145 = tpu.concatenate %142, %143, %144 in 2 : vector<8x8x16xf32>, vector<8x8x16xf32>, vector<8x8x16xf32> -> vector<8x8x48xf32>
    %146 = vector.shape_cast %145 : vector<8x8x48xf32> to vector<64x48xf32>
    %c0_74 = arith.constant 0 : index
    %c0_75 = arith.constant 0 : index
    %c0_76 = arith.constant 0 : index
    %147 = vector.load %arg5[%c0_74, %c0_75, %c0_76] : memref<3x48x8xf32, #tpu.memory_space<vmem>>, vector<1x48x8xf32>
    %148 = vector.shape_cast %147 : vector<1x48x8xf32> to vector<48x8xf32>
    %cst_77 = arith.constant dense<0.000000e+00> : vector<64x8xf32>
    %149 = tpu.matmul %146, %148, %cst_77 {dimension_numbers = #tpu.dot_dimension_numbers<[1], [0], [0], [1], [0, 0, 1, 1], [], []>} : vector<64x48xf32>, vector<48x8xf32>, vector<64x8xf32> -> vector<64x8xf32>
    %150 = vector.extract_strided_slice %49 {offsets = [1, 1, 0], sizes = [8, 8, 16], strides = [1, 1, 1]} : vector<10x10x16xf32> to vector<8x8x16xf32>
    %151 = vector.extract_strided_slice %63 {offsets = [1, 1, 0], sizes = [8, 8, 16], strides = [1, 1, 1]} : vector<10x10x16xf32> to vector<8x8x16xf32>
    %152 = vector.extract_strided_slice %49 {offsets = [1, 2, 0], sizes = [8, 8, 16], strides = [1, 1, 1]} : vector<10x10x16xf32> to vector<8x8x16xf32>
    %153 = tpu.concatenate %150, %151, %152 in 2 : vector<8x8x16xf32>, vector<8x8x16xf32>, vector<8x8x16xf32> -> vector<8x8x48xf32>
    %154 = vector.shape_cast %153 : vector<8x8x48xf32> to vector<64x48xf32>
    %c1_78 = arith.constant 1 : index
    %c0_79 = arith.constant 0 : index
    %c0_80 = arith.constant 0 : index
    %155 = vector.load %arg5[%c1_78, %c0_79, %c0_80] : memref<3x48x8xf32, #tpu.memory_space<vmem>>, vector<1x48x8xf32>
    %156 = vector.shape_cast %155 : vector<1x48x8xf32> to vector<48x8xf32>
    %cst_81 = arith.constant dense<0.000000e+00> : vector<64x8xf32>
    %157 = tpu.matmul %154, %156, %cst_81 {dimension_numbers = #tpu.dot_dimension_numbers<[1], [0], [0], [1], [0, 0, 1, 1], [], []>} : vector<64x48xf32>, vector<48x8xf32>, vector<64x8xf32> -> vector<64x8xf32>
    %158 = arith.addf %149, %157 : vector<64x8xf32>
    %159 = vector.extract_strided_slice %21 {offsets = [2, 1, 0], sizes = [8, 8, 16], strides = [1, 1, 1]} : vector<10x10x16xf32> to vector<8x8x16xf32>
    %160 = vector.extract_strided_slice %35 {offsets = [2, 1, 0], sizes = [8, 8, 16], strides = [1, 1, 1]} : vector<10x10x16xf32> to vector<8x8x16xf32>
    %161 = vector.extract_strided_slice %21 {offsets = [2, 2, 0], sizes = [8, 8, 16], strides = [1, 1, 1]} : vector<10x10x16xf32> to vector<8x8x16xf32>
    %162 = tpu.concatenate %159, %160, %161 in 2 : vector<8x8x16xf32>, vector<8x8x16xf32>, vector<8x8x16xf32> -> vector<8x8x48xf32>
    %163 = vector.shape_cast %162 : vector<8x8x48xf32> to vector<64x48xf32>
    %c2_82 = arith.constant 2 : index
    %c0_83 = arith.constant 0 : index
    %c0_84 = arith.constant 0 : index
    %164 = vector.load %arg5[%c2_82, %c0_83, %c0_84] : memref<3x48x8xf32, #tpu.memory_space<vmem>>, vector<1x48x8xf32>
    %165 = vector.shape_cast %164 : vector<1x48x8xf32> to vector<48x8xf32>
    %cst_85 = arith.constant dense<0.000000e+00> : vector<64x8xf32>
    %166 = tpu.matmul %163, %165, %cst_85 {dimension_numbers = #tpu.dot_dimension_numbers<[1], [0], [0], [1], [0, 0, 1, 1], [], []>} : vector<64x48xf32>, vector<48x8xf32>, vector<64x8xf32> -> vector<64x8xf32>
    %167 = arith.addf %158, %166 : vector<64x8xf32>
    %168 = tpu.concatenate %89, %115, %141, %167 in 0 : vector<64x8xf32>, vector<64x8xf32>, vector<64x8xf32>, vector<64x8xf32> -> vector<256x8xf32>
    %cst_86 = arith.constant dense<0.000000e+00> : vector<8xf32>
    %169 = vector.multi_reduction <add>, %168, %cst_86 [0] : vector<256x8xf32> to vector<8xf32>
    %170 = vector.shape_cast %169 : vector<8xf32> to vector<1x8xf32>
    %cst_87 = arith.constant 2.560000e+02 : f32
    %171 = vector.broadcast %cst_87 : f32 to vector<1x8xf32>
    %172 = arith.divf %170, %171 : vector<1x8xf32>
    %173 = vector.broadcast %172 : vector<1x8xf32> to vector<256x8xf32>
    %174 = arith.subf %168, %173 : vector<256x8xf32>
    %175 = arith.mulf %174, %174 : vector<256x8xf32>
    %cst_88 = arith.constant dense<0.000000e+00> : vector<8xf32>
    %176 = vector.multi_reduction <add>, %175, %cst_88 [0] : vector<256x8xf32> to vector<8xf32>
    %177 = vector.shape_cast %176 : vector<8xf32> to vector<1x8xf32>
    %cst_89 = arith.constant dense<0.000000e+00> : vector<8xf32>
    %178 = vector.multi_reduction <add>, %4, %cst_89 [0] : vector<256x8xf32> to vector<8xf32>
    %179 = vector.shape_cast %178 : vector<8xf32> to vector<1x8xf32>
    %cst_90 = arith.constant 2.560000e+02 : f32
    %180 = vector.broadcast %cst_90 : f32 to vector<1x8xf32>
    %181 = arith.divf %179, %180 : vector<1x8xf32>
    %182 = vector.broadcast %181 : vector<1x8xf32> to vector<256x8xf32>
    %183 = arith.subf %4, %182 : vector<256x8xf32>
    %184 = arith.mulf %183, %183 : vector<256x8xf32>
    %cst_91 = arith.constant dense<0.000000e+00> : vector<8xf32>
    %185 = vector.multi_reduction <add>, %184, %cst_91 [0] : vector<256x8xf32> to vector<8xf32>
    %186 = vector.shape_cast %185 : vector<8xf32> to vector<1x8xf32>
    %187 = tpu.concatenate %172, %177, %181, %186 in 0 : vector<1x8xf32>, vector<1x8xf32>, vector<1x8xf32>, vector<1x8xf32> -> vector<4x8xf32>
    %c0_92 = arith.constant 0 : index
    %c0_93 = arith.constant 0 : index
    %c0_94 = arith.constant 0 : index
    %188 = vector.load %arg9[%c0_92, %c0_93, %c0_94] : memref<1x4x8xf32, #tpu.memory_space<vmem>>, vector<1x4x8xf32>
    %189 = vector.shape_cast %188 : vector<1x4x8xf32> to vector<4x8xf32>
    %190 = vector.shape_cast %187 : vector<4x8xf32> to vector<1x4x8xf32>
    tpu.vector_store %arg9[%c0_92, %c0_93, %c0_94], %190 {strides = array<i32>} : memref<1x4x8xf32, #tpu.memory_space<vmem>>, vector<1x4x8xf32>,
    %191 = arith.truncf %168 : vector<256x8xf32> to vector<256x8xbf16>
    %c0_95 = arith.constant 0 : index
    %c0_96 = arith.constant 0 : index
    %c0_97 = arith.constant 0 : index
    %192 = vector.load %arg7[%c0_95, %c0_96, %c0_97] : memref<1x256x8xbf16, #tpu.memory_space<vmem>>, vector<1x256x8xbf16>
    %193 = vector.shape_cast %192 : vector<1x256x8xbf16> to vector<256x8xbf16>
    %194 = vector.shape_cast %191 : vector<256x8xbf16> to vector<1x256x8xbf16>
    tpu.vector_store %arg7[%c0_95, %c0_96, %c0_97], %194 {strides = array<i32>} : memref<1x256x8xbf16, #tpu.memory_space<vmem>>, vector<1x256x8xbf16>,
    %195 = tpu.transpose %4, [1, 0] : vector<256x8xf32> -> vector<8x256xf32>
    %196 = arith.truncf %195 : vector<8x256xf32> to vector<8x256xbf16>
    %c0_98 = arith.constant 0 : index
    %c0_99 = arith.constant 0 : index
    %c0_100 = arith.constant 0 : index
    %197 = vector.load %arg8[%c0_98, %c0_99, %c0_100] : memref<1x8x256xbf16, #tpu.memory_space<vmem>>, vector<1x8x256xbf16>
    %198 = vector.shape_cast %197 : vector<1x8x256xbf16> to vector<8x256xbf16>
    %199 = vector.shape_cast %196 : vector<8x256xbf16> to vector<1x8x256xbf16>
    tpu.vector_store %arg8[%c0_98, %c0_99, %c0_100], %199 {strides = array<i32>} : memref<1x8x256xbf16, #tpu.memory_space<vmem>>, vector<1x8x256xbf16>,
    return
  }
  func.func @transform_0(%arg0: i32) -> (i32, i32, i32, i32) {
    %c0_i32 = arith.constant 0 : i32
    %c0_i32_0 = arith.constant 0 : i32
    %c0_i32_1 = arith.constant 0 : i32
    %c0_i32_2 = arith.constant 0 : i32
    return %arg0, %c0_i32, %c0_i32_0, %c0_i32_1 : i32, i32, i32, i32
  }
  func.func @transform_1(%arg0: i32) -> (i32, i32, i32, i32) {
    %c0_i32 = arith.constant 0 : i32
    %c0_i32_0 = arith.constant 0 : i32
    %c0_i32_1 = arith.constant 0 : i32
    %c0_i32_2 = arith.constant 0 : i32
    return %arg0, %c0_i32, %c0_i32_0, %c0_i32_1 : i32, i32, i32, i32
  }
  func.func @transform_2(%arg0: i32) -> (i32, i32, i32) {
    %c0_i32 = arith.constant 0 : i32
    %c0_i32_0 = arith.constant 0 : i32
    %c0_i32_1 = arith.constant 0 : i32
    %c0_i32_2 = arith.constant 0 : i32
    return %c0_i32, %c0_i32_0, %c0_i32_1 : i32, i32, i32
  }
  func.func @transform_3(%arg0: i32) -> (i32, i32) {
    %c0_i32 = arith.constant 0 : i32
    %c0_i32_0 = arith.constant 0 : i32
    %c0_i32_1 = arith.constant 0 : i32
    return %c0_i32, %c0_i32_0 : i32, i32
  }
  func.func @transform_4(%arg0: i32) -> (i32, i32, i32) {
    %c0_i32 = arith.constant 0 : i32
    %c0_i32_0 = arith.constant 0 : i32
    %c0_i32_1 = arith.constant 0 : i32
    %c0_i32_2 = arith.constant 0 : i32
    return %c0_i32, %c0_i32_0, %c0_i32_1 : i32, i32, i32
  }
  func.func @transform_5(%arg0: i32) -> (i32, i32) {
    %c0_i32 = arith.constant 0 : i32
    %c0_i32_0 = arith.constant 0 : i32
    %c0_i32_1 = arith.constant 0 : i32
    return %c0_i32, %c0_i32_0 : i32, i32
  }
  func.func @transform_6(%arg0: i32) -> (i32, i32, i32) {
    %c0_i32 = arith.constant 0 : i32
    %c0_i32_0 = arith.constant 0 : i32
    %c0_i32_1 = arith.constant 0 : i32
    return %arg0, %c0_i32, %c0_i32_0 : i32, i32, i32
  }
  func.func @transform_7(%arg0: i32) -> (i32, i32, i32) {
    %c0_i32 = arith.constant 0 : i32
    %c0_i32_0 = arith.constant 0 : i32
    %c0_i32_1 = arith.constant 0 : i32
    return %arg0, %c0_i32, %c0_i32_0 : i32, i32, i32
  }
  func.func @transform_8(%arg0: i32) -> (i32, i32, i32) {
    %c0_i32 = arith.constant 0 : i32
    %c0_i32_0 = arith.constant 0 : i32
    %c0_i32_1 = arith.constant 0 : i32
    return %arg0, %c0_i32, %c0_i32_0 : i32, i32, i32
  }
}

module attributes {stable_mosaic.version = 11 : i64} {
  func.func @_stage2_kernel(%arg0: i32, %arg1: memref<1x256x8xbf16, #tpu.memory_space<vmem>>, %arg2: memref<1x8xf32, #tpu.memory_space<vmem>>, %arg3: memref<1x8xf32, #tpu.memory_space<vmem>>, %arg4: memref<3x24x8xf32, #tpu.memory_space<vmem>>, %arg5: memref<1x8x256xbf16, #tpu.memory_space<vmem>>, %arg6: memref<1x2x8xf32, #tpu.memory_space<vmem>>) attributes {dimension_semantics = [#tpu.dimension_semantics<parallel>], iteration_bounds = array<i64: 2>, scalar_prefetch = 0 : i64, scratch_operands = 0 : i64, tpu.core_type = #tpu.core_type<tc>, window_params = [{transform_indices = @transform_0, window_bounds = array<i64: 1, 256, 8>}, {pipeline_mode = #tpu.pipeline_mode<synchronous>, transform_indices = @transform_1, window_bounds = array<i64: 1, 8>}, {pipeline_mode = #tpu.pipeline_mode<synchronous>, transform_indices = @transform_2, window_bounds = array<i64: 1, 8>}, {pipeline_mode = #tpu.pipeline_mode<synchronous>, transform_indices = @transform_3, window_bounds = array<i64: 3, 24, 8>}, {transform_indices = @transform_4, window_bounds = array<i64: 1, 8, 256>}, {transform_indices = @transform_5, window_bounds = array<i64: 1, 2, 8>}]} {
    %c0 = arith.constant 0 : index
    %c0_0 = arith.constant 0 : index
    %c0_1 = arith.constant 0 : index
    %0 = vector.load %arg1[%c0, %c0_0, %c0_1] : memref<1x256x8xbf16, #tpu.memory_space<vmem>>, vector<1x256x8xbf16>
    %1 = vector.shape_cast %0 : vector<1x256x8xbf16> to vector<256x8xbf16>
    %2 = arith.extf %1 : vector<256x8xbf16> to vector<256x8xf32>
    %c0_2 = arith.constant 0 : index
    %c0_3 = arith.constant 0 : index
    %3 = vector.load %arg2[%c0_2, %c0_3] : memref<1x8xf32, #tpu.memory_space<vmem>>, vector<1x8xf32>
    %4 = vector.broadcast %3 : vector<1x8xf32> to vector<256x8xf32>
    %5 = arith.mulf %2, %4 : vector<256x8xf32>
    %c0_4 = arith.constant 0 : index
    %c0_5 = arith.constant 0 : index
    %6 = vector.load %arg3[%c0_4, %c0_5] : memref<1x8xf32, #tpu.memory_space<vmem>>, vector<1x8xf32>
    %7 = vector.broadcast %6 : vector<1x8xf32> to vector<256x8xf32>
    %8 = arith.addf %5, %7 : vector<256x8xf32>
    %cst = arith.constant 0.000000e+00 : f32
    %9 = vector.broadcast %cst : f32 to vector<256x8xf32>
    %10 = arith.maximumf %8, %9 : vector<256x8xf32>
    %11 = vector.extract_strided_slice %10 {offsets = [0, 0], sizes = [64, 8], strides = [1, 1]} : vector<256x8xf32> to vector<64x8xf32>
    %12 = vector.shape_cast %11 : vector<64x8xf32> to vector<8x8x8xf32>
    %cst_6 = arith.constant 0.000000e+00 : f32
    %13 = vector.broadcast %cst_6 : f32 to vector<1x8x8xf32>
    %14 = tpu.concatenate %13, %12, %13 in 0 : vector<1x8x8xf32>, vector<8x8x8xf32>, vector<1x8x8xf32> -> vector<10x8x8xf32>
    %cst_7 = arith.constant 0.000000e+00 : f32
    %15 = vector.broadcast %cst_7 : f32 to vector<10x1x8xf32>
    %16 = tpu.concatenate %15, %14, %15 in 1 : vector<10x1x8xf32>, vector<10x8x8xf32>, vector<10x1x8xf32> -> vector<10x10x8xf32>
    %17 = vector.extract_strided_slice %10 {offsets = [64, 0], sizes = [64, 8], strides = [1, 1]} : vector<256x8xf32> to vector<64x8xf32>
    %18 = vector.shape_cast %17 : vector<64x8xf32> to vector<8x8x8xf32>
    %cst_8 = arith.constant 0.000000e+00 : f32
    %19 = vector.broadcast %cst_8 : f32 to vector<1x8x8xf32>
    %20 = tpu.concatenate %19, %18, %19 in 0 : vector<1x8x8xf32>, vector<8x8x8xf32>, vector<1x8x8xf32> -> vector<10x8x8xf32>
    %cst_9 = arith.constant 0.000000e+00 : f32
    %21 = vector.broadcast %cst_9 : f32 to vector<10x1x8xf32>
    %22 = tpu.concatenate %21, %20, %21 in 1 : vector<10x1x8xf32>, vector<10x8x8xf32>, vector<10x1x8xf32> -> vector<10x10x8xf32>
    %23 = vector.extract_strided_slice %10 {offsets = [128, 0], sizes = [64, 8], strides = [1, 1]} : vector<256x8xf32> to vector<64x8xf32>
    %24 = vector.shape_cast %23 : vector<64x8xf32> to vector<8x8x8xf32>
    %cst_10 = arith.constant 0.000000e+00 : f32
    %25 = vector.broadcast %cst_10 : f32 to vector<1x8x8xf32>
    %26 = tpu.concatenate %25, %24, %25 in 0 : vector<1x8x8xf32>, vector<8x8x8xf32>, vector<1x8x8xf32> -> vector<10x8x8xf32>
    %cst_11 = arith.constant 0.000000e+00 : f32
    %27 = vector.broadcast %cst_11 : f32 to vector<10x1x8xf32>
    %28 = tpu.concatenate %27, %26, %27 in 1 : vector<10x1x8xf32>, vector<10x8x8xf32>, vector<10x1x8xf32> -> vector<10x10x8xf32>
    %29 = vector.extract_strided_slice %10 {offsets = [192, 0], sizes = [64, 8], strides = [1, 1]} : vector<256x8xf32> to vector<64x8xf32>
    %30 = vector.shape_cast %29 : vector<64x8xf32> to vector<8x8x8xf32>
    %cst_12 = arith.constant 0.000000e+00 : f32
    %31 = vector.broadcast %cst_12 : f32 to vector<1x8x8xf32>
    %32 = tpu.concatenate %31, %30, %31 in 0 : vector<1x8x8xf32>, vector<8x8x8xf32>, vector<1x8x8xf32> -> vector<10x8x8xf32>
    %cst_13 = arith.constant 0.000000e+00 : f32
    %33 = vector.broadcast %cst_13 : f32 to vector<10x1x8xf32>
    %34 = tpu.concatenate %33, %32, %33 in 1 : vector<10x1x8xf32>, vector<10x8x8xf32>, vector<10x1x8xf32> -> vector<10x10x8xf32>
    %35 = vector.extract_strided_slice %34 {offsets = [0, 0, 0], sizes = [8, 8, 8], strides = [1, 1, 1]} : vector<10x10x8xf32> to vector<8x8x8xf32>
    %36 = vector.extract_strided_slice %28 {offsets = [0, 1, 0], sizes = [8, 8, 8], strides = [1, 1, 1]} : vector<10x10x8xf32> to vector<8x8x8xf32>
    %37 = vector.extract_strided_slice %34 {offsets = [0, 1, 0], sizes = [8, 8, 8], strides = [1, 1, 1]} : vector<10x10x8xf32> to vector<8x8x8xf32>
    %38 = tpu.concatenate %35, %36, %37 in 2 : vector<8x8x8xf32>, vector<8x8x8xf32>, vector<8x8x8xf32> -> vector<8x8x24xf32>
    %39 = vector.shape_cast %38 : vector<8x8x24xf32> to vector<64x24xf32>
    %c0_14 = arith.constant 0 : index
    %c0_15 = arith.constant 0 : index
    %c0_16 = arith.constant 0 : index
    %40 = vector.load %arg4[%c0_14, %c0_15, %c0_16] : memref<3x24x8xf32, #tpu.memory_space<vmem>>, vector<1x24x8xf32>
    %41 = vector.shape_cast %40 : vector<1x24x8xf32> to vector<24x8xf32>
    %cst_17 = arith.constant dense<0.000000e+00> : vector<64x8xf32>
    %42 = tpu.matmul %39, %41, %cst_17 {dimension_numbers = #tpu.dot_dimension_numbers<[1], [0], [0], [1], [0, 0, 1, 1], [], []>} : vector<64x24xf32>, vector<24x8xf32>, vector<64x8xf32> -> vector<64x8xf32>
    %43 = vector.extract_strided_slice %22 {offsets = [1, 0, 0], sizes = [8, 8, 8], strides = [1, 1, 1]} : vector<10x10x8xf32> to vector<8x8x8xf32>
    %44 = vector.extract_strided_slice %16 {offsets = [1, 1, 0], sizes = [8, 8, 8], strides = [1, 1, 1]} : vector<10x10x8xf32> to vector<8x8x8xf32>
    %45 = vector.extract_strided_slice %22 {offsets = [1, 1, 0], sizes = [8, 8, 8], strides = [1, 1, 1]} : vector<10x10x8xf32> to vector<8x8x8xf32>
    %46 = tpu.concatenate %43, %44, %45 in 2 : vector<8x8x8xf32>, vector<8x8x8xf32>, vector<8x8x8xf32> -> vector<8x8x24xf32>
    %47 = vector.shape_cast %46 : vector<8x8x24xf32> to vector<64x24xf32>
    %c1 = arith.constant 1 : index
    %c0_18 = arith.constant 0 : index
    %c0_19 = arith.constant 0 : index
    %48 = vector.load %arg4[%c1, %c0_18, %c0_19] : memref<3x24x8xf32, #tpu.memory_space<vmem>>, vector<1x24x8xf32>
    %49 = vector.shape_cast %48 : vector<1x24x8xf32> to vector<24x8xf32>
    %cst_20 = arith.constant dense<0.000000e+00> : vector<64x8xf32>
    %50 = tpu.matmul %47, %49, %cst_20 {dimension_numbers = #tpu.dot_dimension_numbers<[1], [0], [0], [1], [0, 0, 1, 1], [], []>} : vector<64x24xf32>, vector<24x8xf32>, vector<64x8xf32> -> vector<64x8xf32>
    %51 = arith.addf %42, %50 : vector<64x8xf32>
    %52 = vector.extract_strided_slice %34 {offsets = [1, 0, 0], sizes = [8, 8, 8], strides = [1, 1, 1]} : vector<10x10x8xf32> to vector<8x8x8xf32>
    %53 = vector.extract_strided_slice %28 {offsets = [1, 1, 0], sizes = [8, 8, 8], strides = [1, 1, 1]} : vector<10x10x8xf32> to vector<8x8x8xf32>
    %54 = vector.extract_strided_slice %34 {offsets = [1, 1, 0], sizes = [8, 8, 8], strides = [1, 1, 1]} : vector<10x10x8xf32> to vector<8x8x8xf32>
    %55 = tpu.concatenate %52, %53, %54 in 2 : vector<8x8x8xf32>, vector<8x8x8xf32>, vector<8x8x8xf32> -> vector<8x8x24xf32>
    %56 = vector.shape_cast %55 : vector<8x8x24xf32> to vector<64x24xf32>
    %c2 = arith.constant 2 : index
    %c0_21 = arith.constant 0 : index
    %c0_22 = arith.constant 0 : index
    %57 = vector.load %arg4[%c2, %c0_21, %c0_22] : memref<3x24x8xf32, #tpu.memory_space<vmem>>, vector<1x24x8xf32>
    %58 = vector.shape_cast %57 : vector<1x24x8xf32> to vector<24x8xf32>
    %cst_23 = arith.constant dense<0.000000e+00> : vector<64x8xf32>
    %59 = tpu.matmul %56, %58, %cst_23 {dimension_numbers = #tpu.dot_dimension_numbers<[1], [0], [0], [1], [0, 0, 1, 1], [], []>} : vector<64x24xf32>, vector<24x8xf32>, vector<64x8xf32> -> vector<64x8xf32>
    %60 = arith.addf %51, %59 : vector<64x8xf32>
    %61 = vector.extract_strided_slice %28 {offsets = [0, 1, 0], sizes = [8, 8, 8], strides = [1, 1, 1]} : vector<10x10x8xf32> to vector<8x8x8xf32>
    %62 = vector.extract_strided_slice %34 {offsets = [0, 1, 0], sizes = [8, 8, 8], strides = [1, 1, 1]} : vector<10x10x8xf32> to vector<8x8x8xf32>
    %63 = vector.extract_strided_slice %28 {offsets = [0, 2, 0], sizes = [8, 8, 8], strides = [1, 1, 1]} : vector<10x10x8xf32> to vector<8x8x8xf32>
    %64 = tpu.concatenate %61, %62, %63 in 2 : vector<8x8x8xf32>, vector<8x8x8xf32>, vector<8x8x8xf32> -> vector<8x8x24xf32>
    %65 = vector.shape_cast %64 : vector<8x8x24xf32> to vector<64x24xf32>
    %c0_24 = arith.constant 0 : index
    %c0_25 = arith.constant 0 : index
    %c0_26 = arith.constant 0 : index
    %66 = vector.load %arg4[%c0_24, %c0_25, %c0_26] : memref<3x24x8xf32, #tpu.memory_space<vmem>>, vector<1x24x8xf32>
    %67 = vector.shape_cast %66 : vector<1x24x8xf32> to vector<24x8xf32>
    %cst_27 = arith.constant dense<0.000000e+00> : vector<64x8xf32>
    %68 = tpu.matmul %65, %67, %cst_27 {dimension_numbers = #tpu.dot_dimension_numbers<[1], [0], [0], [1], [0, 0, 1, 1], [], []>} : vector<64x24xf32>, vector<24x8xf32>, vector<64x8xf32> -> vector<64x8xf32>
    %69 = vector.extract_strided_slice %16 {offsets = [1, 1, 0], sizes = [8, 8, 8], strides = [1, 1, 1]} : vector<10x10x8xf32> to vector<8x8x8xf32>
    %70 = vector.extract_strided_slice %22 {offsets = [1, 1, 0], sizes = [8, 8, 8], strides = [1, 1, 1]} : vector<10x10x8xf32> to vector<8x8x8xf32>
    %71 = vector.extract_strided_slice %16 {offsets = [1, 2, 0], sizes = [8, 8, 8], strides = [1, 1, 1]} : vector<10x10x8xf32> to vector<8x8x8xf32>
    %72 = tpu.concatenate %69, %70, %71 in 2 : vector<8x8x8xf32>, vector<8x8x8xf32>, vector<8x8x8xf32> -> vector<8x8x24xf32>
    %73 = vector.shape_cast %72 : vector<8x8x24xf32> to vector<64x24xf32>
    %c1_28 = arith.constant 1 : index
    %c0_29 = arith.constant 0 : index
    %c0_30 = arith.constant 0 : index
    %74 = vector.load %arg4[%c1_28, %c0_29, %c0_30] : memref<3x24x8xf32, #tpu.memory_space<vmem>>, vector<1x24x8xf32>
    %75 = vector.shape_cast %74 : vector<1x24x8xf32> to vector<24x8xf32>
    %cst_31 = arith.constant dense<0.000000e+00> : vector<64x8xf32>
    %76 = tpu.matmul %73, %75, %cst_31 {dimension_numbers = #tpu.dot_dimension_numbers<[1], [0], [0], [1], [0, 0, 1, 1], [], []>} : vector<64x24xf32>, vector<24x8xf32>, vector<64x8xf32> -> vector<64x8xf32>
    %77 = arith.addf %68, %76 : vector<64x8xf32>
    %78 = vector.extract_strided_slice %28 {offsets = [1, 1, 0], sizes = [8, 8, 8], strides = [1, 1, 1]} : vector<10x10x8xf32> to vector<8x8x8xf32>
    %79 = vector.extract_strided_slice %34 {offsets = [1, 1, 0], sizes = [8, 8, 8], strides = [1, 1, 1]} : vector<10x10x8xf32> to vector<8x8x8xf32>
    %80 = vector.extract_strided_slice %28 {offsets = [1, 2, 0], sizes = [8, 8, 8], strides = [1, 1, 1]} : vector<10x10x8xf32> to vector<8x8x8xf32>
    %81 = tpu.concatenate %78, %79, %80 in 2 : vector<8x8x8xf32>, vector<8x8x8xf32>, vector<8x8x8xf32> -> vector<8x8x24xf32>
    %82 = vector.shape_cast %81 : vector<8x8x24xf32> to vector<64x24xf32>
    %c2_32 = arith.constant 2 : index
    %c0_33 = arith.constant 0 : index
    %c0_34 = arith.constant 0 : index
    %83 = vector.load %arg4[%c2_32, %c0_33, %c0_34] : memref<3x24x8xf32, #tpu.memory_space<vmem>>, vector<1x24x8xf32>
    %84 = vector.shape_cast %83 : vector<1x24x8xf32> to vector<24x8xf32>
    %cst_35 = arith.constant dense<0.000000e+00> : vector<64x8xf32>
    %85 = tpu.matmul %82, %84, %cst_35 {dimension_numbers = #tpu.dot_dimension_numbers<[1], [0], [0], [1], [0, 0, 1, 1], [], []>} : vector<64x24xf32>, vector<24x8xf32>, vector<64x8xf32> -> vector<64x8xf32>
    %86 = arith.addf %77, %85 : vector<64x8xf32>
    %87 = vector.extract_strided_slice %22 {offsets = [1, 0, 0], sizes = [8, 8, 8], strides = [1, 1, 1]} : vector<10x10x8xf32> to vector<8x8x8xf32>
    %88 = vector.extract_strided_slice %16 {offsets = [1, 1, 0], sizes = [8, 8, 8], strides = [1, 1, 1]} : vector<10x10x8xf32> to vector<8x8x8xf32>
    %89 = vector.extract_strided_slice %22 {offsets = [1, 1, 0], sizes = [8, 8, 8], strides = [1, 1, 1]} : vector<10x10x8xf32> to vector<8x8x8xf32>
    %90 = tpu.concatenate %87, %88, %89 in 2 : vector<8x8x8xf32>, vector<8x8x8xf32>, vector<8x8x8xf32> -> vector<8x8x24xf32>
    %91 = vector.shape_cast %90 : vector<8x8x24xf32> to vector<64x24xf32>
    %c0_36 = arith.constant 0 : index
    %c0_37 = arith.constant 0 : index
    %c0_38 = arith.constant 0 : index
    %92 = vector.load %arg4[%c0_36, %c0_37, %c0_38] : memref<3x24x8xf32, #tpu.memory_space<vmem>>, vector<1x24x8xf32>
    %93 = vector.shape_cast %92 : vector<1x24x8xf32> to vector<24x8xf32>
    %cst_39 = arith.constant dense<0.000000e+00> : vector<64x8xf32>
    %94 = tpu.matmul %91, %93, %cst_39 {dimension_numbers = #tpu.dot_dimension_numbers<[1], [0], [0], [1], [0, 0, 1, 1], [], []>} : vector<64x24xf32>, vector<24x8xf32>, vector<64x8xf32> -> vector<64x8xf32>
    %95 = vector.extract_strided_slice %34 {offsets = [1, 0, 0], sizes = [8, 8, 8], strides = [1, 1, 1]} : vector<10x10x8xf32> to vector<8x8x8xf32>
    %96 = vector.extract_strided_slice %28 {offsets = [1, 1, 0], sizes = [8, 8, 8], strides = [1, 1, 1]} : vector<10x10x8xf32> to vector<8x8x8xf32>
    %97 = vector.extract_strided_slice %34 {offsets = [1, 1, 0], sizes = [8, 8, 8], strides = [1, 1, 1]} : vector<10x10x8xf32> to vector<8x8x8xf32>
    %98 = tpu.concatenate %95, %96, %97 in 2 : vector<8x8x8xf32>, vector<8x8x8xf32>, vector<8x8x8xf32> -> vector<8x8x24xf32>
    %99 = vector.shape_cast %98 : vector<8x8x24xf32> to vector<64x24xf32>
    %c1_40 = arith.constant 1 : index
    %c0_41 = arith.constant 0 : index
    %c0_42 = arith.constant 0 : index
    %100 = vector.load %arg4[%c1_40, %c0_41, %c0_42] : memref<3x24x8xf32, #tpu.memory_space<vmem>>, vector<1x24x8xf32>
    %101 = vector.shape_cast %100 : vector<1x24x8xf32> to vector<24x8xf32>
    %cst_43 = arith.constant dense<0.000000e+00> : vector<64x8xf32>
    %102 = tpu.matmul %99, %101, %cst_43 {dimension_numbers = #tpu.dot_dimension_numbers<[1], [0], [0], [1], [0, 0, 1, 1], [], []>} : vector<64x24xf32>, vector<24x8xf32>, vector<64x8xf32> -> vector<64x8xf32>
    %103 = arith.addf %94, %102 : vector<64x8xf32>
    %104 = vector.extract_strided_slice %22 {offsets = [2, 0, 0], sizes = [8, 8, 8], strides = [1, 1, 1]} : vector<10x10x8xf32> to vector<8x8x8xf32>
    %105 = vector.extract_strided_slice %16 {offsets = [2, 1, 0], sizes = [8, 8, 8], strides = [1, 1, 1]} : vector<10x10x8xf32> to vector<8x8x8xf32>
    %106 = vector.extract_strided_slice %22 {offsets = [2, 1, 0], sizes = [8, 8, 8], strides = [1, 1, 1]} : vector<10x10x8xf32> to vector<8x8x8xf32>
    %107 = tpu.concatenate %104, %105, %106 in 2 : vector<8x8x8xf32>, vector<8x8x8xf32>, vector<8x8x8xf32> -> vector<8x8x24xf32>
    %108 = vector.shape_cast %107 : vector<8x8x24xf32> to vector<64x24xf32>
    %c2_44 = arith.constant 2 : index
    %c0_45 = arith.constant 0 : index
    %c0_46 = arith.constant 0 : index
    %109 = vector.load %arg4[%c2_44, %c0_45, %c0_46] : memref<3x24x8xf32, #tpu.memory_space<vmem>>, vector<1x24x8xf32>
    %110 = vector.shape_cast %109 : vector<1x24x8xf32> to vector<24x8xf32>
    %cst_47 = arith.constant dense<0.000000e+00> : vector<64x8xf32>
    %111 = tpu.matmul %108, %110, %cst_47 {dimension_numbers = #tpu.dot_dimension_numbers<[1], [0], [0], [1], [0, 0, 1, 1], [], []>} : vector<64x24xf32>, vector<24x8xf32>, vector<64x8xf32> -> vector<64x8xf32>
    %112 = arith.addf %103, %111 : vector<64x8xf32>
    %113 = vector.extract_strided_slice %16 {offsets = [1, 1, 0], sizes = [8, 8, 8], strides = [1, 1, 1]} : vector<10x10x8xf32> to vector<8x8x8xf32>
    %114 = vector.extract_strided_slice %22 {offsets = [1, 1, 0], sizes = [8, 8, 8], strides = [1, 1, 1]} : vector<10x10x8xf32> to vector<8x8x8xf32>
    %115 = vector.extract_strided_slice %16 {offsets = [1, 2, 0], sizes = [8, 8, 8], strides = [1, 1, 1]} : vector<10x10x8xf32> to vector<8x8x8xf32>
    %116 = tpu.concatenate %113, %114, %115 in 2 : vector<8x8x8xf32>, vector<8x8x8xf32>, vector<8x8x8xf32> -> vector<8x8x24xf32>
    %117 = vector.shape_cast %116 : vector<8x8x24xf32> to vector<64x24xf32>
    %c0_48 = arith.constant 0 : index
    %c0_49 = arith.constant 0 : index
    %c0_50 = arith.constant 0 : index
    %118 = vector.load %arg4[%c0_48, %c0_49, %c0_50] : memref<3x24x8xf32, #tpu.memory_space<vmem>>, vector<1x24x8xf32>
    %119 = vector.shape_cast %118 : vector<1x24x8xf32> to vector<24x8xf32>
    %cst_51 = arith.constant dense<0.000000e+00> : vector<64x8xf32>
    %120 = tpu.matmul %117, %119, %cst_51 {dimension_numbers = #tpu.dot_dimension_numbers<[1], [0], [0], [1], [0, 0, 1, 1], [], []>} : vector<64x24xf32>, vector<24x8xf32>, vector<64x8xf32> -> vector<64x8xf32>
    %121 = vector.extract_strided_slice %28 {offsets = [1, 1, 0], sizes = [8, 8, 8], strides = [1, 1, 1]} : vector<10x10x8xf32> to vector<8x8x8xf32>
    %122 = vector.extract_strided_slice %34 {offsets = [1, 1, 0], sizes = [8, 8, 8], strides = [1, 1, 1]} : vector<10x10x8xf32> to vector<8x8x8xf32>
    %123 = vector.extract_strided_slice %28 {offsets = [1, 2, 0], sizes = [8, 8, 8], strides = [1, 1, 1]} : vector<10x10x8xf32> to vector<8x8x8xf32>
    %124 = tpu.concatenate %121, %122, %123 in 2 : vector<8x8x8xf32>, vector<8x8x8xf32>, vector<8x8x8xf32> -> vector<8x8x24xf32>
    %125 = vector.shape_cast %124 : vector<8x8x24xf32> to vector<64x24xf32>
    %c1_52 = arith.constant 1 : index
    %c0_53 = arith.constant 0 : index
    %c0_54 = arith.constant 0 : index
    %126 = vector.load %arg4[%c1_52, %c0_53, %c0_54] : memref<3x24x8xf32, #tpu.memory_space<vmem>>, vector<1x24x8xf32>
    %127 = vector.shape_cast %126 : vector<1x24x8xf32> to vector<24x8xf32>
    %cst_55 = arith.constant dense<0.000000e+00> : vector<64x8xf32>
    %128 = tpu.matmul %125, %127, %cst_55 {dimension_numbers = #tpu.dot_dimension_numbers<[1], [0], [0], [1], [0, 0, 1, 1], [], []>} : vector<64x24xf32>, vector<24x8xf32>, vector<64x8xf32> -> vector<64x8xf32>
    %129 = arith.addf %120, %128 : vector<64x8xf32>
    %130 = vector.extract_strided_slice %16 {offsets = [2, 1, 0], sizes = [8, 8, 8], strides = [1, 1, 1]} : vector<10x10x8xf32> to vector<8x8x8xf32>
    %131 = vector.extract_strided_slice %22 {offsets = [2, 1, 0], sizes = [8, 8, 8], strides = [1, 1, 1]} : vector<10x10x8xf32> to vector<8x8x8xf32>
    %132 = vector.extract_strided_slice %16 {offsets = [2, 2, 0], sizes = [8, 8, 8], strides = [1, 1, 1]} : vector<10x10x8xf32> to vector<8x8x8xf32>
    %133 = tpu.concatenate %130, %131, %132 in 2 : vector<8x8x8xf32>, vector<8x8x8xf32>, vector<8x8x8xf32> -> vector<8x8x24xf32>
    %134 = vector.shape_cast %133 : vector<8x8x24xf32> to vector<64x24xf32>
    %c2_56 = arith.constant 2 : index
    %c0_57 = arith.constant 0 : index
    %c0_58 = arith.constant 0 : index
    %135 = vector.load %arg4[%c2_56, %c0_57, %c0_58] : memref<3x24x8xf32, #tpu.memory_space<vmem>>, vector<1x24x8xf32>
    %136 = vector.shape_cast %135 : vector<1x24x8xf32> to vector<24x8xf32>
    %cst_59 = arith.constant dense<0.000000e+00> : vector<64x8xf32>
    %137 = tpu.matmul %134, %136, %cst_59 {dimension_numbers = #tpu.dot_dimension_numbers<[1], [0], [0], [1], [0, 0, 1, 1], [], []>} : vector<64x24xf32>, vector<24x8xf32>, vector<64x8xf32> -> vector<64x8xf32>
    %138 = arith.addf %129, %137 : vector<64x8xf32>
    %139 = tpu.concatenate %60, %86, %112, %138 in 0 : vector<64x8xf32>, vector<64x8xf32>, vector<64x8xf32>, vector<64x8xf32> -> vector<256x8xf32>
    %cst_60 = arith.constant dense<0.000000e+00> : vector<8xf32>
    %140 = vector.multi_reduction <add>, %139, %cst_60 [0] : vector<256x8xf32> to vector<8xf32>
    %141 = vector.shape_cast %140 : vector<8xf32> to vector<1x8xf32>
    %cst_61 = arith.constant 2.560000e+02 : f32
    %142 = vector.broadcast %cst_61 : f32 to vector<1x8xf32>
    %143 = arith.divf %141, %142 : vector<1x8xf32>
    %144 = vector.broadcast %143 : vector<1x8xf32> to vector<256x8xf32>
    %145 = arith.subf %139, %144 : vector<256x8xf32>
    %146 = arith.mulf %145, %145 : vector<256x8xf32>
    %cst_62 = arith.constant dense<0.000000e+00> : vector<8xf32>
    %147 = vector.multi_reduction <add>, %146, %cst_62 [0] : vector<256x8xf32> to vector<8xf32>
    %148 = vector.shape_cast %147 : vector<8xf32> to vector<1x8xf32>
    %149 = tpu.concatenate %143, %148 in 0 : vector<1x8xf32>, vector<1x8xf32> -> vector<2x8xf32>
    %c0_63 = arith.constant 0 : index
    %c0_64 = arith.constant 0 : index
    %c0_65 = arith.constant 0 : index
    %150 = vector.load %arg6[%c0_63, %c0_64, %c0_65] : memref<1x2x8xf32, #tpu.memory_space<vmem>>, vector<1x2x8xf32>
    %151 = vector.shape_cast %150 : vector<1x2x8xf32> to vector<2x8xf32>
    %152 = vector.shape_cast %149 : vector<2x8xf32> to vector<1x2x8xf32>
    tpu.vector_store %arg6[%c0_63, %c0_64, %c0_65], %152 {strides = array<i32>} : memref<1x2x8xf32, #tpu.memory_space<vmem>>, vector<1x2x8xf32>,
    %153 = tpu.transpose %139, [1, 0] : vector<256x8xf32> -> vector<8x256xf32>
    %154 = arith.truncf %153 : vector<8x256xf32> to vector<8x256xbf16>
    %c0_66 = arith.constant 0 : index
    %c0_67 = arith.constant 0 : index
    %c0_68 = arith.constant 0 : index
    %155 = vector.load %arg5[%c0_66, %c0_67, %c0_68] : memref<1x8x256xbf16, #tpu.memory_space<vmem>>, vector<1x8x256xbf16>
    %156 = vector.shape_cast %155 : vector<1x8x256xbf16> to vector<8x256xbf16>
    %157 = vector.shape_cast %154 : vector<8x256xbf16> to vector<1x8x256xbf16>
    tpu.vector_store %arg5[%c0_66, %c0_67, %c0_68], %157 {strides = array<i32>} : memref<1x8x256xbf16, #tpu.memory_space<vmem>>, vector<1x8x256xbf16>,
    return
  }
  func.func @transform_0(%arg0: i32) -> (i32, i32, i32) {
    %c0_i32 = arith.constant 0 : i32
    %c0_i32_0 = arith.constant 0 : i32
    %c0_i32_1 = arith.constant 0 : i32
    return %arg0, %c0_i32, %c0_i32_0 : i32, i32, i32
  }
  func.func @transform_1(%arg0: i32) -> (i32, i32) {
    %c0_i32 = arith.constant 0 : i32
    %c0_i32_0 = arith.constant 0 : i32
    %c0_i32_1 = arith.constant 0 : i32
    return %c0_i32, %c0_i32_0 : i32, i32
  }
  func.func @transform_2(%arg0: i32) -> (i32, i32) {
    %c0_i32 = arith.constant 0 : i32
    %c0_i32_0 = arith.constant 0 : i32
    %c0_i32_1 = arith.constant 0 : i32
    return %c0_i32, %c0_i32_0 : i32, i32
  }
  func.func @transform_3(%arg0: i32) -> (i32, i32, i32) {
    %c0_i32 = arith.constant 0 : i32
    %c0_i32_0 = arith.constant 0 : i32
    %c0_i32_1 = arith.constant 0 : i32
    %c0_i32_2 = arith.constant 0 : i32
    return %c0_i32, %c0_i32_0, %c0_i32_1 : i32, i32, i32
  }
  func.func @transform_4(%arg0: i32) -> (i32, i32, i32) {
    %c0_i32 = arith.constant 0 : i32
    %c0_i32_0 = arith.constant 0 : i32
    %c0_i32_1 = arith.constant 0 : i32
    return %arg0, %c0_i32, %c0_i32_0 : i32, i32, i32
  }
  func.func @transform_5(%arg0: i32) -> (i32, i32, i32) {
    %c0_i32 = arith.constant 0 : i32
    %c0_i32_0 = arith.constant 0 : i32
    %c0_i32_1 = arith.constant 0 : i32
    return %arg0, %c0_i32, %c0_i32_0 : i32, i32, i32
  }
}

module attributes {stable_mosaic.version = 11 : i64} {
  func.func @_stage3_elem_kernel(%arg0: i32, %arg1: i32, %arg2: memref<1x8x256xbf16, #tpu.memory_space<vmem>>, %arg3: memref<1x8x256xbf16, #tpu.memory_space<vmem>>, %arg4: memref<8x1xf32, #tpu.memory_space<vmem>>, %arg5: memref<8x1xf32, #tpu.memory_space<vmem>>, %arg6: memref<8x1xf32, #tpu.memory_space<vmem>>, %arg7: memref<8x1xf32, #tpu.memory_space<vmem>>, %arg8: memref<1x8x256xf32, #tpu.memory_space<vmem>>) attributes {dimension_semantics = [#tpu.dimension_semantics<parallel>, #tpu.dimension_semantics<parallel>], iteration_bounds = array<i64: 2, 1>, scalar_prefetch = 0 : i64, scratch_operands = 0 : i64, tpu.core_type = #tpu.core_type<tc>, window_params = [{transform_indices = @transform_0, window_bounds = array<i64: 1, 8, 256>}, {transform_indices = @transform_1, window_bounds = array<i64: 1, 8, 256>}, {pipeline_mode = #tpu.pipeline_mode<synchronous>, transform_indices = @transform_2, window_bounds = array<i64: 8, 1>}, {pipeline_mode = #tpu.pipeline_mode<synchronous>, transform_indices = @transform_3, window_bounds = array<i64: 8, 1>}, {pipeline_mode = #tpu.pipeline_mode<synchronous>, transform_indices = @transform_4, window_bounds = array<i64: 8, 1>}, {pipeline_mode = #tpu.pipeline_mode<synchronous>, transform_indices = @transform_5, window_bounds = array<i64: 8, 1>}, {transform_indices = @transform_6, window_bounds = array<i64: 1, 8, 256>}]} {
    %c0 = arith.constant 0 : index
    %c0_0 = arith.constant 0 : index
    %c0_1 = arith.constant 0 : index
    %0 = vector.load %arg2[%c0, %c0_0, %c0_1] : memref<1x8x256xbf16, #tpu.memory_space<vmem>>, vector<1x8x256xbf16>
    %1 = vector.shape_cast %0 : vector<1x8x256xbf16> to vector<8x256xbf16>
    %2 = arith.extf %1 : vector<8x256xbf16> to vector<8x256xf32>
    %c0_2 = arith.constant 0 : index
    %c0_3 = arith.constant 0 : index
    %3 = vector.load %arg4[%c0_2, %c0_3] : memref<8x1xf32, #tpu.memory_space<vmem>>, vector<8x1xf32>
    %4 = vector.broadcast %3 : vector<8x1xf32> to vector<8x256xf32>
    %5 = arith.mulf %2, %4 : vector<8x256xf32>
    %c0_4 = arith.constant 0 : index
    %c0_5 = arith.constant 0 : index
    %6 = vector.load %arg5[%c0_4, %c0_5] : memref<8x1xf32, #tpu.memory_space<vmem>>, vector<8x1xf32>
    %7 = vector.broadcast %6 : vector<8x1xf32> to vector<8x256xf32>
    %8 = arith.addf %5, %7 : vector<8x256xf32>
    %cst = arith.constant 0.000000e+00 : f32
    %9 = vector.broadcast %cst : f32 to vector<8x256xf32>
    %10 = arith.maximumf %8, %9 : vector<8x256xf32>
    %c0_6 = arith.constant 0 : index
    %c0_7 = arith.constant 0 : index
    %c0_8 = arith.constant 0 : index
    %11 = vector.load %arg3[%c0_6, %c0_7, %c0_8] : memref<1x8x256xbf16, #tpu.memory_space<vmem>>, vector<1x8x256xbf16>
    %12 = vector.shape_cast %11 : vector<1x8x256xbf16> to vector<8x256xbf16>
    %13 = arith.extf %12 : vector<8x256xbf16> to vector<8x256xf32>
    %c0_9 = arith.constant 0 : index
    %c0_10 = arith.constant 0 : index
    %14 = vector.load %arg6[%c0_9, %c0_10] : memref<8x1xf32, #tpu.memory_space<vmem>>, vector<8x1xf32>
    %15 = vector.broadcast %14 : vector<8x1xf32> to vector<8x256xf32>
    %16 = arith.mulf %13, %15 : vector<8x256xf32>
    %c0_11 = arith.constant 0 : index
    %c0_12 = arith.constant 0 : index
    %17 = vector.load %arg7[%c0_11, %c0_12] : memref<8x1xf32, #tpu.memory_space<vmem>>, vector<8x1xf32>
    %18 = vector.broadcast %17 : vector<8x1xf32> to vector<8x256xf32>
    %19 = arith.addf %16, %18 : vector<8x256xf32>
    %20 = arith.addf %10, %19 : vector<8x256xf32>
    %c0_13 = arith.constant 0 : index
    %c0_14 = arith.constant 0 : index
    %c0_15 = arith.constant 0 : index
    %21 = vector.load %arg8[%c0_13, %c0_14, %c0_15] : memref<1x8x256xf32, #tpu.memory_space<vmem>>, vector<1x8x256xf32>
    %22 = vector.shape_cast %21 : vector<1x8x256xf32> to vector<8x256xf32>
    %23 = vector.shape_cast %20 : vector<8x256xf32> to vector<1x8x256xf32>
    tpu.vector_store %arg8[%c0_13, %c0_14, %c0_15], %23 {strides = array<i32>} : memref<1x8x256xf32, #tpu.memory_space<vmem>>, vector<1x8x256xf32>,
    return
  }
  func.func @transform_0(%arg0: i32, %arg1: i32) -> (i32, i32, i32) {
    %c0_i32 = arith.constant 0 : i32
    %c0_i32_0 = arith.constant 0 : i32
    return %arg0, %c0_i32, %arg1 : i32, i32, i32
  }
  func.func @transform_1(%arg0: i32, %arg1: i32) -> (i32, i32, i32) {
    %c0_i32 = arith.constant 0 : i32
    %c0_i32_0 = arith.constant 0 : i32
    return %arg0, %c0_i32, %arg1 : i32, i32, i32
  }
  func.func @transform_2(%arg0: i32, %arg1: i32) -> (i32, i32) {
    %c0_i32 = arith.constant 0 : i32
    %c0_i32_0 = arith.constant 0 : i32
    %c0_i32_1 = arith.constant 0 : i32
    return %c0_i32, %c0_i32_0 : i32, i32
  }
  func.func @transform_3(%arg0: i32, %arg1: i32) -> (i32, i32) {
    %c0_i32 = arith.constant 0 : i32
    %c0_i32_0 = arith.constant 0 : i32
    %c0_i32_1 = arith.constant 0 : i32
    return %c0_i32, %c0_i32_0 : i32, i32
  }
  func.func @transform_4(%arg0: i32, %arg1: i32) -> (i32, i32) {
    %c0_i32 = arith.constant 0 : i32
    %c0_i32_0 = arith.constant 0 : i32
    %c0_i32_1 = arith.constant 0 : i32
    return %c0_i32, %c0_i32_0 : i32, i32
  }
  func.func @transform_5(%arg0: i32, %arg1: i32) -> (i32, i32) {
    %c0_i32 = arith.constant 0 : i32
    %c0_i32_0 = arith.constant 0 : i32
    %c0_i32_1 = arith.constant 0 : i32
    return %c0_i32, %c0_i32_0 : i32, i32
  }
  func.func @transform_6(%arg0: i32, %arg1: i32) -> (i32, i32, i32) {
    %c0_i32 = arith.constant 0 : i32
    %c0_i32_0 = arith.constant 0 : i32
    return %arg0, %c0_i32, %arg1 : i32, i32, i32
  }
}

</mosaic_0001>

<bundles_post_ra>
// kernel: stack_decoder_skip_forward.5
= control target key start
LH: loop header
LB: loop body
LE: loop exit
PB: predicated region body
PF: predicated region fallthrough
CT: control target
= control target key end

     0   :  { %s579_s21 = smov 0   ;;  %s581_s22 = smov 0   ;;  %s627_s0 = inlined_call_operand.vmem [shape: bf16[2,8,256], index: 0, kind: input, shape index: {}]   ;;  %s628_s1 = inlined_call_operand.vmem [shape: bf16[2,8,256], index: 1, kind: input, shape index: {}]   ;;  %s629_s2 = inlined_call_operand.vmem [shape: f32[8,1], index: 2, kind: input, shape index: {}]   ;;  %s630_s3 = inlined_call_operand.vmem [shape: f32[8,1], index: 3, kind: input, shape index: {}]   ;;  %s631_s4 = inlined_call_operand.vmem [shape: f32[8,1], index: 4, kind: input, shape index: {}]   ;;  %s632_s5 = inlined_call_operand.vmem [shape: f32[8,1], index: 5, kind: input, shape index: {}]   ;;  %s633_s6 = inlined_call_operand.vmem [shape: f32[2,8,256], index: 6, kind: output, shape index: {}]  }
   0x1   :  { %s583_s23 = smov 0  }
   0x2 LB: > { %s28_s24 = sadd.s32 1, %s537_s22  ;;  %p480_p0 = scmp.ge.s32.totalorder %s541_s23, 1  ;;  %s541_s23 = sphi %s583_s23, %s16_s23   ;;  %s537_s22 = sphi %s581_s22, %s635_s22   ;;  %s533_s21 = sphi %s579_s21, %s634_s21  }
   0x3   : > { %p30_p1 = scmp.ge.s32.totalorder %s28_s24, 2  ;;  %p250_p2 = scmp.lt.s32.totalorder %s541_s23, 3 }
   0x5   : > { %s637_s24 = smov (%p30_p1, %s28_s24), 0  ;;  %p251_p3 = pnand %p480_p0, %p250_p2 }
   0x6   : > { %v351_v0 = vld [vmem:[%s631_s4] sm:$0xff] (!%p251_p3)  ;;  %v543_v2 = vmov (!%p251_p3), 0   ;;  %p298_p4 = scmp.lt.s32.totalorder (!%p251_p3), %s533_s21, 1 }
   0x7   : > { %254 = sbr.rel (%p251_p3) target bundleno = 147 (0x93), region = 44  ;;  %v330_v1 = vld [vmem:[%s629_s2] sm:$0xff] (!%p251_p3)  ;;  %518 = vset.pattern.permute.xlu1 (!%p251_p3), %v543_v2  ;;  %517 = vset.pattern.permute.xlu0 (!%p251_p3), %v543_v2 }
   0x8   : > { %354 = vperm.xlu1 (!%p251_p3), %518, %v351_v0   ;;  %333 = vperm.xlu0 (!%p251_p3), %517, %v330_v1   ;;  %v359_v3 = vld [vmem:[%s632_s5] sm:$0xff] (!%p251_p3) }
   0x9   : > { %v338_v4 = vld [vmem:[%s630_s3] sm:$0xff] (!%p251_p3) }
   0xc   : > { %362 = vperm.xlu1 (!%p251_p3), %518, %v359_v3   ;;  %341 = vperm.xlu0 (!%p251_p3), %517, %v338_v4  }
   0xe   : > { %s639_s21 = smov (!%p298_p4, %s533_s21), 1 }
   0xf   : > { %s489_s9 = sshll.u32 %s639_s21, 3  ;;  %s491_s16 = sshll.u32 %s639_s21, 4 }
  0x10   : > { %s315_s12 = scalar_lea.vmem %s628_s1, %s489_s9  ;;  %s305_s15 = scalar_lea.vmem %s627_s0, %s489_s9 }
  0x11   : > { %v348_v5 = vld [vmem:[%s315_s12] sm:$0xff]  ;;  %s325_s19 = scalar_lea.vmem %s633_s6, %s491_s16 }
  0x12   : > { %v327_v6 = vld [vmem:[%s305_s15] sm:$0xff]  ;;  %v349_v7 = vunpack.c.l.bf16 %v348_v5  ;;  %v350_v8 = vunpack.c.h.bf16 %v348_v5 }
  0x13   : > { %v328_v9 = vunpack.c.l.bf16 %v327_v6  ;;  %v329_v10 = vunpack.c.h.bf16 %v327_v6 }
  0x87   : > { %v355_v11 = vpop.permute.xlu1 %354  ;;  %v334_v12 = vpop.permute.xlu0 %333 }
  0x88   : > { %v357_v13 = vmul.f32 %v355_v11, %v349_v7  ;;  %v358_v14 = vmul.f32 %v355_v11, %v350_v8  ;;  %v336_v15 = vmul.f32 %v334_v12, %v328_v9  ;;  %v337_v16 = vmul.f32 %v334_v12, %v329_v10 }
  0x8b   : > { %v363_v17 = vpop.permute.xlu1 %362  ;;  %v342_v18 = vpop.permute.xlu0 %341 }
  0x8c   : > { %v344_v19 = vadd.f32 %v342_v18, %v336_v15  ;;  %v345_v20 = vadd.f32 %v342_v18, %v337_v16  ;;  %v365_v21 = vadd.f32 %v363_v17, %v357_v13  ;;  %v366_v22 = vadd.f32 %v363_v17, %v358_v14 }
  0x8e   : > { %v346_v23 = vmax.f32 %v344_v19, 0.0  ;;  %v347_v24 = vmax.f32 %v345_v20, 0.0 }
  0x90   : > { %v367_v25 = vadd.f32 %v365_v21, %v346_v23  ;;  %v368_v26 = vadd.f32 %v366_v22, %v347_v24 }
  0x92   : > { %369 = vst [vmem:[%s325_s19] sm:$0xff] %v367_v25  ;;  %370 = vst [vmem:[%s325_s19 + $0x8] sm:$0xff] %v368_v26 }
  0x93 PF: > { %s16_s23 = sadd.s32 1, %s541_s23   ;;  %s634_s21 = smov %s537_s22 }
  0x94   : > { %p13_p5 = scmp.ge.s32.totalorder %s16_s23, 4   ;;  %s635_s22 = smov %s637_s24 }
  0x96   :  { %15 = sbr.rel (!%p13_p5) target bundleno = 2 (0x2), region = 77 }

// kernel: stack_decoder_skip_forward.4
= control target key start
LH: loop header
LB: loop body
LE: loop exit
PB: predicated region body
PF: predicated region fallthrough
CT: control target
= control target key end

     0   :  { %s3748_s18 = smov 0   ;;  %s5215_s0 = inlined_call_operand.vmem [shape: bf16[2,256,8], index: 0, kind: input, shape index: {}]   ;;  %s5216_s1 = inlined_call_operand.vmem [shape: f32[1,8], index: 1, kind: input, shape index: {}]   ;;  %s5217_s2 = inlined_call_operand.vmem [shape: f32[1,8], index: 2, kind: input, shape index: {}]   ;;  %s5218_s3 = inlined_call_operand.vmem [shape: f32[3,24,8], index: 3, kind: input, shape index: {}]   ;;  %s5219_s4 = inlined_call_operand.vmem [shape: bf16[2,8,256], index: 4, kind: output, shape index: {0}]   ;;  %s5220_s5 = inlined_call_operand.vmem [shape: f32[2,2,8], index: 5, kind: output, shape index: {1}]  }
   0x1 LB: > { %s2989_s19 = sadd.s32 4294967295, %s3713_s18   ;;  %p2993_p0 = scmp.ge.s32.totalorder %s3713_s18, 1  ;;  %s3713_s18 = sphi %s3748_s18, %s16_s18  }
   0x2   : > { %p190_p1 = scmp.lt.s32.totalorder %s3713_s18, 3 }
   0x4   : > { %p191_p2 = pnand %p2993_p0, %p190_p1 }
   0x6   : > { %194 = sbr.rel (%p191_p2) target bundleno = 725 (0x2d5), region = 36 }
   0xd   : > { %p222_p3 = scmp.lt.s32.totalorder %s2989_s19, 1  ;;  %v3767_v0 = vld [vmem:[%s5216_s1] ss:$0 sm:$0xff]  ;;  %vm437_vm0 = vcmask 1040384   ;;  %vm592_vm1 = vcmask 1046528   ;;  %s3715_s28 = smov 16  }
   0xe   : > { %v3776_v9 = vld [vmem:[%s5217_s2] ss:$0 sm:$0xff]  ;;  %s3716_s29 = smov 8   ;;  %vm700_vm2 = vcmask 64512   ;;  %vm709_vm3 = vcmask 130048   ;;  %vm869_vm4 = vcmask 195584  }
   0xf   : > { %s5307_s19 = smov (!%p222_p3, %s2989_s19), 1  ;;  %vm2828_vm5 = vcmask 58368  }
  0x10   : > { %s3106_s20 = sshll.u32 %s5307_s19, 7  ;;  %s3107_s27 = sshll.u32 %s5307_s19, 3 }
  0x11   : > { %s3762_s23 = scalar_lea.vmem %s5215_s0, %s3106_s20  ;;  %s231_s30 = scalar_lea.vmem %s5219_s4, %s3107_s27 }
  0x12   : > { %v3176_v1 = vld [vmem:[%s3762_s23 + $0x20] sm:$0xff]   ;;  %v3173_v3 = vld [vmem:[%s3762_s23 + $0x8] sm:$0xff]   ;;  %s2998_s6 = sshll.u32 %s5307_s19, 1 }
  0x13   : > { %v3110_v2 = vld [vmem:[%s3762_s23] sm:$0xff]   ;;  %v3127_v4 = vunpack.c.l.bf16 %v3176_v1  ;;  %v3128_v6 = vunpack.c.h.bf16 %v3176_v1  ;;  %v3177_v8 = vld [vmem:[%s3762_s23 + $0x28] sm:$0xff]   ;;  %v3116_v10 = vunpack.c.h.bf16 %v3173_v3  ;;  %v3115_v11 = vunpack.c.l.bf16 %v3173_v3  ;;  %s235_s9 = scalar_lea.vmem %s5220_s5, %s2998_s6 }
  0x14   : > { %v3111_v5 = vunpack.c.l.bf16 %v3110_v2  ;;  %v3112_v7 = vunpack.c.h.bf16 %v3110_v2  ;;  %v3132_v12 = vunpack.c.h.bf16 %v3177_v8  ;;  %v3131_v13 = vunpack.c.l.bf16 %v3177_v8 }
  0x15   : > { %v315_v14 = vmul.f32 %v3127_v4, %v3767_v0  ;;  %v316_v16 = vmul.f32 %v3128_v6, %v3767_v0  ;;  %v310_v18 = vmul.f32 %v3116_v10, %v3767_v0  ;;  %v309_v19 = vmul.f32 %v3115_v11, %v3767_v0 }
  0x16   : > { %v307_v15 = vmul.f32 %v3111_v5, %v3767_v0  ;;  %v308_v17 = vmul.f32 %v3112_v7, %v3767_v0  ;;  %v318_v20 = vmul.f32 %v3132_v12, %v3767_v0  ;;  %v317_v21 = vmul.f32 %v3131_v13, %v3767_v0  ;;  %v3174_v7 = vld [vmem:[%s3762_s23 + $0x10] sm:$0xff]  }
  0x17   : > { %v354_v22 = vadd.f32 %v3776_v9, %v315_v14  ;;  %v355_v24 = vadd.f32 %v3776_v9, %v316_v16  ;;  %v349_v26 = vadd.f32 %v3776_v9, %v310_v18  ;;  %v348_v27 = vadd.f32 %v3776_v9, %v309_v19 }
  0x18   : > { %v346_v23 = vadd.f32 %v3776_v9, %v307_v15  ;;  %v347_v25 = vadd.f32 %v3776_v9, %v308_v17  ;;  %v357_v28 = vadd.f32 %v3776_v9, %v318_v20  ;;  %v356_v29 = vadd.f32 %v3776_v9, %v317_v21  ;;  %v3178_v17 = vld [vmem:[%s3762_s23 + $0x30] sm:$0xff]  }
  0x19   : > { %v386_v30 = vmax.f32 %v354_v22, 0.0  ;;  %v387_v32 = vmax.f32 %v355_v24, 0.0  ;;  %v381_v34 = vmax.f32 %v349_v26, 0.0  ;;  %v380_v35 = vmax.f32 %v348_v27, 0.0  ;;  %v3175_v22 = vld [vmem:[%s3762_s23 + $0x18] sm:$0xff]  }
  0x1a   : > { %v378_v31 = vmax.f32 %v346_v23, 0.0  ;;  %v379_v33 = vmax.f32 %v347_v25, 0.0  ;;  %v389_v36 = vmax.f32 %v357_v28, 0.0  ;;  %v388_v37 = vmax.f32 %v356_v29, 0.0  ;;  %v3179_v27 = vld [vmem:[%s3762_s23 + $0x38] sm:$0xff]  }
  0x1b   : > { %v464_v38 = vrot.slane %v386_v30, 7  ;;  %v465_v40 = vrot.slane %v387_v32, 7  ;;  %v422_v42 = vrot.slane %v381_v34, 7  ;;  %v421_v43 = vrot.slane %v380_v35, 7 }
  0x1c   : > { %v419_v39 = vrot.slane %v378_v31, 7  ;;  %v420_v41 = vrot.slane %v379_v33, 7  ;;  %v467_v44 = vrot.slane %v389_v36, 7  ;;  %v466_v45 = vrot.slane %v388_v37, 7 }
  0x1d   : > { %v3795_v46 = vsel %vm437_vm0, 0.0, %v464_v38  ;;  %v3798_v47 = vsel %vm437_vm0, %v464_v38, 0.0  ;;  %v3811_v54 = vsel %vm437_vm0, 0.0, %v465_v40  ;;  %v3814_v55 = vsel %vm437_vm0, %v465_v40, 0.0 }
  0x1e   : > { %v3801_v48 = vsel %vm437_vm0, 0.0, %v419_v39  ;;  %v3804_v49 = vsel %vm437_vm0, %v419_v39, 0.0  ;;  %v801_v50 = vrot.slane %v3795_v46, 1  ;;  %v802_v51 = vrot.slane %v3798_v47, 1 }
  0x1f   : > { %v737_v52 = vrot.slane %v3801_v48, 1  ;;  %v738_v53 = vrot.slane %v3804_v49, 1  ;;  %v3817_v56 = vsel %vm437_vm0, 0.0, %v420_v41  ;;  %v3820_v57 = vsel %vm437_vm0, %v420_v41, 0.0 }
  0x20   : > { %v803_v58 = vsel %vm592_vm1, %v801_v50, %v802_v51  ;;  %v804_v60 = vrot.slane %v3811_v54, 1  ;;  %v805_v61 = vrot.slane %v3814_v55, 1  ;;  %v740_v62 = vrot.slane %v3817_v56, 1 }
  0x21   : > { %v3826_v59 = vsel %vm592_vm1, %v737_v52, %v738_v53  ;;  %825 = vrot.lane.b32.xlu1 %v803_v58, %s3715_s28  ;;  %v741_v63 = vrot.slane %v3820_v57, 1  ;;  %v3836_v1 = vsel %vm437_vm0, 0.0, %v422_v42  ;;  %v3839_v2 = vsel %vm437_vm0, %v422_v42, 0.0 }
  0x22   : > { %761 = vrot.lane.b32.xlu0 %v3826_v59, %s3716_s29  ;;  %5254 = vst [vmem:[#allocation2_spill] sm:$0xff] %v3836_v1  ;;  %5255 = vst [vmem:[#allocation3_spill] sm:$0xff] %v3839_v2  ;;  %v806_v3 = vsel %vm592_vm1, %v804_v60, %v805_v61  ;;  %v746_v4 = vrot.slane %v3836_v1, 1  ;;  %v5226_v5 = vrot.slane %v3839_v2, 1  ;;  %v3845_v6 = vsel %vm437_vm0, 0.0, %v421_v43 }
  0x23   : > { %v3851_v8 = vsel %vm592_vm1, %v740_v62, %v741_v63  ;;  %v3854_v10 = vsel %vm437_vm0, %v421_v43, 0.0  ;;  %v743_v11 = vrot.slane %v3845_v6, 1  ;;  %v3858_v12 = vsel %vm437_vm0, 0.0, %v467_v44 }
  0x24   : > { %v3863_v13 = vsel %vm592_vm1, %v746_v4, %v5226_v5  ;;  %v5227_v14 = vrot.slane %v3854_v10, 1  ;;  %v3867_v15 = vsel %vm437_vm0, %v467_v44, 0.0  ;;  %v810_v16 = vrot.slane %v3858_v12, 1 }
  0x25   : > { %827 = vrot.lane.b32.xlu1 %v806_v3, %s3715_s28  ;;  %v811_v18 = vrot.slane %v3867_v15, 1  ;;  %v3876_v19 = vsel %vm437_vm0, 0.0, %v466_v45  ;;  %v3879_v20 = vsel %vm437_vm0, %v466_v45, 0.0  ;;  %v3120_v21 = vunpack.c.h.bf16 %v3174_v7 }
  0x26   : > { %763 = vrot.lane.b32.xlu0 %v3851_v8, %s3716_s29  ;;  %v3885_v23 = vsel %vm592_vm1, %v743_v11, %v5227_v14  ;;  %v807_v24 = vrot.slane %v3876_v19, 1  ;;  %v808_v25 = vrot.slane %v3879_v20, 1  ;;  %v3119_v26 = vunpack.c.l.bf16 %v3174_v7 }
  0x27   : > { %v812_v28 = vsel %vm592_vm1, %v810_v16, %v811_v18  ;;  %v312_v29 = vmul.f32 %v3120_v21, %v3767_v0  ;;  %v3136_v30 = vunpack.c.h.bf16 %v3178_v17  ;;  %v3135_v31 = vunpack.c.l.bf16 %v3178_v17 }
  0x28   : > { %v809_v32 = vsel %vm592_vm1, %v807_v24, %v808_v25  ;;  %v311_v33 = vmul.f32 %v3119_v26, %v3767_v0  ;;  %v3124_v34 = vunpack.c.h.bf16 %v3175_v22  ;;  %v3123_v35 = vunpack.c.l.bf16 %v3175_v22 }
  0x29   : > { %767 = vrot.lane.b32.xlu1 %v3863_v13, %s3716_s29  ;;  %v351_v36 = vadd.f32 %v3776_v9, %v312_v29  ;;  %v320_v37 = vmul.f32 %v3136_v30, %v3767_v0  ;;  %v319_v38 = vmul.f32 %v3135_v31, %v3767_v0  ;;  %v3139_v39 = vunpack.c.l.bf16 %v3179_v27 }
  0x2a   : > { %765 = vrot.lane.b32.xlu0 %v3885_v23, %s3716_s29  ;;  %v350_v40 = vadd.f32 %v3776_v9, %v311_v33  ;;  %v314_v41 = vmul.f32 %v3124_v34, %v3767_v0  ;;  %v313_v42 = vmul.f32 %v3123_v35, %v3767_v0  ;;  %v3140_v43 = vunpack.c.h.bf16 %v3179_v27 }
  0x2b   : > { %v383_v44 = vmax.f32 %v351_v36, 0.0  ;;  %v359_v45 = vadd.f32 %v3776_v9, %v320_v37  ;;  %v358_v50 = vadd.f32 %v3776_v9, %v319_v38  ;;  %v321_v51 = vmul.f32 %v3139_v39, %v3767_v0  ;;  %v3947_v38 = vld [vmem:[%s3762_s23 + $0x40] sm:$0xff]  }
  0x2c   : > { %v382_v52 = vmax.f32 %v350_v40, 0.0  ;;  %v353_v58 = vadd.f32 %v3776_v9, %v314_v41  ;;  %v352_v60 = vadd.f32 %v3776_v9, %v313_v42  ;;  %v322_v61 = vmul.f32 %v3140_v43, %v3767_v0 }
  0x2d   : > { %831 = vrot.lane.b32.xlu1 %v812_v28, %s3715_s28  ;;  %v424_v62 = vrot.slane %v383_v44, 7  ;;  %v391_v3 = vmax.f32 %v359_v45, 0.0  ;;  %v390_v4 = vmax.f32 %v358_v50, 0.0  ;;  %v360_v7 = vadd.f32 %v3776_v9, %v321_v51 }
  0x2e   : > { %829 = vrot.lane.b32.xlu0 %v809_v32, %s3715_s28  ;;  %v423_v11 = vrot.slane %v382_v52, 7  ;;  %v385_v16 = vmax.f32 %v353_v58, 0.0  ;;  %v384_v17 = vmax.f32 %v352_v60, 0.0  ;;  %v361_v18 = vadd.f32 %v3776_v9, %v322_v61 }
  0x2f   : > { %v3915_v21 = vsel %vm437_vm0, 0.0, %v424_v62  ;;  %v3918_v22 = vsel %vm437_vm0, %v424_v62, 0.0  ;;  %v469_v24 = vrot.slane %v391_v3, 7  ;;  %v468_v25 = vrot.slane %v390_v4, 7 }
  0x30   : > { %5256 = vst [vmem:[#allocation4_spill] sm:$0xff] %v3915_v21  ;;  %5257 = vst [vmem:[#allocation5_spill] sm:$0xff] %v3918_v22  ;;  %v752_v26 = vrot.slane %v3915_v21, 1  ;;  %v5224_v27 = vrot.slane %v3918_v22, 1  ;;  %v3923_v28 = vsel %vm437_vm0, 0.0, %v423_v11  ;;  %v3926_v29 = vsel %vm437_vm0, %v423_v11, 0.0 }
  0x31   : > { %5258 = vst [vmem:[#allocation6_spill] sm:$0xff] %v3923_v28  ;;  %5259 = vst [vmem:[#allocation7_spill] sm:$0xff] %v3926_v29  ;;  %v749_v30 = vrot.slane %v3923_v28, 1  ;;  %v5225_v31 = vrot.slane %v3926_v29, 1  ;;  %v3931_v32 = vsel %vm437_vm0, 0.0, %v469_v24  ;;  %v3934_v33 = vsel %vm437_vm0, %v469_v24, 0.0 }
  0x32   : > { %v3939_v34 = vsel %vm592_vm1, %v752_v26, %v5224_v27  ;;  %v816_v35 = vrot.slane %v3931_v32, 1  ;;  %v817_v36 = vrot.slane %v3934_v33, 1  ;;  %v3944_v37 = vsel %vm437_vm0, 0.0, %v468_v25 }
  0x33   : > { %771 = vrot.lane.b32.xlu1 %v3939_v34, %s3716_s29  ;;  %v3954_v39 = vsel %vm592_vm1, %v749_v30, %v5225_v31  ;;  %v3957_v40 = vsel %vm437_vm0, %v468_v25, 0.0  ;;  %v813_v41 = vrot.slane %v3944_v37, 1  ;;  %v426_v42 = vrot.slane %v385_v16, 7 }
  0x34   : > { %769 = vrot.lane.b32.xlu0 %v3954_v39, %s3716_s29  ;;  %v818_v43 = vsel %vm592_vm1, %v816_v35, %v817_v36  ;;  %v814_v44 = vrot.slane %v3957_v40, 1  ;;  %v425_v45 = vrot.slane %v384_v17, 7  ;;  %v392_v50 = vmax.f32 %v360_v7, 0.0 }
  0x35   : > { %v3965_v51 = vsel %vm437_vm0, 0.0, %v426_v42  ;;  %v3968_v52 = vsel %vm437_vm0, %v426_v42, 0.0  ;;  %v393_v58 = vmax.f32 %v361_v18, 0.0  ;;  %v3143_v60 = vunpack.c.l.bf16 %v3947_v38 }
  0x36   : > { %5260 = vst [vmem:[#allocation8_spill] sm:$0xff] %v3965_v51  ;;  %5261 = vst [vmem:[#allocation9_spill] sm:$0xff] %v3968_v52  ;;  %v815_v61 = vsel %vm592_vm1, %v813_v41, %v814_v44  ;;  %v758_v62 = vrot.slane %v3965_v51, 1  ;;  %v5221_v3 = vrot.slane %v3968_v52, 1  ;;  %v3975_v4 = vsel %vm437_vm0, 0.0, %v425_v45  ;;  %v4010_v44 = vld [vmem:[%s3762_s23 + $0x60] sm:$0xff]  }
  0x37   : > { %5262 = vst [vmem:[#allocation10_spill] sm:$0xff] %v3975_v4  ;;  %835 = vrot.lane.b32.xlu1 %v818_v43, %s3715_s28  ;;  %v3979_v7 = vsel %vm437_vm0, %v425_v45, 0.0  ;;  %v755_v11 = vrot.slane %v3975_v4, 1  ;;  %v470_v16 = vrot.slane %v392_v50, 7  ;;  %v471_v17 = vrot.slane %v393_v58, 7 }
  0x38   : > { %833 = vrot.lane.b32.xlu0 %v815_v61, %s3715_s28  ;;  %v3986_v18 = vsel %vm592_vm1, %v758_v62, %v5221_v3  ;;  %v5222_v24 = vrot.slane %v3979_v7, 1  ;;  %v323_v25 = vmul.f32 %v3143_v60, %v3767_v0  ;;  %v3159_v61 = vunpack.c.l.bf16 %v4010_v44 }
  0x39   : > { %v3991_v26 = vsel %vm437_vm0, 0.0, %v470_v16  ;;  %v3994_v30 = vsel %vm437_vm0, %v470_v16, 0.0  ;;  %v3997_v35 = vsel %vm437_vm0, 0.0, %v471_v17  ;;  %v4000_v36 = vsel %vm437_vm0, %v471_v17, 0.0 }
  0x3a   : > { %v4005_v41 = vsel %vm592_vm1, %v755_v11, %v5222_v24  ;;  %v819_v42 = vrot.slane %v3991_v26, 1  ;;  %v820_v43 = vrot.slane %v3994_v30, 1  ;;  %v822_v45 = vrot.slane %v3997_v35, 1 }
  0x3b   : > { %775 = vrot.lane.b32.xlu1 %v3986_v18, %s3716_s29  ;;  %v823_v50 = vrot.slane %v4000_v36, 1  ;;  %v362_v60 = vadd.f32 %v3776_v9, %v323_v25  ;;  %v3717_v16 = vmov 0.0   ;;  %v331_v3 = vmul.f32 %v3159_v61, %v3767_v0  ;;  %v4049_v61 = vld [vmem:[%s3762_s23 + $0x48] sm:$0xff]  }
  0x3c   : > { %773 = vrot.lane.b32.xlu0 %v4005_v41, %s3716_s29  ;;  %v821_v58 = vsel %vm592_vm1, %v819_v42, %v820_v43  ;;  %v427_v17 = vrot.slane %v3717_v16, 7  ;;  %v3002_v16 = vld [vmem:[%s5218_s3 + $0x20] sm:$0xff] }
  0x3d   : > { %v824_v62 = vsel %vm592_vm1, %v822_v45, %v823_v50  ;;  %v394_v11 = vmax.f32 %v362_v60, 0.0  ;;  %v370_v43 = vadd.f32 %v3776_v9, %v331_v3 }
  0x3e   : > { %v4030_v42 = vsel %vm437_vm0, 0.0, %v427_v17 }
  0x3f   : > { %1431 = vrot.lane.b32.xlu1 %v3795_v46, %s3716_s29  ;;  %v504_v25 = vrot.slane %v394_v11, 7  ;;  %v593_v45 = vrot.slane %v4030_v42, 1  ;;  %v402_v3 = vmax.f32 %v370_v43, 0.0  ;;  %v3001_v11 = vld [vmem:[%s5218_s3 + $0x18] sm:$0xff] }
  0x40   : > { %837 = vrot.lane.b32.xlu0 %v821_v58, %s3715_s28  ;;  %v4034_v58 = vsel %vm437_vm0, %v427_v17, 0.0  ;;  %v4070_v43 = vpack.c.bf16 %v3002_v16, %v3001_v11  ;;  %v3160_v11 = vunpack.c.h.bf16 %v4010_v44  ;;  %v4097_v16 = vld [vmem:[%s3762_s23 + $0x68] sm:$0xff]  }
  0x41   : > { %v4042_v50 = vsel %vm437_vm0, 0.0, %v504_v25  ;;  %v594_v60 = vrot.slane %v4034_v58, 1  ;;  %v719_v44 = vld [vmem:[%s5218_s3 + $0x8] sm:$0xff]  ;;  %v3163_v5 = vunpack.c.l.bf16 %v4097_v16 }
  0x42   : > { %5263 = vst [vmem:[#allocation11_spill] sm:$0xff] %v4042_v50  ;;  %3537 = vmatprep.subr.bf16.mxu0 %v4070_v43  ;;  %3549 = vmatprep.subr.bf16.mxu1 %v4070_v43  ;;  %v332_v31 = vmul.f32 %v3160_v11, %v3767_v0 }
  0x43   : > { %839 = vrot.lane.b32.xlu1 %v824_v62, %s3715_s28  ;;  %v595_v17 = vsel %vm592_vm1, %v593_v45, %v594_v60  ;;  %3539 = vmatpush3.bf16.msra.mxu0 %v4070_v43 }
  0x44   : > { %1433 = vrot.lane.b32.xlu0 %v3798_v47, %s3716_s29  ;;  %v4045_v47 = vsel %vm437_vm0, %v504_v25, 0.0  ;;  %v544_v25 = vrot.slane %v402_v3, 7  ;;  %v3659_v45 = vpack.i.bf16 %v4030_v42, %v595_v17  ;;  %3551 = vmatpush3.bf16.msra.mxu1 %v4070_v43 }
  0x45   : > { %v5223_v62 = vrot.slane %v4045_v47, 1 }
  0x46   : > { %v4086_v3 = vsel %vm437_vm0, 0.0, %v544_v25 }
  0x47   : > { %1437 = vrot.lane.b32.xlu1 %v3814_v55, %s3716_s29  ;;  %v596_v55 = vrot.slane %v4042_v50, 1 }
  0x48   : > { %1435 = vrot.lane.b32.xlu0 %v3811_v54, %s3716_s29 }
  0x49   : > { %v4077_v24 = vsel %vm592_vm1, %v596_v55, %v5223_v62 }
  0x4b   : > { %1481 = vrot.lane.b32.xlu1 %v738_v53, %s3715_s28  ;;  %v3147_v53 = vunpack.c.l.bf16 %v4049_v61 }
  0x4c   : > { %1479 = vrot.lane.b32.xlu0 %v3826_v59, %s3715_s28  ;;  %v3144_v59 = vunpack.c.h.bf16 %v3947_v38  ;;  %v4083_v38 = vld [vmem:[%s5218_s3 + $0x28] sm:$0xff] }
  0x4d   : > { %5264 = vst [vmem:[#allocation12_spill] sm:$0xff] %v4083_v38  ;;  %3324 = vmatprep.subr.mxu0 %v4083_v38  ;;  %3378 = vmatprep.subr.mxu1 %v4083_v38 }
  0x4e   : > { %v324_v55 = vmul.f32 %v3144_v59, %v3767_v0  ;;  %v655_v59 = vrot.slane %v4086_v3, 1  ;;  %3325 = vmatpush3.msra.mxu0 %v4083_v38  ;;  %3379 = vmatpush3.msra.mxu1 %v4083_v38 }
  0x4f   : > { %1485 = vrot.lane.b32.xlu1 %v741_v63, %s3715_s28  ;;  %v4089_v63 = vsel %vm437_vm0, %v544_v25, 0.0  ;;  %v718_v25 = vld [vmem:[%s5218_s3] sm:$0xff] }
  0x50   : > { %1483 = vrot.lane.b32.xlu0 %v3851_v8, %s3715_s28  ;;  %v325_v8 = vmul.f32 %v3147_v53, %v3767_v0  ;;  %v3664_v53 = vpack.i.bf16 %v594_v60, %v595_v17  ;;  %v656_v62 = vrot.slane %v4089_v63, 1  ;;  %v4117_v14 = vpack.c.bf16 %v719_v44, %v718_v25 }
  0x51   : > { %v363_v50 = vadd.f32 %v3776_v9, %v324_v55 }
  0x52   : > { %v364_v27 = vadd.f32 %v3776_v9, %v325_v8  ;;  %3541 = vmatprep.subr.bf16.mxu0 %v4117_v14  ;;  %v657_v60 = vsel %vm592_vm1, %v655_v59, %v656_v62  ;;  %3553 = vmatprep.subr.bf16.mxu1 %v4117_v14  ;;  %v333_v8 = vmul.f32 %v3163_v5, %v3767_v0 }
  0x53   : > { %619 = vrot.lane.b32.xlu1 %v4077_v24, %s3716_s29  ;;  %v395_v11 = vmax.f32 %v363_v50, 0.0 }
  0x54   : > { %3660 = vrot.lane.b32.xlu0 %v3659_v45, %s3716_s29  ;;  %v396_v17 = vmax.f32 %v364_v27, 0.0  ;;  %v371_v45 = vadd.f32 %v3776_v9, %v332_v31  ;;  %v372_v44 = vadd.f32 %v3776_v9, %v333_v8  ;;  %v3148_v8 = vunpack.c.h.bf16 %v4049_v61 }
  0x56   : > { %v506_v55 = vrot.slane %v396_v17, 7  ;;  %v403_v25 = vmax.f32 %v371_v45, 0.0  ;;  %v404_v50 = vmax.f32 %v372_v44, 0.0 }
  0x57   : > { %1439 = vrot.lane.b32.xlu1 %v3876_v19, %s3716_s29 }
  0x58   : > { %3665 = vrot.lane.b32.xlu0 %v3664_v53, %s3715_s28  ;;  %v505_v53 = vrot.slane %v395_v11, 7  ;;  %v4139_v27 = vsel %vm437_vm0, 0.0, %v506_v55  ;;  %v4142_v5 = vsel %vm437_vm0, %v506_v55, 0.0  ;;  %v545_v31 = vrot.slane %v403_v25, 7 }
  0x59   : > { %5265 = vst [vmem:[#allocation13_spill] sm:$0xff] %v4139_v27  ;;  %v5231_v17 = vrot.slane %v4142_v5, 1  ;;  %v546_v44 = vrot.slane %v404_v50, 7  ;;  %v326_v50 = vmul.f32 %v3148_v8, %v3767_v0 }
  0x5a   : > { %v4148_v62 = vsel %vm437_vm0, 0.0, %v505_v53  ;;  %v4151_v59 = vsel %vm437_vm0, %v505_v53, 0.0  ;;  %v4165_v25 = vsel %vm437_vm0, 0.0, %v545_v31  ;;  %v4168_v53 = vsel %vm437_vm0, %v545_v31, 0.0 }
  0x5b   : > { %678 = vrot.lane.b32.xlu1 %v657_v60, %s3715_s28  ;;  %5266 = vst [vmem:[#allocation14_spill] sm:$0xff] %v4148_v62  ;;  %v602_v60 = vrot.slane %v4139_v27, 1  ;;  %v599_v11 = vrot.slane %v4148_v62, 1  ;;  %v5269_v31 = vrot.slane %v4151_v59, 1  ;;  %v4193_v62 = vsel %vm437_vm0, %v546_v44, 0.0 }
  0x5c   : > { %1441 = vrot.lane.b32.xlu0 %v3879_v20, %s3716_s29  ;;  %v4145_v20 = vld [vmem:[%s3762_s23 + $0x50] sm:$0xff]   ;;  %v662_v8 = vrot.slane %v4193_v62, 1 }
  0x5d   : > { %v3151_v45 = vunpack.c.l.bf16 %v4145_v20  ;;  %v4178_v61 = vsel %vm592_vm1, %v602_v60, %v5231_v17  ;;  %v4186_v27 = vsel %vm592_vm1, %v599_v11, %v5269_v31  ;;  %v3164_v60 = vunpack.c.h.bf16 %v4097_v16  ;;  %v4197_v17 = vld [vmem:[%s3762_s23 + $0x70] sm:$0xff]  }
  0x5e   : > { %v3167_v16 = vunpack.c.l.bf16 %v4197_v17 }
  0x5f   : > { %1445 = vrot.lane.b32.xlu1 %v3867_v15, %s3716_s29  ;;  %v5267_v15 = vrot.slane %v3854_v10, 1  ;;  %v327_v55 = vmul.f32 %v3151_v45, %v3767_v0  ;;  %v334_v38 = vmul.f32 %v3164_v60, %v3767_v0 }
  0x60   : > { %1443 = vrot.lane.b32.xlu0 %v3858_v12, %s3716_s29 }
  0x61   : > { %v366_v11 = vadd.f32 %v3776_v9, %v327_v55  ;;  %v335_v55 = vmul.f32 %v3167_v16, %v3767_v0 }
  0x63   : > { %1489 = vrot.lane.b32.xlu1 %v5267_v15, %s3715_s28  ;;  %v658_v15 = vrot.slane %v4165_v25, 1  ;;  %v398_v4 = vmax.f32 %v366_v11, 0.0  ;;  %v374_v60 = vadd.f32 %v3776_v9, %v335_v55 }
  0x64   : > { %1487 = vrot.lane.b32.xlu0 %v3885_v23, %s3715_s28  ;;  %v5268_v23 = vrot.slane %v3839_v2, 1 }
  0x67   : > { %1493 = vrot.lane.b32.xlu1 %v5268_v23, %s3715_s28  ;;  %v659_v23 = vrot.slane %v4168_v53, 1 }
  0x68   : > { %1491 = vrot.lane.b32.xlu0 %v3863_v13, %s3715_s28  ;;  %v4190_v13 = vsel %vm437_vm0, 0.0, %v546_v44  ;;  %v365_v44 = vadd.f32 %v3776_v9, %v326_v50  ;;  %v508_v50 = vrot.slane %v398_v4, 7  ;;  %v4237_v4 = vld [vmem:[%s3762_s23 + $0x58] sm:$0xff]  }
  0x69   : > { %v661_v45 = vrot.slane %v4190_v13, 1  ;;  %v660_v31 = vsel %vm592_vm1, %v658_v15, %v659_v23  ;;  %v373_v15 = vadd.f32 %v3776_v9, %v334_v38  ;;  %v3155_v55 = vunpack.c.l.bf16 %v4237_v4 }
  0x6a   : > { %v397_v21 = vmax.f32 %v365_v44, 0.0  ;;  %v4228_v38 = vsel %vm437_vm0, %v508_v50, 0.0 }
  0x6b   : > { %623 = vrot.lane.b32.xlu1 %v4178_v61, %s3716_s29  ;;  %v663_v51 = vsel %vm592_vm1, %v661_v45, %v662_v8  ;;  %v405_v28 = vmax.f32 %v373_v15, 0.0  ;;  %v4225_v45 = vsel %vm437_vm0, 0.0, %v508_v50 }
  0x6c   : > { %621 = vrot.lane.b32.xlu0 %v4186_v27, %s3716_s29  ;;  %v507_v23 = vrot.slane %v397_v21, 7  ;;  %5270 = vst [vmem:[#allocation15_spill] sm:$0xff] %v4225_v45  ;;  %v608_v11 = vrot.slane %v4225_v45, 1 }
  0x6d   : > { %v547_v8 = vrot.slane %v405_v28, 7 }
  0x6e   : > { %v4234_v21 = vsel %vm437_vm0, %v507_v23, 0.0 }
  0x6f   : > { %1447 = vrot.lane.b32.xlu1 %v3944_v37, %s3716_s29  ;;  %v5239_v16 = vrot.slane %v4234_v21, 1  ;;  %v4250_v28 = vsel %vm437_vm0, 0.0, %v547_v8  ;;  %v4253_v50 = vsel %vm437_vm0, %v547_v8, 0.0  ;;  %v329_v8 = vmul.f32 %v3155_v55, %v3767_v0 }
  0x70   : > { %680 = vrot.lane.b32.xlu0 %v660_v31, %s3715_s28  ;;  %v5238_v31 = vrot.slane %v4228_v38, 1 }
  0x73   : > { %682 = vrot.lane.b32.xlu1 %v663_v51, %s3715_s28  ;;  %v4231_v51 = vsel %vm437_vm0, 0.0, %v507_v23  ;;  %v3152_v23 = vunpack.c.h.bf16 %v4145_v20  ;;  %v664_v20 = vrot.slane %v4250_v28, 1 }
  0x74   : > { %1449 = vrot.lane.b32.xlu0 %v3957_v40, %s3716_s29  ;;  %5271 = vst [vmem:[#allocation16_spill] sm:$0xff] %v4231_v51  ;;  %v406_v40 = vmax.f32 %v374_v60, 0.0  ;;  %v605_v44 = vrot.slane %v4231_v51, 1  ;;  %v4264_v60 = vsel %vm592_vm1, %v608_v11, %v5238_v31  ;;  %v3168_v31 = vunpack.c.h.bf16 %v4197_v17 }
  0x75   : > { %v328_v11 = vmul.f32 %v3152_v23, %v3767_v0 }
  0x76   : > { %v548_v15 = vrot.slane %v406_v40, 7  ;;  %v4269_v40 = vsel %vm592_vm1, %v605_v44, %v5239_v16  ;;  %v4285_v44 = vld [vmem:[%s3762_s23 + $0x78] sm:$0xff]   ;;  %v336_v17 = vmul.f32 %v3168_v31, %v3767_v0 }
  0x77   : > { %1453 = vrot.lane.b32.xlu1 %v3934_v33, %s3716_s29  ;;  %v5272_v33 = vrot.slane %v3926_v29, 1  ;;  %v367_v23 = vadd.f32 %v3776_v9, %v328_v11  ;;  %v3171_v51 = vunpack.c.l.bf16 %v4285_v44 }
  0x78   : > { %1451 = vrot.lane.b32.xlu0 %v3931_v32, %s3716_s29  ;;  %v375_v2 = vadd.f32 %v3776_v9, %v336_v17 }
  0x79   : > { %v399_v1 = vmax.f32 %v367_v23, 0.0 }
  0x7b   : > { %1497 = vrot.lane.b32.xlu1 %v5272_v33, %s3715_s28  ;;  %v665_v33 = vrot.slane %v4253_v50, 1 }
  0x7c   : > { %1495 = vrot.lane.b32.xlu0 %v3954_v39, %s3715_s28  ;;  %v5273_v39 = vrot.slane %v3918_v22, 1 }
  0x7d   : > { %v666_v45 = vsel %vm592_vm1, %v664_v20, %v665_v33  ;;  %v337_v20 = vmul.f32 %v3171_v51, %v3767_v0  ;;  %v407_v33 = vmax.f32 %v375_v2, 0.0 }
  0x7f   : > { %1501 = vrot.lane.b32.xlu1 %v5273_v39, %s3715_s28  ;;  %v4275_v39 = vsel %vm437_vm0, 0.0, %v548_v15  ;;  %v376_v11 = vadd.f32 %v3776_v9, %v337_v20  ;;  %v549_v2 = vrot.slane %v407_v33, 7  ;;  %v5278_v33 = vrot.slane %v3968_v52, 1 }
  0x80   : > { %1499 = vrot.lane.b32.xlu0 %v3939_v34, %s3715_s28  ;;  %v4278_v34 = vsel %vm437_vm0, %v548_v15, 0.0  ;;  %v667_v55 = vrot.slane %v4275_v39, 1  ;;  %v368_v15 = vadd.f32 %v3776_v9, %v329_v8  ;;  %v509_v8 = vrot.slane %v399_v1, 7 }
  0x81   : > { %v668_v16 = vrot.slane %v4278_v34, 1 }
  0x82   : > { %v400_v29 = vmax.f32 %v368_v15, 0.0  ;;  %v4320_v1 = vsel %vm437_vm0, %v509_v8, 0.0 }
  0x83   : > { %627 = vrot.lane.b32.xlu1 %v4264_v60, %s3716_s29  ;;  %v669_v22 = vsel %vm592_vm1, %v667_v55, %v668_v16 }
  0x84   : > { %625 = vrot.lane.b32.xlu0 %v4269_v40, %s3716_s29  ;;  %v510_v31 = vrot.slane %v400_v29, 7  ;;  %v4317_v29 = vsel %vm437_vm0, 0.0, %v509_v8  ;;  %v4339_v8 = vsel %vm437_vm0, 0.0, %v549_v2 }
  0x85   : > { %5275 = vst [vmem:[#allocation18_spill] sm:$0xff] %v4317_v29  ;;  %v611_v20 = vrot.slane %v4317_v29, 1 }
  0x87   : > { %1455 = vrot.lane.b32.xlu1 %v3991_v26, %s3716_s29 }
  0x88   : > { %684 = vrot.lane.b32.xlu0 %v666_v45, %s3715_s28  ;;  %v4311_v45 = vsel %vm437_vm0, 0.0, %v510_v31 }
  0x89   : > { %5274 = vst [vmem:[#allocation17_spill] sm:$0xff] %v4311_v45  ;;  %v614_v15 = vrot.slane %v4311_v45, 1 }
  0x8b   : > { %686 = vrot.lane.b32.xlu1 %v669_v22, %s3715_s28  ;;  %v4314_v22 = vsel %vm437_vm0, %v510_v31, 0.0  ;;  %v5247_v31 = vrot.slane %v4320_v1, 1 }
  0x8c   : > { %1457 = vrot.lane.b32.xlu0 %v3994_v30, %s3716_s29  ;;  %v408_v30 = vmax.f32 %v376_v11, 0.0  ;;  %v5246_v23 = vrot.slane %v4314_v22, 1 }
  0x8f   : > { %1461 = vrot.lane.b32.xlu1 %v4000_v36, %s3716_s29  ;;  %v5276_v36 = vrot.slane %v3979_v7, 1 }
  0x90   : > { %1459 = vrot.lane.b32.xlu0 %v3997_v35, %s3716_s29 }
  0x93   : > { %1505 = vrot.lane.b32.xlu1 %v5276_v36, %s3715_s28  ;;  %v826_v51 = vpop.permute.xlu1 %825 }
  0x94   : > { %v762_v16 = vpop.permute.xlu0 %761  ;;  %1503 = vrot.lane.b32.xlu0 %v4005_v41, %s3715_s28  ;;  %v4342_v41 = vsel %vm437_vm0, %v549_v2, 0.0  ;;  %v4359_v2 = vsel %vm592_vm1, %v611_v20, %v5247_v31  ;;  %v3021_v20 = vld [vmem:[%s5218_s3 + $0x38] sm:$0xff] }
  0x95   : > { %v849_v55 = vsel %vm700_vm2, %v3795_v46, %v762_v16  ;;  %v550_v46 = vrot.slane %v408_v30, 7  ;;  %v4354_v16 = vsel %vm592_vm1, %v614_v15, %v5246_v23  ;;  %v3020_v15 = vld [vmem:[%s5218_s3 + $0x30] sm:$0xff] }
  0x96   : > { %v4332_v17 = vsel %vm709_vm3, %v849_v55, %v826_v51  ;;  %v670_v55 = vrot.slane %v4339_v8, 1  ;;  %v4391_v23 = vpack.c.bf16 %v3021_v20, %v3020_v15 }
  0x97   : > { %5277 = vst [vmem:[#allocation19_spill] sm:$0xff] %v4332_v17  ;;  %3326 = vmatprep.mubr.msk.f32.mxu0 %vm869_vm4, %v4332_v17  ;;  %1509 = vrot.lane.b32.xlu1 %v5278_v33, %s3715_s28  ;;  %v828_v11 = vpop.permute.xlu1 %827  ;;  %v4380_v33 = vsel %vm437_vm0, 0.0, %v550_v46 }
  0x98   : > { %v764_v36 = vpop.permute.xlu0 %763  ;;  %1507 = vrot.lane.b32.xlu0 %v3986_v18, %s3715_s28  ;;  %v671_v18 = vrot.slane %v4342_v41, 1 }
  0x99   : > { %v850_v51 = vsel %vm700_vm2, %v3811_v54, %v764_v36  ;;  %v4369_v54 = vld [vmem:[%s5218_s3 + $0x10] sm:$0xff] }
  0x9a   : > { %v4362_v30 = vsel %vm709_vm3, %v850_v51, %v828_v11  ;;  %v4383_v11 = vsel %vm437_vm0, %v550_v46, 0.0  ;;  %v672_v46 = vsel %vm592_vm1, %v670_v55, %v671_v18 }
  0x9b   : > { %5279 = vst [vmem:[#allocation20_spill] sm:$0xff] %v4362_v30  ;;  %3327 = vmatmul.mubr.msk.f32.vlgmr.msra.gmra.mrb[0].mxu0 %vm869_vm4, %v4362_v30  ;;  %631 = vrot.lane.b32.xlu1 %v4354_v16, %s3716_s29  ;;  %v768_v36 = vpop.permute.xlu1 %767  ;;  %v673_v30 = vrot.slane %v4380_v33, 1  ;;  %v674_v17 = vrot.slane %v4383_v11, 1 }
  0x9c   : > { %v766_v51 = vpop.permute.xlu0 %765  ;;  %3543 = vmatpush3.bf16.msra.mxu0 %v4117_v14  ;;  %629 = vrot.lane.b32.xlu0 %v4359_v2, %s3716_s29  ;;  %v852_v31 = vsel %vm700_vm2, %v3858_v12, %v768_v36 }
  0x9d   : > { %3342 = vmatprep.subr.mxu0 %v4369_v54  ;;  %v851_v45 = vsel %vm700_vm2, %v3876_v19, %v766_v51  ;;  %v675_v18 = vsel %vm592_vm1, %v673_v30, %v674_v17 }
  0x9f   : > { %1268 = vrot.lane.b32.xlu1 %v4034_v58, %s3716_s29  ;;  %v832_v29 = vpop.permute.xlu1 %831 }
  0xa0   : > { %v830_v52 = vpop.permute.xlu0 %829  ;;  %3343 = vmatpush3.msra.mxu0 %v4369_v54  ;;  %688 = vrot.lane.b32.xlu0 %v672_v46, %s3715_s28  ;;  %v4405_v12 = vsel %vm709_vm3, %v852_v31, %v832_v29 }
  0xa1   : > { %v4408_v55 = vsel %vm709_vm3, %v851_v45, %v830_v52  ;;  %3545 = vmatprep.subr.bf16.mxu0 %v4391_v23 }
  0xa2   : > { %3329 = vmatprep.mubr.msk.f32.mxu0 %vm869_vm4, %v4408_v55 }
  0xa3   : > { %3330 = vmatmul.mubr.msk.f32.gmra.mrb[2].mxu0 %vm869_vm4, %v4405_v12  ;;  %1270 = vrot.lane.b32.xlu1 %v4086_v3, %s3716_s29 }
  0xa4   : > { %690 = vrot.lane.b32.xlu0 %v675_v18, %s3715_s28 }
  0xa5   : > { %v772_v19 = vpop.permute.xlu1 %771 }
  0xa6   : > { %v770_v29 = vpop.permute.xlu0 %769  ;;  %v854_v52 = vsel %vm700_vm2, %v3931_v32, %v772_v19  ;;  %v5280_v32 = vrot.slane %v4045_v47, 1 }
  0xa7   : > { %1316 = vrot.lane.b32.xlu1 %v4077_v24, %s3715_s28  ;;  %v853_v17 = vsel %vm700_vm2, %v3944_v37, %v770_v29 }
  0xa8   : > { %1272 = vrot.lane.b32.xlu0 %v4089_v63, %s3716_s29 }
  0xa9   : > { %v836_v45 = vpop.permute.xlu1 %835 }
  0xaa   : > { %v4428_v31 = vsel %vm709_vm3, %v854_v52, %v836_v45  ;;  %v834_v30 = vpop.permute.xlu0 %833  ;;  %v3156_v52 = vunpack.c.h.bf16 %v4237_v4 }
  0xab   : > { %v4431_v15 = vsel %vm709_vm3, %v853_v17, %v834_v30  ;;  %1274 = vrot.lane.b32.xlu1 %v4165_v25, %s3716_s29 }
  0xac   : > { %1318 = vrot.lane.b32.xlu0 %v5280_v32, %s3715_s28  ;;  %3332 = vmatprep.mubr.msk.f32.mxu0 %vm869_vm4, %v4431_v15 }
  0xad   : > { %3333 = vmatmul.mubr.msk.f32.gmra.mrb[4].mxu0 %vm869_vm4, %v4428_v31  ;;  %v776_v37 = vpop.permute.xlu1 %775 }
  0xae   : > { %v774_v24 = vpop.permute.xlu0 %773 }
  0xaf   : > { %1278 = vrot.lane.b32.xlu1 %v4190_v13, %s3716_s29  ;;  %v855_v20 = vsel %vm700_vm2, %v3991_v26, %v774_v24 }
  0xb0   : > { %1276 = vrot.lane.b32.xlu0 %v4168_v53, %s3716_s29  ;;  %v856_v53 = vsel %vm700_vm2, %v3997_v35, %v776_v37  ;;  %v5282_v35 = vrot.slane %v4142_v5, 1 }
  0xb1   : > { %v1432_v63 = vpop.permute.xlu1 %1431 }
  0xb2   : > { %v838_v36 = vpop.permute.xlu0 %837  ;;  %v1527_v45 = vsel %vm700_vm2, %v3801_v48, %v1432_v63 }
  0xb3   : > { %v4449_v51 = vsel %vm709_vm3, %v855_v20, %v838_v36  ;;  %1320 = vrot.lane.b32.xlu1 %v4186_v27, %s3715_s28  ;;  %v5281_v27 = vrot.slane %v4151_v59, 1  ;;  %v330_v20 = vmul.f32 %v3156_v52, %v3767_v0 }
  0xb4   : > { %1280 = vrot.lane.b32.xlu0 %v4193_v62, %s3716_s29  ;;  %3335 = vmatprep.mubr.msk.f32.mxu0 %vm869_vm4, %v4449_v51 }
  0xb5   : > { %v840_v46 = vpop.permute.xlu1 %839 }
  0xb6   : > { %v4460_v18 = vsel %vm709_vm3, %v856_v53, %v840_v46  ;;  %v1434_v26 = vpop.permute.xlu0 %1433  ;;  %v3172_v46 = vunpack.c.h.bf16 %v4285_v44 }
  0xb7   : > { %1324 = vrot.lane.b32.xlu1 %v4178_v61, %s3715_s28  ;;  %3336 = vmatmul.mubr.msk.f32.gmra.mrb[6].mxu0 %vm869_vm4, %v4460_v18  ;;  %v1528_v29 = vsel %vm700_vm2, %v3804_v49, %v1434_v26 }
  0xb8   : > { %1322 = vrot.lane.b32.xlu0 %v5281_v27, %s3715_s28  ;;  %v369_v27 = vadd.f32 %v3776_v9, %v330_v20  ;;  %v338_v44 = vmul.f32 %v3172_v46, %v3767_v0 }
  0xb9   : > { %v1438_v62 = vpop.permute.xlu1 %1437 }
  0xba   : > { %v1436_v19 = vpop.permute.xlu0 %1435  ;;  %v1530_v49 = vsel %vm700_vm2, %v3820_v57, %v1438_v62  ;;  %v377_v0 = vadd.f32 %v3776_v9, %v338_v44 }
  0xbb   : > { %1282 = vrot.lane.b32.xlu1 %v4250_v28, %s3716_s29  ;;  %v1529_v48 = vsel %vm700_vm2, %v3817_v56, %v1436_v19 }
  0xbc   : > { %1326 = vrot.lane.b32.xlu0 %v5282_v35, %s3715_s28 }
  0xbd   : > { %v1482_v61 = vpop.permute.xlu1 %1481 }
  0xbe   : > { %v1544_v17 = vsel %vm709_vm3, %v1528_v29, %v1482_v61  ;;  %v1480_v30 = vpop.permute.xlu0 %1479  ;;  %v401_v61 = vmax.f32 %v369_v27, 0.0 }
  0xbf   : > { %v1576_v32 = vrot.slane %v1544_v17, 1  ;;  %v1543_v37 = vsel %vm709_vm3, %v1527_v45, %v1480_v30  ;;  %1286 = vrot.lane.b32.xlu1 %v4275_v39, %s3716_s29  ;;  %v5284_v17 = vrot.slane %v4228_v38, 1 }
  0xc0   : > { %v1575_v24 = vrot.slane %v1543_v37, 1  ;;  %1284 = vrot.lane.b32.xlu0 %v4253_v50, %s3716_s29 }
  0xc1   : > { %v1486_v4 = vpop.permute.xlu1 %1485 }
  0xc2   : > { %v1546_v63 = vsel %vm709_vm3, %v1530_v49, %v1486_v4  ;;  %v1484_v36 = vpop.permute.xlu0 %1483  ;;  %v4492_v53 = vsel %vm592_vm1, %v1575_v24, %v1576_v32  ;;  %v511_v49 = vrot.slane %v401_v61, 7 }
  0xc3   : > { %v1579_v26 = vrot.slane %v1546_v63, 1  ;;  %v1545_v50 = vsel %vm709_vm3, %v1529_v48, %v1484_v36  ;;  %3380 = vmatprep.mubr.msk.f32.mxu1 %vm869_vm4, %v4492_v53  ;;  %1328 = vrot.lane.b32.xlu1 %v4269_v40, %s3715_s28 }
  0xc4   : > { %v1578_v57 = vrot.slane %v1545_v50, 1  ;;  %1288 = vrot.lane.b32.xlu0 %v4278_v34, %s3716_s29  ;;  %v5283_v34 = vrot.slane %v4234_v21, 1  ;;  %v4557_v63 = vsel %vm437_vm0, 0.0, %v511_v49  ;;  %v4560_v36 = vsel %vm437_vm0, %v511_v49, 0.0 }
  0xc5   : > { %v620_v56 = vpop.permute.xlu1 %619  ;;  %v1131_v50 = vrot.slane %v4560_v36, 1 }
  0xc6   : > { %v3661_v62 = vpop.permute.xlu0 %3660  ;;  %v4504_v19 = vsel %vm592_vm1, %v1578_v57, %v1579_v26  ;;  %v702_v9 = vsel %vm700_vm2, %v4086_v3, %v620_v56  ;;  %v4547_v3 = vld [vmem:[%s5218_s3 + $0x40] sm:$0xff] }
  0xc7   : > { %3381 = vmatmul.mubr.msk.f32.vlgmr.msra.gmra.mrb[0].mxu1 %vm869_vm4, %v4504_v19  ;;  %1332 = vrot.lane.b32.xlu1 %v4264_v60, %s3715_s28  ;;  %v3663_v40 = vunpack.i.h.bf16 %v3661_v62  ;;  %v3662_v35 = vunpack.i.l.bf16 %v3661_v62 }
  0xc8   : > { %1330 = vrot.lane.b32.xlu0 %v5283_v34, %s3715_s28  ;;  %3555 = vmatpush3.bf16.msra.mxu1 %v4117_v14  ;;  %v5285_v34 = vrot.slane %v4320_v1, 1 }
  0xc9   : > { %v1440_v29 = vpop.permute.xlu1 %1439  ;;  %3396 = vmatprep.subr.mxu1 %v4369_v54  ;;  %v1359_v60 = vsel %vm700_vm2, %v4030_v42, %v3663_v40  ;;  %v701_v30 = vsel %vm700_vm2, %v4030_v42, %v3662_v35  ;;  %v409_v42 = vmax.f32 %v377_v0, 0.0 }
  0xca   : > { %v4516_v52 = vpop.permute.xlu0 %3665  ;;  %v1531_v27 = vsel %vm700_vm2, %v3845_v6, %v1440_v29  ;;  %v5286_v29 = vld [vmem:[#allocation3_spill] sm:$0xff] }
  0xcb   : > { %v3667_v45 = vunpack.i.l.bf16 %v4516_v52  ;;  %1290 = vrot.lane.b32.xlu1 %v4339_v8, %s3716_s29  ;;  %v551_v26 = vrot.slane %v409_v42, 7 }
  0xcc   : > { %1334 = vrot.lane.b32.xlu0 %v5284_v17, %s3715_s28  ;;  %3397 = vmatpush3.msra.mxu1 %v4369_v54  ;;  %v5287_v17 = vld [vmem:[#allocation2_spill] sm:$0xff] }
  0xcd   : > { %v4533_v32 = vsel %vm709_vm3, %v1359_v60, %v3667_v45  ;;  %v679_v37 = vpop.permute.xlu1 %678  ;;  %v4536_v24 = vsel %vm709_vm3, %v701_v30, %v3667_v45  ;;  %3557 = vmatprep.subr.bf16.mxu1 %v4391_v23  ;;  %v575_v44 = vsel %vm437_vm0, %v551_v26, 0.0 }
  0xce   : > { %v4540_v4 = vsel %vm709_vm3, %v702_v9, %v679_v37  ;;  %v1442_v20 = vpop.permute.xlu0 %1441  ;;  %3344 = vmatprep.mubr.msk.f32.mxu0 %vm869_vm4, %v4536_v24  ;;  %v1139_v60 = vrot.slane %v575_v44, 1 }
  0xcf   : > { %1294 = vrot.lane.b32.xlu1 %v4380_v33, %s3716_s29  ;;  %3345 = vmatmul.mubr.msk.f32.vlgmr.msra.gmra.mrb[0].mxu0 %vm869_vm4, %v4540_v4  ;;  %v1532_v57 = vsel %vm700_vm2, %v3854_v10, %v1442_v20 }
  0xd0   : > { %1292 = vrot.lane.b32.xlu0 %v4342_v41, %s3716_s29  ;;  %3547 = vmatpush3.bf16.msra.mxu0 %v4391_v23  ;;  %v1130_v41 = vrot.slane %v4557_v63, 1 }
  0xd1   : > { %v1446_v48 = vpop.permute.xlu1 %1445  ;;  %3360 = vmatprep.subr.mxu0 %v4547_v3 }
  0xd2   : > { %v1444_v46 = vpop.permute.xlu0 %1443  ;;  %v1132_v6 = vsel %vm592_vm1, %v1130_v41, %v1131_v50  ;;  %v1534_v61 = vsel %vm700_vm2, %v5286_v29, %v1446_v48  ;;  %v5288_v48 = vrot.slane %v4314_v22, 1  ;;  %v5289_v29 = vld [vmem:[#allocation7_spill] sm:$0xff] }
  0xd3   : > { %1336 = vrot.lane.b32.xlu1 %v4359_v2, %s3715_s28  ;;  %v1533_v30 = vsel %vm700_vm2, %v5287_v17, %v1444_v46 }
  0xd4   : > { %1296 = vrot.lane.b32.xlu0 %v4383_v11, %s3716_s29  ;;  %3361 = vmatpush3.msra.mxu0 %v4547_v3  ;;  %v4577_v11 = vsel %vm437_vm0, 0.0, %v551_v26 }
  0xd5   : > { %v1490_v56 = vpop.permute.xlu1 %1489  ;;  %3561 = vmatprep.subr.bf16.mxu0 %v4070_v43  ;;  %v1138_v45 = vrot.slane %v4577_v11, 1 }
  0xd6   : > { %v1548_v2 = vsel %vm709_vm3, %v1532_v57, %v1490_v56  ;;  %v1488_v62 = vpop.permute.xlu0 %1487 }
  0xd7   : > { %v1582_v40 = vrot.slane %v1548_v2, 1  ;;  %v1547_v35 = vsel %vm709_vm3, %v1531_v27, %v1488_v62  ;;  %1340 = vrot.lane.b32.xlu1 %v4354_v16, %s3715_s28  ;;  %v1140_v26 = vsel %vm592_vm1, %v1138_v45, %v1139_v60 }
  0xd8   : > { %v1581_v10 = vrot.slane %v1547_v35, 1  ;;  %1338 = vrot.lane.b32.xlu0 %v5285_v34, %s3715_s28 }
  0xd9   : > { %v1494_v0 = vpop.permute.xlu1 %1493 }
  0xda   : > { %v1550_v9 = vsel %vm709_vm3, %v1534_v61, %v1494_v0  ;;  %v1492_v16 = vpop.permute.xlu0 %1491  ;;  %v4594_v37 = vsel %vm592_vm1, %v1581_v10, %v1582_v40 }
  0xdb   : > { %v1585_v49 = vrot.slane %v1550_v9, 1  ;;  %v1549_v20 = vsel %vm709_vm3, %v1533_v30, %v1492_v16  ;;  %3383 = vmatprep.mubr.msk.f32.mxu1 %vm869_vm4, %v4594_v37  ;;  %1133 = vrot.lane.b32.xlu1 %v1132_v6, %s3716_s29  ;;  %v5291_v16 = vld [vmem:[#allocation5_spill] sm:$0xff] }
  0xdc   : > { %v1584_v42 = vrot.slane %v1549_v20, 1  ;;  %1342 = vrot.lane.b32.xlu0 %v5288_v48, %s3715_s28  ;;  %v5292_v20 = vld [vmem:[#allocation4_spill] sm:$0xff] }
  0xdd   : > { %v624_v46 = vpop.permute.xlu1 %623 }
  0xde   : > { %v622_v41 = vpop.permute.xlu0 %621  ;;  %v4605_v57 = vsel %vm592_vm1, %v1584_v42, %v1585_v49  ;;  %v704_v40 = vsel %vm700_vm2, %v4190_v13, %v624_v46 }
  0xdf   : > { %3384 = vmatmul.mubr.msk.f32.gmra.mrb[2].mxu1 %vm869_vm4, %v4605_v57  ;;  %1841 = vrot.lane.b32.xlu1 %v4577_v11, %s3716_s29  ;;  %v703_v27 = vsel %vm700_vm2, %v4165_v25, %v622_v41 }
  0xe0   : > { %1141 = vrot.lane.b32.xlu0 %v1140_v26, %s3715_s28 }
  0xe1   : > { %v1448_v56 = vpop.permute.xlu1 %1447 }
  0xe2   : > { %v681_v2 = vpop.permute.xlu0 %680 }
  0xe3   : > { %v4615_v62 = vsel %vm709_vm3, %v703_v27, %v681_v2  ;;  %1847 = vrot.lane.b32.xlu1 %v1132_v6, %s3715_s28 }
  0xe4   : > { %3347 = vmatprep.mubr.msk.f32.mxu0 %vm869_vm4, %v4615_v62  ;;  %1843 = vrot.lane.b32.xlu0 %v575_v44, %s3716_s29  ;;  %v5290_v44 = vld [vmem:[#allocation6_spill] sm:$0xff] }
  0xe5   : > { %v683_v35 = vpop.permute.xlu1 %682  ;;  %v1535_v45 = vsel %vm700_vm2, %v5290_v44, %v1448_v56 }
  0xe6   : > { %v4624_v10 = vsel %vm709_vm3, %v704_v40, %v683_v35  ;;  %v1450_v34 = vpop.permute.xlu0 %1449 }
  0xe7   : > { %3348 = vmatmul.mubr.msk.f32.gmra.mrb[2].mxu0 %vm869_vm4, %v4624_v10  ;;  %v1536_v61 = vsel %vm700_vm2, %v5289_v29, %v1450_v34 }
  0xe8   : > { %1849 = vrot.lane.b32.xlu0 %v1131_v50, %s3715_s28 }
  0xe9   : > { %v1454_v25 = vpop.permute.xlu1 %1453 }
  0xea   : > { %v1452_v6 = vpop.permute.xlu0 %1451  ;;  %v1538_v49 = vsel %vm700_vm2, %v5291_v16, %v1454_v25 }
  0xeb   : > { %v1537_v42 = vsel %vm700_vm2, %v5292_v20, %v1452_v6 }
  0xed   : > { %v1498_v0 = vpop.permute.xlu1 %1497 }
  0xee   : > { %v1552_v13 = vsel %vm709_vm3, %v1536_v61, %v1498_v0  ;;  %v1496_v60 = vpop.permute.xlu0 %1495 }
  0xef   : > { %v1588_v17 = vrot.slane %v1552_v13, 1  ;;  %v1551_v30 = vsel %vm709_vm3, %v1535_v45, %v1496_v60 }
  0xf0   : > { %v1587_v9 = vrot.slane %v1551_v30, 1  ;;  %v5293_v30 = vld [vmem:[#allocation10_spill] sm:$0xff] }
  0xf1   : > { %v1502_v50 = vpop.permute.xlu1 %1501 }
  0xf2   : > { %v1554_v48 = vsel %vm709_vm3, %v1538_v49, %v1502_v50  ;;  %v1500_v46 = vpop.permute.xlu0 %1499  ;;  %v4641_v26 = vsel %vm592_vm1, %v1587_v9, %v1588_v17 }
  0xf3   : > { %v1591_v41 = vrot.slane %v1554_v48, 1  ;;  %v1553_v56 = vsel %vm709_vm3, %v1537_v42, %v1500_v46  ;;  %3386 = vmatprep.mubr.msk.f32.mxu1 %vm869_vm4, %v4641_v26  ;;  %v5294_v42 = vld [vmem:[#allocation9_spill] sm:$0xff] }
  0xf4   : > { %v1590_v27 = vrot.slane %v1553_v56, 1 }
  0xf5   : > { %v628_v2 = vpop.permute.xlu1 %627 }
  0xf6   : > { %v626_v40 = vpop.permute.xlu0 %625  ;;  %v4647_v35 = vsel %vm592_vm1, %v1590_v27, %v1591_v41  ;;  %v706_v61 = vsel %vm700_vm2, %v4275_v39, %v628_v2  ;;  %v5295_v41 = vld [vmem:[#allocation8_spill] sm:$0xff] }
  0xf7   : > { %3387 = vmatmul.mubr.msk.f32.gmra.mrb[4].mxu1 %vm869_vm4, %v4647_v35  ;;  %v705_v25 = vsel %vm700_vm2, %v4250_v28, %v626_v40 }
  0xf9   : > { %v1456_v34 = vpop.permute.xlu1 %1455 }
  0xfa   : > { %v685_v6 = vpop.permute.xlu0 %684  ;;  %v1539_v9 = vsel %vm700_vm2, %v5293_v30, %v1456_v34 }
  0xfb   : > { %v4654_v29 = vsel %vm709_vm3, %v705_v25, %v685_v6 }
  0xfc   : > { %3350 = vmatprep.mubr.msk.f32.mxu0 %vm869_vm4, %v4654_v29 }
  0xfd   : > { %v687_v0 = vpop.permute.xlu1 %686 }
  0xfe   : > { %v4661_v44 = vsel %vm709_vm3, %v706_v61, %v687_v0  ;;  %v1458_v45 = vpop.permute.xlu0 %1457 }
  0xff   : > { %3351 = vmatmul.mubr.msk.f32.gmra.mrb[4].mxu0 %vm869_vm4, %v4661_v44  ;;  %v1540_v60 = vsel %vm700_vm2, %v3979_v7, %v1458_v45  ;;  %v3668_v45 = vunpack.i.h.bf16 %v4516_v52 }
 0x101   : > { %v1462_v13 = vpop.permute.xlu1 %1461 }
 0x102   : > { %v1460_v28 = vpop.permute.xlu0 %1459  ;;  %v1542_v48 = vsel %vm700_vm2, %v5294_v42, %v1462_v13 }
 0x103   : > { %v1541_v56 = vsel %vm700_vm2, %v5295_v41, %v1460_v28 }
 0x105   : > { %v1506_v17 = vpop.permute.xlu1 %1505 }
 0x106   : > { %v1556_v16 = vsel %vm709_vm3, %v1540_v60, %v1506_v17  ;;  %v1504_v39 = vpop.permute.xlu0 %1503 }
 0x107   : > { %v1594_v49 = vrot.slane %v1556_v16, 1  ;;  %v1555_v50 = vsel %vm709_vm3, %v1539_v9, %v1504_v39  ;;  %v1407_v16 = vrot.slane %v4533_v32, 1 }
 0x108   : > { %v1593_v20 = vrot.slane %v1555_v50, 1 }
 0x109   : > { %v1510_v46 = vpop.permute.xlu1 %1509 }
 0x10a   : > { %v1558_v7 = vsel %vm709_vm3, %v1542_v48, %v1510_v46  ;;  %v1508_v27 = vpop.permute.xlu0 %1507  ;;  %v4677_v2 = vsel %vm592_vm1, %v1593_v20, %v1594_v49  ;;  %v5296_v20 = vld [vmem:[#allocation11_spill] sm:$0xff] }
 0x10b   : > { %v1597_v40 = vrot.slane %v1558_v7, 1  ;;  %v1557_v34 = vsel %vm709_vm3, %v1541_v56, %v1508_v27  ;;  %3389 = vmatprep.mubr.msk.f32.mxu1 %vm869_vm4, %v4677_v2  ;;  %v5297_v7 = vld [vmem:[#allocation12_spill] sm:$0xff] }
 0x10c   : > { %v1596_v25 = vrot.slane %v1557_v34, 1 }
 0x10d   : > { %v632_v6 = vpop.permute.xlu1 %631 }
 0x10e   : > { %v630_v61 = vpop.permute.xlu0 %629  ;;  %v4683_v0 = vsel %vm592_vm1, %v1596_v25, %v1597_v40  ;;  %v708_v49 = vsel %vm700_vm2, %v4380_v33, %v632_v6 }
 0x10f   : > { %3390 = vmatmul.mubr.msk.f32.gmra.mrb[6].mxu1 %vm869_vm4, %v4683_v0  ;;  %v707_v28 = vsel %vm700_vm2, %v4339_v8, %v630_v61 }
 0x111   : > { %v1269_v13 = vpop.permute.xlu1 %1268 }
 0x112   : > { %v1360_v60 = vsel %vm700_vm2, %v4034_v58, %v1269_v13  ;;  %v689_v17 = vpop.permute.xlu0 %688  ;;  %v5298_v13 = vld [vmem:[#allocation14_spill] sm:$0xff] }
 0x113   : > { %v1376_v30 = vsel %vm709_vm3, %v1360_v60, %v3668_v45  ;;  %v4694_v9 = vsel %vm709_vm3, %v707_v28, %v689_v17 }
 0x114   : > { %v1408_v39 = vrot.slane %v1376_v30, 1  ;;  %3353 = vmatprep.mubr.msk.f32.mxu0 %vm869_vm4, %v4694_v9 }
 0x115   : > { %v1271_v52 = vpop.permute.xlu1 %1270 }
 0x116   : > { %v691_v8 = vpop.permute.xlu0 %690  ;;  %v4702_v50 = vsel %vm592_vm1, %v1407_v16, %v1408_v39  ;;  %v1361_v33 = vsel %vm700_vm2, %v5296_v20, %v1271_v52  ;;  %v5299_v52 = vld [vmem:[#allocation13_spill] sm:$0xff] }
 0x117   : > { %v4705_v58 = vsel %vm709_vm3, %v708_v49, %v691_v8  ;;  %3398 = vmatprep.mubr.msk.f32.mxu1 %vm869_vm4, %v4702_v50 }
 0x118   : > { %3354 = vmatmul.mubr.msk.f32.gmra.mrb[6].mxu0 %vm869_vm4, %v4705_v58 }
 0x119   : > { %3362 = vmatprep.mubr.msk.f32.mxu0 %vm869_vm4, %v4540_v4  ;;  %v1317_v32 = vpop.permute.xlu1 %1316 }
 0x11a   : > { %v1273_v42 = vpop.permute.xlu0 %1272  ;;  %v1377_v48 = vsel %vm709_vm3, %v1361_v33, %v1317_v32 }
 0x11b   : > { %v1362_v41 = vsel %vm700_vm2, %v4045_v47, %v1273_v42  ;;  %v1410_v40 = vrot.slane %v1377_v48, 1 }
 0x11c   : > { %3363 = vmatmul.mubr.msk.f32.vlgmr.msra.gmra.mrb[0].mxu0 %vm869_vm4, %v4615_v62 }
 0x11d   : > { %3365 = vmatprep.mubr.msk.f32.mxu0 %vm869_vm4, %v4624_v10  ;;  %v1275_v46 = vpop.permute.xlu1 %1274  ;;  %3563 = vmatpush3.bf16.msra.mxu0 %v4070_v43 }
 0x11e   : > { %v1319_v56 = vpop.permute.xlu0 %1318  ;;  %3432 = vmatprep.subr.mxu0 %v5297_v7  ;;  %v1363_v28 = vsel %vm700_vm2, %v5298_v13, %v1275_v46 }
 0x11f   : > { %v1378_v27 = vsel %vm709_vm3, %v1362_v41, %v1319_v56 }
 0x120   : > { %v1411_v34 = vrot.slane %v1378_v27, 1  ;;  %3366 = vmatmul.mubr.msk.f32.gmra.mrb[2].mxu0 %vm869_vm4, %v4654_v29 }
 0x121   : > { %3368 = vmatprep.mubr.msk.f32.mxu0 %vm869_vm4, %v4661_v44  ;;  %v1279_v25 = vpop.permute.xlu1 %1278  ;;  %3433 = vmatpush3.msra.mxu0 %v5297_v7 }
 0x122   : > { %v4731_v6 = vsel %vm592_vm1, %v1410_v40, %v1411_v34  ;;  %v1277_v47 = vpop.permute.xlu0 %1276  ;;  %3565 = vmatprep.subr.bf16.mxu0 %v4117_v14  ;;  %v1365_v49 = vsel %vm700_vm2, %v5299_v52, %v1279_v25  ;;  %v5300_v25 = vld [vmem:[#allocation16_spill] sm:$0xff] }
 0x123   : > { %3399 = vmatmul.mubr.msk.f32.vlgmr.msra.gmra.mrb[0].mxu1 %vm869_vm4, %v4731_v6  ;;  %v1364_v30 = vsel %vm700_vm2, %v4151_v59, %v1277_v47 }
 0x124   : > { %3369 = vmatmul.mubr.msk.f32.gmra.mrb[4].mxu0 %vm869_vm4, %v4694_v9  ;;  %3559 = vmatpush3.bf16.msra.mxu1 %v4391_v23 }
 0x125   : > { %3371 = vmatprep.mubr.msk.f32.mxu0 %vm869_vm4, %v4705_v58  ;;  %v1321_v61 = vpop.permute.xlu1 %1320  ;;  %3414 = vmatprep.subr.mxu1 %v4547_v3 }
 0x126   : > { %v1281_v45 = vpop.permute.xlu0 %1280  ;;  %v1379_v60 = vsel %vm709_vm3, %v1363_v28, %v1321_v61 }
 0x127   : > { %v1413_v8 = vrot.slane %v1379_v60, 1  ;;  %v1366_v42 = vsel %vm700_vm2, %v4142_v5, %v1281_v45 }
 0x128   : > { %3415 = vmatpush3.msra.mxu1 %v4547_v3 }
 0x129   : > { %v1325_v17 = vpop.permute.xlu1 %1324  ;;  %3573 = vmatprep.subr.bf16.mxu1 %v4070_v43 }
 0x12a   : > { %v1323_v16 = vpop.permute.xlu0 %1322  ;;  %v1381_v20 = vsel %vm709_vm3, %v1365_v49, %v1325_v17  ;;  %v5301_v17 = vld [vmem:[#allocation15_spill] sm:$0xff] }
 0x12b   : > { %v1380_v39 = vsel %vm709_vm3, %v1364_v30, %v1323_v16  ;;  %v1416_v41 = vrot.slane %v1381_v20, 1 }
 0x12c   : > { %v1414_v32 = vrot.slane %v1380_v39, 1 }
 0x12d   : > { %v1283_v33 = vpop.permute.xlu1 %1282 }
 0x12e   : > { %v1327_v48 = vpop.permute.xlu0 %1326  ;;  %v4756_v46 = vsel %vm592_vm1, %v1413_v8, %v1414_v32  ;;  %v1367_v47 = vsel %vm700_vm2, %v5300_v25, %v1283_v33 }
 0x12f   : > { %v1382_v59 = vsel %vm709_vm3, %v1366_v42, %v1327_v48  ;;  %3401 = vmatprep.mubr.msk.f32.mxu1 %vm869_vm4, %v4756_v46 }
 0x130   : > { %v1417_v56 = vrot.slane %v1382_v59, 1 }
 0x131   : > { %v1287_v7 = vpop.permute.xlu1 %1286 }
 0x132   : > { %v1285_v27 = vpop.permute.xlu0 %1284  ;;  %v4762_v40 = vsel %vm592_vm1, %v1416_v41, %v1417_v56  ;;  %v1369_v30 = vsel %vm700_vm2, %v5301_v17, %v1287_v7  ;;  %v5302_v7 = vld [vmem:[#allocation18_spill] sm:$0xff] }
 0x133   : > { %3402 = vmatmul.mubr.msk.f32.gmra.mrb[2].mxu1 %vm869_vm4, %v4762_v40  ;;  %v1368_v13 = vsel %vm700_vm2, %v4234_v21, %v1285_v27 }
 0x135   : > { %v1329_v5 = vpop.permute.xlu1 %1328 }
 0x136   : > { %v1289_v34 = vpop.permute.xlu0 %1288  ;;  %v1383_v61 = vsel %vm709_vm3, %v1367_v47, %v1329_v5 }
 0x137   : > { %v1419_v16 = vrot.slane %v1383_v61, 1  ;;  %v1370_v8 = vsel %vm700_vm2, %v4228_v38, %v1289_v34 }
 0x139   : > { %v1333_v45 = vpop.permute.xlu1 %1332 }
 0x13a   : > { %v1331_v28 = vpop.permute.xlu0 %1330  ;;  %v1385_v52 = vsel %vm709_vm3, %v1369_v30, %v1333_v45  ;;  %v5303_v45 = vld [vmem:[#allocation17_spill] sm:$0xff] }
 0x13b   : > { %v1384_v60 = vsel %vm709_vm3, %v1368_v13, %v1331_v28  ;;  %v1422_v33 = vrot.slane %v1385_v52, 1 }
 0x13c   : > { %v1420_v39 = vrot.slane %v1384_v60, 1 }
 0x13d   : > { %v1291_v49 = vpop.permute.xlu1 %1290 }
 0x13e   : > { %v1335_v32 = vpop.permute.xlu0 %1334  ;;  %v4778_v20 = vsel %vm592_vm1, %v1419_v16, %v1420_v39  ;;  %v1371_v27 = vsel %vm700_vm2, %v5302_v7, %v1291_v49 }
 0x13f   : > { %v1386_v21 = vsel %vm709_vm3, %v1370_v8, %v1335_v32  ;;  %3404 = vmatprep.mubr.msk.f32.mxu1 %vm869_vm4, %v4778_v20 }
 0x140   : > { %v1423_v42 = vrot.slane %v1386_v21, 1 }
 0x141   : > { %v1295_v48 = vpop.permute.xlu1 %1294 }
 0x142   : > { %v1293_v59 = vpop.permute.xlu0 %1292  ;;  %v4784_v41 = vsel %vm592_vm1, %v1422_v33, %v1423_v42  ;;  %v1373_v13 = vsel %vm700_vm2, %v5303_v45, %v1295_v48 }
 0x143   : > { %3405 = vmatmul.mubr.msk.f32.gmra.mrb[4].mxu1 %vm869_vm4, %v4784_v41  ;;  %v1372_v25 = vsel %vm700_vm2, %v4320_v1, %v1293_v59 }
 0x145   : > { %v1337_v38 = vpop.permute.xlu1 %1336 }
 0x146   : > { %v1297_v56 = vpop.permute.xlu0 %1296  ;;  %v1387_v5 = vsel %vm709_vm3, %v1371_v27, %v1337_v38 }
 0x147   : > { %v1425_v28 = vrot.slane %v1387_v5, 1  ;;  %v1374_v16 = vsel %vm700_vm2, %v4314_v22, %v1297_v56 }
 0x149   : > { %v1341_v34 = vpop.permute.xlu1 %1340 }
 0x14a   : > { %v1339_v47 = vpop.permute.xlu0 %1338  ;;  %v1389_v17 = vsel %vm709_vm3, %v1373_v13, %v1341_v34 }
 0x14b   : > { %v1388_v61 = vsel %vm709_vm3, %v1372_v25, %v1339_v47  ;;  %v1428_v49 = vrot.slane %v1389_v17, 1 }
 0x14c   : > { %v1426_v60 = vrot.slane %v1388_v61, 1 }
 0x14d   : > { %v1134_v30 = vpop.permute.xlu1 %1133 }
 0x14e   : > { %v1343_v39 = vpop.permute.xlu0 %1342  ;;  %v4800_v52 = vsel %vm592_vm1, %v1425_v28, %v1426_v60  ;;  %v1144_v32 = vsel %vm700_vm2, %v4577_v11, %v1134_v30 }
 0x14f   : > { %v1390_v1 = vsel %vm709_vm3, %v1374_v16, %v1343_v39  ;;  %3407 = vmatprep.mubr.msk.f32.mxu1 %vm869_vm4, %v4800_v52 }
 0x150   : > { %v1429_v8 = vrot.slane %v1390_v1, 1 }
 0x151   : > { %v1842_v21 = vpop.permute.xlu1 %1841 }
 0x152   : > { %v1142_v33 = vpop.permute.xlu0 %1141  ;;  %v1430_v42 = vsel %vm592_vm1, %v1428_v49, %v1429_v8  ;;  %v1853_v48 = vsel %vm700_vm2, %v4557_v63, %v1842_v21 }
 0x153   : > { %v1145_v22 = vsel %vm709_vm3, %v1144_v32, %v1142_v33  ;;  %3408 = vmatmul.mubr.msk.f32.gmra.mrb[6].mxu1 %vm869_vm4, %v1430_v42 }
 0x154   : > { %3372 = vmatmul.mubr.msk.f32.gmra.mrb[6].mxu0 %vm869_vm4, %v1145_v22  ;;  %3416 = vmatprep.mubr.msk.f32.mxu1 %vm869_vm4, %v4731_v6 }
 0x155   : > { %3434 = vmatprep.mubr.msk.f32.mxu0 %vm869_vm4, %v4540_v4  ;;  %v1848_v59 = vpop.permute.xlu1 %1847 }
 0x156   : > { %v1844_v11 = vpop.permute.xlu0 %1843  ;;  %v1855_v4 = vsel %vm709_vm3, %v1853_v48, %v1848_v59 }
 0x157   : > { %3417 = vmatmul.mubr.msk.f32.vlgmr.msra.gmra.mrb[0].mxu1 %vm869_vm4, %v4756_v46  ;;  %v1854_v38 = vsel %vm700_vm2, %v4560_v36, %v1844_v11  ;;  %v3706_v36 = vld [vmem:[%s5218_s3 + $0x28] sm:$0xff] }
 0x158   : > { %3419 = vmatprep.mubr.msk.f32.mxu1 %vm869_vm4, %v4762_v40  ;;  %3435 = vmatmul.mubr.msk.f32.vlgmr.msra.gmra.mrb[8].mxu0 %vm869_vm4, %v4615_v62 }
 0x159   : > { %3567 = vmatpush3.bf16.msra.mxu0 %v4117_v14  ;;  %3437 = vmatprep.mubr.msk.f32.mxu0 %vm869_vm4, %v4624_v10  ;;  %v1859_v10 = vrot.slane %v1855_v4, 1 }
 0x15a   : > { %v1850_v63 = vpop.permute.xlu0 %1849  ;;  %3450 = vmatprep.subr.mxu0 %v4369_v54  ;;  %3575 = vmatpush3.bf16.msra.mxu1 %v4070_v43 }
 0x15b   : > { %3420 = vmatmul.mubr.msk.f32.gmra.mrb[2].mxu1 %vm869_vm4, %v4778_v20  ;;  %v1856_v62 = vsel %vm709_vm3, %v1854_v38, %v1850_v63  ;;  %3486 = vmatprep.subr.mxu1 %v3706_v36 }
 0x15c   : > { %3422 = vmatprep.mubr.msk.f32.mxu1 %vm869_vm4, %v4784_v41  ;;  %3438 = vmatmul.mubr.msk.f32.gmra.mrb[10].mxu0 %vm869_vm4, %v4654_v29  ;;  %v1860_v56 = vrot.slane %v1856_v62, 1  ;;  %v5304_v29 = vld [vmem:[#allocation19_spill] sm:$0xff] }
 0x15d   : > { %3440 = vmatprep.mubr.msk.f32.mxu0 %vm869_vm4, %v4661_v44  ;;  %3451 = vmatpush3.msra.mxu0 %v4369_v54  ;;  %v5305_v44 = vld [vmem:[#allocation20_spill] sm:$0xff] }
 0x15e   : > { %3487 = vmatpush3.msra.mxu1 %v3706_v36  ;;  %3569 = vmatprep.subr.bf16.mxu0 %v4391_v23  ;;  %v1861_v43 = vsel %vm592_vm1, %v1859_v10, %v1860_v56 }
 0x15f   : > { %3423 = vmatmul.mubr.msk.f32.gmra.mrb[4].mxu1 %vm869_vm4, %v4800_v52  ;;  %3577 = vmatprep.subr.bf16.mxu1 %v4117_v14 }
 0x160   : > { %3425 = vmatprep.mubr.msk.f32.mxu1 %vm869_vm4, %v1430_v42  ;;  %3441 = vmatmul.mubr.msk.f32.gmra.mrb[12].mxu0 %vm869_vm4, %v4694_v9 }
 0x161   : > { %3443 = vmatprep.mubr.msk.f32.mxu0 %vm869_vm4, %v4705_v58 }
 0x163   : > { %3426 = vmatmul.mubr.msk.f32.gmra.mrb[6].mxu1 %vm869_vm4, %v1861_v43 }
 0x164   : > { %3444 = vmatmul.mubr.msk.f32.gmra.mrb[14].mxu0 %vm869_vm4, %v1145_v22  ;;  %3488 = vmatprep.mubr.msk.f32.mxu1 %vm869_vm4, %v4731_v6 }
 0x165   : > { %3452 = vmatprep.mubr.msk.f32.mxu0 %vm869_vm4, %v5304_v29 }
 0x167   : > { %3489 = vmatmul.mubr.msk.f32.vlgmr.msra.gmra.mrb[8].mxu1 %vm869_vm4, %v4756_v46 }
 0x168   : > { %3453 = vmatmul.mubr.msk.f32.vlgmr.msra.gmra.mrb[8].mxu0 %vm869_vm4, %v5305_v44  ;;  %3491 = vmatprep.mubr.msk.f32.mxu1 %vm869_vm4, %v4762_v40 }
 0x169   : > { %3571 = vmatpush3.bf16.msra.mxu0 %v4391_v23  ;;  %3455 = vmatprep.mubr.msk.f32.mxu0 %vm869_vm4, %v4408_v55 }
 0x16a   : > { %3468 = vmatprep.subr.mxu0 %v4547_v3  ;;  %3579 = vmatpush3.bf16.msra.mxu1 %v4117_v14 }
 0x16b   : > { %3492 = vmatmul.mubr.msk.f32.gmra.mrb[10].mxu1 %vm869_vm4, %v4778_v20  ;;  %3504 = vmatprep.subr.mxu1 %v4369_v54 }
 0x16c   : > { %3456 = vmatmul.mubr.msk.f32.gmra.mrb[10].mxu0 %vm869_vm4, %v4405_v12  ;;  %3494 = vmatprep.mubr.msk.f32.mxu1 %vm869_vm4, %v4784_v41 }
 0x16d   : > { %3458 = vmatprep.mubr.msk.f32.mxu0 %vm869_vm4, %v4431_v15  ;;  %3469 = vmatpush3.msra.mxu0 %v4547_v3 }
 0x16e   : > { %3505 = vmatpush3.msra.mxu1 %v4369_v54 }
 0x16f   : > { %3495 = vmatmul.mubr.msk.f32.gmra.mrb[12].mxu1 %vm869_vm4, %v4800_v52  ;;  %3581 = vmatprep.subr.bf16.mxu1 %v4391_v23 }
 0x170   : > { %3459 = vmatmul.mubr.msk.f32.gmra.mrb[12].mxu0 %vm869_vm4, %v4428_v31  ;;  %3497 = vmatprep.mubr.msk.f32.mxu1 %vm869_vm4, %v1430_v42 }
 0x171   : > { %3461 = vmatprep.mubr.msk.f32.mxu0 %vm869_vm4, %v4449_v51 }
 0x173   : > { %3498 = vmatmul.mubr.msk.f32.gmra.mrb[14].mxu1 %vm869_vm4, %v1861_v43 }
 0x174   : > { %3462 = vmatmul.mubr.msk.f32.gmra.mrb[14].mxu0 %vm869_vm4, %v4460_v18  ;;  %3506 = vmatprep.mubr.msk.f32.mxu1 %vm869_vm4, %v4492_v53 }
 0x175   : > { %3470 = vmatprep.mubr.msk.f32.mxu0 %vm869_vm4, %v5305_v44 }
 0x177   : > { %3507 = vmatmul.mubr.msk.f32.vlgmr.msra.gmra.mrb[8].mxu1 %vm869_vm4, %v4504_v19 }
 0x178   : > { %3471 = vmatmul.mubr.msk.f32.vlgmr.msra.gmra.mrb[8].mxu0 %vm869_vm4, %v4408_v55  ;;  %3509 = vmatprep.mubr.msk.f32.mxu1 %vm869_vm4, %v4594_v37 }
 0x179   : > { %3473 = vmatprep.mubr.msk.f32.mxu0 %vm869_vm4, %v4405_v12  ;;  %3583 = vmatpush3.bf16.msra.mxu1 %v4391_v23 }
 0x17a   : > { %3522 = vmatprep.subr.mxu1 %v4547_v3 }
 0x17b   : > { %3510 = vmatmul.mubr.msk.f32.gmra.mrb[10].mxu1 %vm869_vm4, %v4605_v57 }
 0x17c   : > { %3474 = vmatmul.mubr.msk.f32.gmra.mrb[10].mxu0 %vm869_vm4, %v4431_v15  ;;  %3512 = vmatprep.mubr.msk.f32.mxu1 %vm869_vm4, %v4641_v26 }
 0x17d   : > { %3476 = vmatprep.mubr.msk.f32.mxu0 %vm869_vm4, %v4428_v31  ;;  %3523 = vmatpush3.msra.mxu1 %v4547_v3 }
 0x17f   : > { %3513 = vmatmul.mubr.msk.f32.gmra.mrb[12].mxu1 %vm869_vm4, %v4647_v35 }
 0x180   : > { %3477 = vmatmul.mubr.msk.f32.gmra.mrb[12].mxu0 %vm869_vm4, %v4449_v51  ;;  %3515 = vmatprep.mubr.msk.f32.mxu1 %vm869_vm4, %v4677_v2 }
 0x181   : > { %3479 = vmatprep.mubr.msk.f32.mxu0 %vm869_vm4, %v4460_v18 }
 0x183   : > { %3516 = vmatmul.mubr.msk.f32.gmra.mrb[14].mxu1 %vm869_vm4, %v4683_v0 }
 0x184   : > { %3480 = vmatmul.mubr.msk.f32.gmra.mrb[14].mxu0 %vm869_vm4, %v4536_v24  ;;  %3524 = vmatprep.mubr.msk.f32.mxu1 %vm869_vm4, %v4504_v19 }
 0x187   : > { %3525 = vmatmul.mubr.msk.f32.vlgmr.msra.gmra.mrb[8].mxu1 %vm869_vm4, %v4594_v37 }
 0x188   : > { %3527 = vmatprep.mubr.msk.f32.mxu1 %vm869_vm4, %v4605_v57 }
 0x18b   : > { %3528 = vmatmul.mubr.msk.f32.gmra.mrb[10].mxu1 %vm869_vm4, %v4641_v26 }
 0x18c   : > { %3530 = vmatprep.mubr.msk.f32.mxu1 %vm869_vm4, %v4647_v35 }
 0x18f   : > { %3531 = vmatmul.mubr.msk.f32.gmra.mrb[12].mxu1 %vm869_vm4, %v4677_v2 }
 0x190   : > { %3533 = vmatprep.mubr.msk.f32.mxu1 %vm869_vm4, %v4683_v0 }
 0x193   : > { %3534 = vmatmul.mubr.msk.f32.gmra.mrb[14].mxu1 %vm869_vm4, %v4702_v50 }
 0x1ef   : > { %v4944_v14 = vpop.f32.mrb[0].mxu0 }
 0x1f0   : > { %v2624_v23 = vsel %vm700_vm2, %v4944_v14, 0.0  ;;  %v4948_v54 = vpop.f32.mrb[1].mxu0 }
 0x1f1   : > { %v2623_v12 = vsel %vm700_vm2, %v4948_v54, 0.0 }
 0x1f2   : > { %v2625_v55 = vadd.f32 %v2624_v23, %v2623_v12 }
 0x1f3   : > { %v4952_v31 = vpop.f32.mrb[2].mxu0 }
 0x1f4   : > { %v4954_v15 = vpop.f32.mrb[3].mxu0  ;;  %v2628_v53 = vsel %vm700_vm2, %v4952_v31, 0.0 }
 0x1f5   : > { %v2626_v51 = vsel %vm700_vm2, %v4954_v15, 0.0 }
 0x1f6   : > { %v2627_v18 = vadd.f32 %v2626_v51, %v2625_v55 }
 0x1f7   : > { %v4960_v19 = vpop.f32.mrb[4].mxu0 }
 0x1f8   : > { %v4962_v24 = vpop.f32.mrb[5].mxu0  ;;  %v2629_v3 = vadd.f32 %v2628_v53, %v2627_v18  ;;  %v2632_v26 = vsel %vm700_vm2, %v4960_v19, 0.0 }
 0x1f9   : > { %v2630_v37 = vsel %vm700_vm2, %v4962_v24, 0.0 }
 0x1fa   : > { %v2631_v57 = vadd.f32 %v2630_v37, %v2629_v3 }
 0x1fc   : > { %v2633_v35 = vadd.f32 %v2632_v26, %v2631_v57 }
 0x227   : > { %v4968_v2 = vpop.f32.mrb[6].mxu0 }
 0x228   : > { %v4970_v0 = vpop.f32.mrb[7].mxu0  ;;  %v2636_v6 = vsel %vm700_vm2, %v4968_v2, 0.0 }
 0x229   : > { %v2634_v9 = vsel %vm700_vm2, %v4970_v0, 0.0 }
 0x22a   : > { %v2635_v50 = vadd.f32 %v2634_v9, %v2633_v35  ;;  %v4974_v58 = vpop.f32.mrb[0].mxu1 }
 0x22b   : > { %v4978_v46 = vpop.f32.mrb[1].mxu1  ;;  %v2640_v27 = vsel %vm700_vm2, %v4974_v58, 0.0 }
 0x22c   : > { %v2637_v40 = vadd.f32 %v2636_v6, %v2635_v50  ;;  %v2638_v20 = vsel %vm700_vm2, %v4978_v46, 0.0 }
 0x22e   : > { %v2639_v41 = vadd.f32 %v2638_v20, %v2637_v40  ;;  %v4982_v7 = vpop.f32.mrb[2].mxu1 }
 0x22f   : > { %v4986_v5 = vpop.f32.mrb[3].mxu1  ;;  %v2644_v45 = vsel %vm700_vm2, %v4982_v7, 0.0 }
 0x230   : > { %v2641_v34 = vadd.f32 %v2640_v27, %v2639_v41  ;;  %v2642_v25 = vsel %vm700_vm2, %v4986_v5, 0.0 }
 0x232   : > { %v2643_v47 = vadd.f32 %v2642_v25, %v2641_v34  ;;  %v4990_v61 = vpop.f32.mrb[4].mxu1 }
 0x233   : > { %v4994_v13 = vpop.f32.mrb[5].mxu1  ;;  %v2648_v16 = vsel %vm700_vm2, %v4990_v61, 0.0 }
 0x234   : > { %v2645_v28 = vadd.f32 %v2644_v45, %v2643_v47  ;;  %v2646_v60 = vsel %vm700_vm2, %v4994_v13, 0.0 }
 0x236   : > { %v2647_v17 = vadd.f32 %v2646_v60, %v2645_v28  ;;  %v4998_v30 = vpop.f32.mrb[6].mxu1 }
 0x237   : > { %v5002_v39 = vpop.f32.mrb[7].mxu1  ;;  %v2652_v8 = vsel %vm700_vm2, %v4998_v30, 0.0 }
 0x238   : > { %v2649_v52 = vadd.f32 %v2648_v16, %v2647_v17  ;;  %v2650_v1 = vsel %vm700_vm2, %v5002_v39, 0.0 }
 0x23a   : > { %v2651_v49 = vadd.f32 %v2650_v1, %v2649_v52 }
 0x23c   : > { %v2653_v32 = vadd.f32 %v2652_v8, %v2651_v49 }
 0x24b   : > { %v5008_v21 = vpop.f32.mrb[8].mxu0 }
 0x24c   : > { %v3671_v33 = vpack.i.bf16 %v5008_v21, %v4944_v14  ;;  %v5012_v42 = vpop.f32.mrb[9].mxu0  ;;  %v2656_v59 = vsel %vm700_vm2, %v5008_v21, 0.0 }
 0x24d   : > { %v3669_v22 = vpack.i.bf16 %v5012_v42, %v4948_v54  ;;  %v2654_v48 = vsel %vm700_vm2, %v5012_v42, 0.0 }
 0x24e   : > { %v2655_v11 = vadd.f32 %v2654_v48, %v2653_v32 }
 0x24f   : > { %3670 = vxpose.xlu1.b32.start [1/16] (narrow) %v3669_v22, 8  ;;  %v5020_v38 = vpop.f32.mrb[10].mxu0 }
 0x250   : > { %v3675_v4 = vpack.i.bf16 %v5020_v38, %v4952_v31  ;;  %v5024_v63 = vpop.f32.mrb[11].mxu0  ;;  %v2657_v62 = vadd.f32 %v2656_v59, %v2655_v11  ;;  %v2660_v43 = vsel %vm700_vm2, %v5020_v38, 0.0 }
 0x251   : > { %v3673_v36 = vpack.i.bf16 %v5024_v63, %v4954_v15  ;;  %v2658_v10 = vsel %vm700_vm2, %v5024_v63, 0.0 }
 0x252   : > { %v2659_v56 = vadd.f32 %v2658_v10, %v2657_v62 }
 0x253   : > { %3672 = vxpose.xlu1.b32.cont [2/16] (narrow) %v3671_v33, 8  ;;  %v5032_v29 = vpop.f32.mrb[12].mxu0 }
 0x254   : > { %v3679_v44 = vpack.i.bf16 %v5032_v29, %v4960_v19  ;;  %v5036_v23 = vpop.f32.mrb[13].mxu0  ;;  %v2661_v12 = vadd.f32 %v2660_v43, %v2659_v56  ;;  %v2664_v53 = vsel %vm700_vm2, %v5032_v29, 0.0 }
 0x255   : > { %v3677_v55 = vpack.i.bf16 %v5036_v23, %v4962_v24  ;;  %v2662_v51 = vsel %vm700_vm2, %v5036_v23, 0.0 }
 0x256   : > { %v2663_v18 = vadd.f32 %v2662_v51, %v2661_v12 }
 0x257   : > { %3674 = vxpose.xlu1.b32.cont [3/16] (narrow) %v3673_v36, 8  ;;  %v5044_v3 = vpop.f32.mrb[14].mxu0 }
 0x258   : > { %v3683_v37 = vpack.i.bf16 %v5044_v3, %v4968_v2  ;;  %v5048_v57 = vpop.f32.mrb[15].mxu0  ;;  %v2665_v26 = vadd.f32 %v2664_v53, %v2663_v18  ;;  %v2668_v40 = vsel %vm700_vm2, %v5044_v3, 0.0 }
 0x259   : > { %v3681_v35 = vpack.i.bf16 %v5048_v57, %v4970_v0  ;;  %v2666_v9 = vsel %vm700_vm2, %v5048_v57, 0.0 }
 0x25a   : > { %v2667_v50 = vadd.f32 %v2666_v9, %v2665_v26  ;;  %v5054_v6 = vpop.f32.mrb[8].mxu1 }
 0x25b   : > { %v3687_v20 = vpack.i.bf16 %v5054_v6, %v4974_v58  ;;  %v5060_v41 = vpop.f32.mrb[9].mxu1  ;;  %3676 = vxpose.xlu1.b32.cont [4/16] (narrow) %v3675_v4, 8  ;;  %v2672_v28 = vsel %vm700_vm2, %v5054_v6, 0.0 }
 0x25c   : > { %v2669_v27 = vadd.f32 %v2668_v40, %v2667_v50  ;;  %v3685_v34 = vpack.i.bf16 %v5060_v41, %v4978_v46  ;;  %v2670_v25 = vsel %vm700_vm2, %v5060_v41, 0.0 }
 0x25e   : > { %v2671_v47 = vadd.f32 %v2670_v25, %v2669_v27  ;;  %v5066_v45 = vpop.f32.mrb[10].mxu1 }
 0x25f   : > { %v3691_v60 = vpack.i.bf16 %v5066_v45, %v4982_v7  ;;  %v5072_v17 = vpop.f32.mrb[11].mxu1  ;;  %3678 = vxpose.xlu1.b32.cont [5/16] (narrow) %v3677_v55, 8  ;;  %v2676_v32 = vsel %vm700_vm2, %v5066_v45, 0.0 }
 0x260   : > { %v3689_v16 = vpack.i.bf16 %v5072_v17, %v4986_v5  ;;  %v2673_v52 = vadd.f32 %v2672_v28, %v2671_v47  ;;  %v2674_v1 = vsel %vm700_vm2, %v5072_v17, 0.0 }
 0x262   : > { %v2675_v49 = vadd.f32 %v2674_v1, %v2673_v52  ;;  %v5078_v8 = vpop.f32.mrb[12].mxu1 }
 0x263   : > { %v3695_v33 = vpack.i.bf16 %v5078_v8, %v4990_v61  ;;  %v5084_v22 = vpop.f32.mrb[13].mxu1  ;;  %3680 = vxpose.xlu1.b32.cont [6/16] (narrow) %v3679_v44, 8  ;;  %v2680_v36 = vsel %vm700_vm2, %v5078_v8, 0.0 }
 0x264   : > { %v3693_v48 = vpack.i.bf16 %v5084_v22, %v4994_v13  ;;  %v2677_v11 = vadd.f32 %v2676_v32, %v2675_v49  ;;  %v2678_v59 = vsel %vm700_vm2, %v5084_v22, 0.0 }
 0x266   : > { %v2679_v4 = vadd.f32 %v2678_v59, %v2677_v11  ;;  %v5090_v62 = vpop.f32.mrb[14].mxu1 }
 0x267   : > { %v3699_v10 = vpack.i.bf16 %v5090_v62, %v4998_v30  ;;  %v5096_v56 = vpop.f32.mrb[15].mxu1  ;;  %3682 = vxpose.xlu1.b32.cont [7/16] (narrow) %v3681_v35, 8  ;;  %v2684_v51 = vsel %vm700_vm2, %v5090_v62, 0.0 }
 0x268   : > { %v3697_v43 = vpack.i.bf16 %v5096_v56, %v5002_v39  ;;  %v2681_v44 = vadd.f32 %v2680_v36, %v2679_v4  ;;  %v2682_v12 = vsel %vm700_vm2, %v5096_v56, 0.0 }
 0x26a   : > { %v2683_v55 = vadd.f32 %v2682_v12, %v2681_v44 }
 0x26b   : > { %3684 = vxpose.xlu1.b32.cont [8/16] (narrow) %v3683_v37, 8 }
 0x26c   : > { %v2685_v18 = vadd.f32 %v2684_v51, %v2683_v55 }
 0x26e   : > { %v2686_v53 = vrot.slane %v2685_v18, 4 }
 0x26f   : > { %3686 = vxpose.xlu1.b32.cont [9/16] (narrow) %v3685_v34, 8 }
 0x270   : > { %v2687_v26 = vadd.f32 %v2686_v53, %v2685_v18 }
 0x272   : > { %v2688_v9 = vrot.slane %v2687_v26, 2 }
 0x273   : > { %3688 = vxpose.xlu1.b32.cont [10/16] (narrow) %v3687_v20, 8 }
 0x274   : > { %v2689_v50 = vadd.f32 %v2688_v9, %v2687_v26 }
 0x276   : > { %v2690_v35 = vrot.slane %v2689_v50, 1 }
 0x277   : > { %3690 = vxpose.xlu1.b32.cont [11/16] (narrow) %v3689_v16, 8 }
 0x278   : > { %v2691_v40 = vadd.f32 %v2690_v35, %v2689_v50 }
 0x27a   : > { %v5104_v27 = vmul.f32 0.00390625, %v2691_v40 }
 0x27b   : > { %3692 = vxpose.xlu1.b32.cont [12/16] (narrow) %v3691_v60, 8 }
 0x27c   : > { %v2694_v25 = vsub.f32 %v4948_v54, %v5104_v27  ;;  %v2695_v37 = vsub.f32 %v4944_v14, %v5104_v27  ;;  %v2696_v34 = vsub.f32 %v4954_v15, %v5104_v27  ;;  %v2697_v20 = vsub.f32 %v4952_v31, %v5104_v27 }
 0x27d   : > { %v2698_v60 = vsub.f32 %v4962_v24, %v5104_v27  ;;  %v2699_v54 = vsub.f32 %v4960_v19, %v5104_v27  ;;  %v2700_v49 = vsub.f32 %v4970_v0, %v5104_v27  ;;  %v2701_v24 = vsub.f32 %v4968_v2, %v5104_v27 }
 0x27e   : > { %v2726_v47 = vmul.f32 %v2694_v25, %v2694_v25  ;;  %v2727_v28 = vmul.f32 %v2695_v37, %v2695_v37  ;;  %v2728_v16 = vmul.f32 %v2696_v34, %v2696_v34  ;;  %v2729_v52 = vmul.f32 %v2697_v20, %v2697_v20 }
 0x27f   : > { %3694 = vxpose.xlu1.b32.cont [13/16] (narrow) %v3693_v48, 8  ;;  %v2730_v31 = vmul.f32 %v2698_v60, %v2698_v60  ;;  %v2731_v48 = vmul.f32 %v2699_v54, %v2699_v54  ;;  %v2702_v59 = vsub.f32 %v4978_v46, %v5104_v27  ;;  %v2732_v4 = vmul.f32 %v2700_v49, %v2700_v49 }
 0x280   : > { %v2758_v14 = vsel %vm700_vm2, %v2726_v47, 0.0  ;;  %v2759_v1 = vsel %vm700_vm2, %v2727_v28, 0.0  ;;  %v2761_v32 = vsel %vm700_vm2, %v2728_v16, 0.0  ;;  %v2763_v11 = vsel %vm700_vm2, %v2729_v52, 0.0 }
 0x281   : > { %v2760_v15 = vadd.f32 %v2759_v1, %v2758_v14  ;;  %v2765_v36 = vsel %vm700_vm2, %v2730_v31, 0.0  ;;  %v2703_v0 = vsub.f32 %v4974_v58, %v5104_v27  ;;  %v2767_v44 = vsel %vm700_vm2, %v2731_v48, 0.0 }
 0x282   : > { %v2704_v2 = vsub.f32 %v4986_v5, %v5104_v27  ;;  %v2734_v55 = vmul.f32 %v2702_v59, %v2702_v59  ;;  %v2769_v51 = vsel %vm700_vm2, %v2732_v4, 0.0  ;;  %v2705_v46 = vsub.f32 %v4982_v7, %v5104_v27 }
 0x283   : > { %3696 = vxpose.xlu1.b32.cont [14/16] (narrow) %v3695_v33, 8  ;;  %v2762_v33 = vadd.f32 %v2761_v32, %v2760_v15  ;;  %v2735_v53 = vmul.f32 %v2703_v0, %v2703_v0  ;;  %v2706_v58 = vsub.f32 %v4994_v13, %v5104_v27  ;;  %v2707_v5 = vsub.f32 %v4990_v61, %v5104_v27 }
 0x284   : > { %v2736_v50 = vmul.f32 %v2704_v2, %v2704_v2  ;;  %v2773_v35 = vsel %vm700_vm2, %v2734_v55, 0.0  ;;  %v2737_v25 = vmul.f32 %v2705_v46, %v2705_v46  ;;  %v2708_v7 = vsub.f32 %v5002_v39, %v5104_v27 }
 0x285   : > { %v2764_v19 = vadd.f32 %v2763_v11, %v2762_v33  ;;  %v2775_v37 = vsel %vm700_vm2, %v2735_v53, 0.0  ;;  %v2738_v20 = vmul.f32 %v2706_v58, %v2706_v58  ;;  %v2709_v13 = vsub.f32 %v4998_v30, %v5104_v27 }
 0x286   : > { %v2777_v47 = vsel %vm700_vm2, %v2736_v50, 0.0  ;;  %v2739_v60 = vmul.f32 %v2707_v5, %v2707_v5  ;;  %v2779_v16 = vsel %vm700_vm2, %v2737_v25, 0.0  ;;  %v2710_v61 = vsub.f32 %v5012_v42, %v5104_v27 }
 0x287   : > { %3698 = vxpose.xlu1.b32.cont [15/16] (narrow) %v3697_v43, 8  ;;  %v2733_v43 = vmul.f32 %v2701_v24, %v2701_v24  ;;  %v2740_v52 = vmul.f32 %v2708_v7, %v2708_v7  ;;  %v2781_v14 = vsel %vm700_vm2, %v2738_v20, 0.0  ;;  %v2711_v39 = vsub.f32 %v5008_v21, %v5104_v27 }
 0x288   : > { %v2741_v15 = vmul.f32 %v2709_v13, %v2709_v13  ;;  %v2783_v49 = vsel %vm700_vm2, %v2739_v60, 0.0  ;;  %v2712_v30 = vsub.f32 %v5024_v63, %v5104_v27  ;;  %v2742_v32 = vmul.f32 %v2710_v61, %v2710_v61 }
 0x289   : > { %v2771_v26 = vsel %vm700_vm2, %v2733_v43, 0.0  ;;  %v2785_v33 = vsel %vm700_vm2, %v2740_v52, 0.0  ;;  %v2713_v42 = vsub.f32 %v5020_v38, %v5104_v27  ;;  %v2743_v48 = vmul.f32 %v2711_v39, %v2711_v39 }
 0x28a   : > { %v2787_v11 = vsel %vm700_vm2, %v2741_v15, 0.0  ;;  %v2714_v21 = vsub.f32 %v5036_v23, %v5104_v27  ;;  %v2744_v59 = vmul.f32 %v2712_v30, %v2712_v30  ;;  %v2789_v4 = vsel %vm700_vm2, %v2742_v32, 0.0 }
 0x28b   : > { %3700 = vxpose.xlu1.b32.end [16/16] (narrow) %v3699_v10, 8  ;;  %v2766_v10 = vadd.f32 %v2765_v36, %v2764_v19  ;;  %v2715_v63 = vsub.f32 %v5032_v29, %v5104_v27  ;;  %v2791_v0 = vsel %vm700_vm2, %v2743_v48, 0.0  ;;  %v2716_v38 = vsub.f32 %v5048_v57, %v5104_v27 }
 0x28c   : > { %v2717_v23 = vsub.f32 %v5044_v3, %v5104_v27  ;;  %v2718_v29 = vsub.f32 %v5060_v41, %v5104_v27  ;;  %v2719_v57 = vsub.f32 %v5054_v6, %v5104_v27  ;;  %v2720_v3 = vsub.f32 %v5072_v17, %v5104_v27 }
 0x28d   : > { %v2768_v12 = vadd.f32 %v2767_v44, %v2766_v10  ;;  %v2745_v10 = vmul.f32 %v2713_v42, %v2713_v42  ;;  %v2746_v44 = vmul.f32 %v2714_v21, %v2714_v21  ;;  %v2747_v55 = vmul.f32 %v2715_v63, %v2715_v63 }
 0x28e   : > { %v2748_v46 = vmul.f32 %v2716_v38, %v2716_v38  ;;  %v2721_v41 = vsub.f32 %v5066_v45, %v5104_v27  ;;  %v2751_v25 = vmul.f32 %v2719_v57, %v2719_v57  ;;  %v2722_v6 = vsub.f32 %v5084_v22, %v5104_v27 }
 0x28f   : > { %v2770_v18 = vadd.f32 %v2769_v51, %v2768_v12  ;;  %v2793_v12 = vsel %vm700_vm2, %v2744_v59, 0.0  ;;  %v2795_v51 = vsel %vm700_vm2, %v2745_v10, 0.0  ;;  %v2797_v53 = vsel %vm700_vm2, %v2746_v44, 0.0 }
 0x290   : > { %v2799_v58 = vsel %vm700_vm2, %v2747_v55, 0.0  ;;  %v2752_v7 = vmul.f32 %v2720_v3, %v2720_v3  ;;  %v2723_v17 = vsub.f32 %v5078_v8, %v5104_v27  ;;  %v2807_v13 = vsel %vm700_vm2, %v2751_v25, 0.0 }
 0x291   : > { %v2772_v9 = vadd.f32 %v2771_v26, %v2770_v18  ;;  %v2724_v45 = vsub.f32 %v5096_v56, %v5104_v27  ;;  %v2725_v22 = vsub.f32 %v5090_v62, %v5104_v27 }
 0x292   : > { %v2755_v52 = vmul.f32 %v2723_v17, %v2723_v17 }
 0x293   : > { %v2774_v40 = vadd.f32 %v2773_v35, %v2772_v9  ;;  %v2749_v9 = vmul.f32 %v2717_v23, %v2717_v23  ;;  %v2750_v35 = vmul.f32 %v2718_v29, %v2718_v29  ;;  %v2756_v8 = vmul.f32 %v2724_v45, %v2724_v45 }
 0x294   : > { %v2815_v56 = vsel %vm700_vm2, %v2755_v52, 0.0 }
 0x295   : > { %v2776_v34 = vadd.f32 %v2775_v37, %v2774_v40  ;;  %v2801_v40 = vsel %vm700_vm2, %v2748_v46, 0.0  ;;  %v2803_v37 = vsel %vm700_vm2, %v2749_v9, 0.0  ;;  %v2805_v20 = vsel %vm700_vm2, %v2750_v35, 0.0 }
 0x296   : > { %v2817_v30 = vsel %vm700_vm2, %v2756_v8, 0.0 }
 0x297   : > { %v2778_v28 = vadd.f32 %v2777_v47, %v2776_v34 }
 0x299   : > { %v2780_v54 = vadd.f32 %v2779_v16, %v2778_v28  ;;  %v2753_v28 = vmul.f32 %v2721_v41, %v2721_v41  ;;  %v2754_v16 = vmul.f32 %v2722_v6, %v2722_v6 }
 0x29b   : > { %v2782_v1 = vadd.f32 %v2781_v14, %v2780_v54  ;;  %v2809_v54 = vsel %vm700_vm2, %v2752_v7, 0.0  ;;  %v2811_v14 = vsel %vm700_vm2, %v2753_v28, 0.0  ;;  %v2813_v39 = vsel %vm700_vm2, %v2754_v16, 0.0 }
 0x29d   : > { %v2784_v31 = vadd.f32 %v2783_v49, %v2782_v1  ;;  %v2757_v49 = vmul.f32 %v2725_v22, %v2725_v22 }
 0x29f   : > { %v2786_v24 = vadd.f32 %v2785_v33, %v2784_v31  ;;  %v2819_v33 = vsel %vm700_vm2, %v2757_v49, 0.0 }
 0x2a1   : > { %v2788_v19 = vadd.f32 %v2787_v11, %v2786_v24 }
 0x2a3   : > { %v2790_v36 = vadd.f32 %v2789_v4, %v2788_v19 }
 0x2a5   : > { %v2792_v43 = vadd.f32 %v2791_v0, %v2790_v36 }
 0x2a7   : > { %v2794_v2 = vadd.f32 %v2793_v12, %v2792_v43 }
 0x2a9   : > { %v2796_v18 = vadd.f32 %v2795_v51, %v2794_v2 }
 0x2ab   : > { %v2798_v26 = vadd.f32 %v2797_v53, %v2796_v18 }
 0x2ad   : > { %v2800_v50 = vadd.f32 %v2799_v58, %v2798_v26 }
 0x2af   : > { %v2802_v5 = vadd.f32 %v2801_v40, %v2800_v50 }
 0x2b1   : > { %v2804_v34 = vadd.f32 %v2803_v37, %v2802_v5 }
 0x2b3   : > { %v2806_v47 = vadd.f32 %v2805_v20, %v2804_v34 }
 0x2b5   : > { %v2808_v60 = vadd.f32 %v2807_v13, %v2806_v47 }
 0x2b7   : > { %v2810_v61 = vadd.f32 %v2809_v54, %v2808_v60 }
 0x2b9   : > { %v2812_v1 = vadd.f32 %v2811_v14, %v2810_v61 }
 0x2bb   : > { %v2814_v15 = vadd.f32 %v2813_v39, %v2812_v1 }
 0x2bd   : > { %v2816_v31 = vadd.f32 %v2815_v56, %v2814_v15 }
 0x2bf   : > { %v2818_v32 = vadd.f32 %v2817_v30, %v2816_v31 }
 0x2c1   : > { %v2820_v62 = vadd.f32 %v2819_v33, %v2818_v32 }
 0x2c3   : > { %v2821_v24 = vrot.slane %v2820_v62, 4 }
 0x2c5   : > { %v2822_v42 = vadd.f32 %v2821_v24, %v2820_v62 }
 0x2c7   : > { %v2823_v48 = vrot.slane %v2822_v42, 2 }
 0x2c9   : > { %v2824_v59 = vadd.f32 %v2823_v48, %v2822_v42 }
 0x2cb   : > { %v2825_v36 = vrot.slane %v2824_v59, 1 }
 0x2cd   : > { %v2826_v63 = vadd.f32 %v2825_v36, %v2824_v59 }
 0x2cf   : > { %v3701_v11 = vpop.trf.xlu1  ;;  %v2827_v10 = vsel %vm437_vm0, %v5104_v27, %v2826_v63 }
 0x2d0   : > { %v3705_v19 = vunpack.i.h.bf16 %v3701_v11  ;;  %v3702_v21 = vunpack.i.l.bf16 %v3701_v11  ;;  %2829 = vst.msk [vmem:[%s235_s9] sm:$0x3] %vm2828_vm5, %v2827_v10 }
 0x2d2   : > { %v3108_v4 = vpack.c.bf16 %v3705_v19, %v3702_v21 }
 0x2d4   : > { %2902 = vst [vmem:[%s231_s30] sm:$0xff] %v3108_v4 }
 0x2d5 PF: > { %s16_s18 = sadd.s32 1, %s3713_s18  }
 0x2d6   : > { %p13_p4 = scmp.ge.s32.totalorder %s16_s18, 4  }
 0x2d8   :  { %15 = sbr.rel (!%p13_p4) target bundleno = 1 (0x1), region = 80 }

// kernel: stack_decoder_skip_forward.3
= control target key start
LH: loop header
LB: loop body
LE: loop exit
PB: predicated region body
PF: predicated region fallthrough
CT: control target
= control target key end

     0   :  { %s5582_s27 = smov 0   ;;  %s7899_s0 = inlined_call_operand.vmem [shape: f32[2,8,8,16], index: 0, kind: input, shape index: {}]   ;;  %s7900_s1 = inlined_call_operand.vmem [shape: f32[2,32,8,8], index: 1, kind: input, shape index: {}]   ;;  %s7901_s2 = inlined_call_operand.vmem [shape: f32[4,16,8], index: 2, kind: input, shape index: {}]   ;;  %s7902_s3 = inlined_call_operand.vmem [shape: f32[1,8], index: 3, kind: input, shape index: {}]   ;;  %s7903_s4 = inlined_call_operand.vmem [shape: f32[3,48,8], index: 4, kind: input, shape index: {}]   ;;  %s7904_s5 = inlined_call_operand.vmem [shape: f32[8,8], index: 5, kind: input, shape index: {}]   ;;  %s7905_s6 = inlined_call_operand.vmem [shape: bf16[2,256,8], index: 6, kind: output, shape index: {0}]   ;;  %s7906_s7 = inlined_call_operand.vmem [shape: bf16[2,8,256], index: 7, kind: output, shape index: {1}]   ;;  %s7907_s8 = inlined_call_operand.vmem [shape: f32[2,4,8], index: 8, kind: output, shape index: {2}]  }
   0x1 LB: > { %s4334_s28 = sadd.s32 4294967295, %s5531_s27   ;;  %p4338_p0 = scmp.ge.s32.totalorder %s5531_s27, 1  ;;  %s5531_s27 = sphi %s5582_s27, %s19_s27  }
   0x2   : > { %p277_p1 = scmp.lt.s32.totalorder %s5531_s27, 3 }
   0x4   : > { %p278_p2 = pnand %p4338_p0, %p277_p1 }
   0x6   : > { %281 = sbr.rel (%p278_p2) target bundleno = 916 (0x394), region = 44 }
   0xd   : > { %v712_v0 = vld [vmem:[%s7901_s2] sm:$0xff]  ;;  %v713_v1 = vld [vmem:[%s7901_s2 + $0x8] sm:$0xff]  ;;  %p325_p3 = scmp.lt.s32.totalorder %s4334_s28, 1  ;;  %v4389_v2 = vld [vmem:[%s7901_s2 + $0x10] sm:$0xff]  ;;  %vm714_vm0 = vcmask 130048   ;;  %s5533_s29 = smov 8  }
   0xe   : > { %v5242_v3 = vpack.c.bf16 %v713_v1, %v712_v0  ;;  %v4390_v4 = vld [vmem:[%s7901_s2 + $0x18] sm:$0xff]  ;;  %v4399_v6 = vld [vmem:[%s7901_s2 + $0x20] sm:$0xff]  ;;  %v4400_v7 = vld [vmem:[%s7901_s2 + $0x28] sm:$0xff]  ;;  %v5534_v46 = vmov 0.0   ;;  %vm918_vm1 = vcmask 1040384   ;;  %vm1517_vm2 = vcmask 1046528  }
   0xf   : > { %s8133_s28 = smov (!%p325_p3, %s4334_s28), 1  ;;  %v5246_v5 = vpack.c.bf16 %v4390_v4, %v4389_v2  ;;  %v5250_v11 = vpack.c.bf16 %v4400_v7, %v4399_v6  ;;  %v4409_v23 = vld [vmem:[%s7901_s2 + $0x30] sm:$0xff]  ;;  %v4410_v24 = vld [vmem:[%s7901_s2 + $0x38] sm:$0xff]  ;;  %v908_v47 = vrot.slane %v5534_v46, 7  ;;  %s5535_s12 = smov 16   ;;  %vm382_vm3 = vcmask 64512  }
  0x10   : > { %5243 = vmatprep.subr.bf16.mxu1 %v5242_v3  ;;  %s4562_s19 = sshll.u32 %s8133_s28, 6  ;;  %s4563_s20 = sshll.u32 %s8133_s28, 8  ;;  %v5254_v27 = vpack.c.bf16 %v4410_v24, %v4409_v23  ;;  %v381_v61 = vld [vmem:[%s7904_s5] sm:$0xff]  ;;  %vm1633_vm4 = vcmask 261120   ;;  %vm1799_vm5 = vcmask 392192   ;;  %vm3968_vm6 = vcmask 60416  }
  0x11   : > { %5245 = vmatpush3.bf16.msra.mxu1 %v5242_v3  ;;  %s5615_s23 = scalar_lea.vmem %s7899_s0, %s4562_s19  ;;  %s5620_s26 = scalar_lea.vmem %s7900_s1, %s4563_s20  ;;  %v5845_v50 = vsel %vm918_vm1, 0.0, %v908_v47  ;;  %v5848_v51 = vsel %vm918_vm1, %v908_v47, 0.0  ;;  %4840 = vmatprep.subr.mxu0 %v381_v61  ;;  %v5916_v0 = vld [vmem:[%s7902_s3] ss:$0 sm:$0xff]  ;;  %vm3964_vm7 = vcmask 1041408   ;;  %vm3966_vm8 = vcmask 1042432  }
  0x12   : > { %5247 = vmatprep.subr.bf16.mxu1 %v5246_v5  ;;  %v5623_v8 = vld [vmem:[%s5615_s23] sm:$0xff]  ;;  %v5626_v9 = vld [vmem:[%s5615_s23 + $0x8] sm:$0xff]  ;;  %v5629_v10 = vld [vmem:[%s5615_s23 + $0x10] sm:$0xff]  ;;  %7991 = vst [vmem:[#allocation2_spill] sm:$0xff] %v5848_v51  ;;  %v1518_v53 = vrot.slane %v5845_v50, 1  ;;  %v1519_v54 = vrot.slane %v5848_v51, 1  ;;  %4841 = vmatpush3.msra.mxu0 %v381_v61 }
  0x13   : > { %4894 = vmatprep.mubr.msk.f32.mxu1 %vm714_vm0, %v5623_v8  ;;  %v5636_v12 = vld [vmem:[%s5620_s26] sm:$0xff]  ;;  %v5641_v13 = vld [vmem:[%s5615_s23 + $0x18] sm:$0xff]  ;;  %v5652_v16 = vld [vmem:[%s5620_s26 + $0x8] sm:$0xff]  ;;  %s5536_s13 = smov 32   ;;  %s4564_s16 = sshll.u32 %s8133_s28, 7 }
  0x14   : > { %4895 = vmatmul.mubr.msk.f32.vlgmr.msra.gmra.mrb[0].mxu1 %vm714_vm0, %v5626_v9  ;;  %v5644_v14 = vld [vmem:[%s5620_s26 + $0x40] sm:$0xff]  ;;  %859 = vrot.lane.b32.xlu0 %v5636_v12, %s5533_s29  ;;  %v5659_v17 = vld [vmem:[%s5620_s26 + $0x48] sm:$0xff]  ;;  %v5667_v19 = vld [vmem:[%s5615_s23 + $0x30] sm:$0xff]  ;;  %v1520_v57 = vsel %vm1517_vm2, %v1518_v53, %v1519_v54  ;;  %s7526_s19 = scalar_lea.vmem %s7905_s6, %s4564_s16  ;;  %s4565_s20 = sshll.u32 %s8133_s28, 3 }
  0x15   : > { %4897 = vmatprep.mubr.msk.f32.mxu1 %vm714_vm0, %v5629_v10  ;;  %5249 = vmatpush3.bf16.msra.mxu1 %v5246_v5  ;;  %v5647_v15 = vld [vmem:[%s5615_s23 + $0x20] sm:$0xff]  ;;  %v5664_v18 = vld [vmem:[%s5615_s23 + $0x28] sm:$0xff]  ;;  %v5674_v20 = vld [vmem:[%s5620_s26 + $0x10] sm:$0xff]  ;;  %v5478_v59 = vpack.i.bf16 %v5845_v50, %v1520_v57  ;;  %v5483_v60 = vpack.i.bf16 %v1519_v54, %v1520_v57  ;;  %s4347_s24 = sshll.u32 %s8133_s28, 2 }
  0x16   : > { %5251 = vmatprep.subr.bf16.mxu1 %v5250_v11  ;;  %1053 = vrot.lane.b32.xlu1 %v5644_v14, %s5533_s29  ;;  %v5679_v21 = vld [vmem:[%s5620_s26 + $0x18] sm:$0xff]  ;;  %v5697_v25 = vld [vmem:[%s5620_s26 + $0x50] sm:$0xff]  ;;  %v5711_v28 = vld [vmem:[%s5620_s26 + $0x20] sm:$0xff] }
  0x17   : > { %v5684_v22 = vld [vmem:[%s5615_s23 + $0x38] sm:$0xff]  ;;  %v5716_v29 = vld [vmem:[%s5620_s26 + $0x28] sm:$0xff]  ;;  %v5725_v30 = vld [vmem:[%s5620_s26 + $0x60] sm:$0xff]  ;;  %4842 = vmatprep.mubr.msk.f32.mxu0 %vm382_vm3, %v5636_v12  ;;  %s344_s23 = scalar_lea.vmem %s7906_s7, %s4565_s20 }
  0x18   : > { %4898 = vmatmul.mubr.msk.f32.gmra.mrb[2].mxu1 %vm714_vm0, %v5641_v13  ;;  %861 = vrot.lane.b32.xlu0 %v5652_v16, %s5533_s29  ;;  %v5702_v26 = vld [vmem:[%s5620_s26 + $0x58] sm:$0xff]  ;;  %v5730_v31 = vld [vmem:[%s5620_s26 + $0x68] sm:$0xff]  ;;  %v5739_v32 = vld [vmem:[%s5620_s26 + $0x30] sm:$0xff] }
  0x19   : > { %4900 = vmatprep.mubr.msk.f32.mxu1 %vm714_vm0, %v5647_v15  ;;  %v5744_v33 = vld [vmem:[%s5620_s26 + $0x38] sm:$0xff]  ;;  %v5753_v34 = vld [vmem:[%s5620_s26 + $0x70] sm:$0xff]  ;;  %v5765_v36 = vld [vmem:[%s5620_s26 + $0x80] sm:$0xff]  ;;  %4843 = vmatmul.mubr.msk.f32.vlgmr.msra.gmra.mrb[0].mxu0 %vm382_vm3, %v5652_v16 }
  0x1a   : > { %1055 = vrot.lane.b32.xlu1 %v5659_v17, %s5533_s29  ;;  %v5758_v35 = vld [vmem:[%s5620_s26 + $0x78] sm:$0xff]  ;;  %v5772_v37 = vld [vmem:[%s5620_s26 + $0xc0] sm:$0xff]  ;;  %v5779_v38 = vld [vmem:[%s5620_s26 + $0x88] sm:$0xff]  ;;  %4845 = vmatprep.mubr.msk.f32.mxu0 %vm382_vm3, %v5674_v20 }
  0x1b   : > { %v5786_v39 = vld [vmem:[%s5620_s26 + $0x90] sm:$0xff]  ;;  %v5793_v40 = vld [vmem:[%s5620_s26 + $0xc8] sm:$0xff]  ;;  %v5807_v42 = vld [vmem:[%s5620_s26 + $0x98] sm:$0xff] }
  0x1c   : > { %4901 = vmatmul.mubr.msk.f32.gmra.mrb[4].mxu1 %vm714_vm0, %v5664_v18  ;;  %863 = vrot.lane.b32.xlu0 %v5674_v20, %s5533_s29  ;;  %v5800_v41 = vld [vmem:[%s5620_s26 + $0xd0] sm:$0xff]  ;;  %v5814_v43 = vld [vmem:[%s5620_s26 + $0xa0] sm:$0xff]  ;;  %v5821_v44 = vld [vmem:[%s5620_s26 + $0xd8] sm:$0xff] }
  0x1d   : > { %4903 = vmatprep.mubr.msk.f32.mxu1 %vm714_vm0, %v5667_v19  ;;  %v5828_v45 = vld [vmem:[%s5620_s26 + $0xe0] sm:$0xff]  ;;  %v5835_v48 = vld [vmem:[%s5620_s26 + $0xa8] sm:$0xff]  ;;  %v5842_v49 = vld [vmem:[%s5620_s26 + $0xb0] sm:$0xff]  ;;  %4846 = vmatmul.mubr.msk.f32.gmra.mrb[2].mxu0 %vm382_vm3, %v5679_v21 }
  0x1e   : > { %865 = vrot.lane.b32.xlu1 %v5679_v21, %s5533_s29  ;;  %v5855_v52 = vld [vmem:[%s5620_s26 + $0xe8] sm:$0xff]  ;;  %v5864_v55 = vld [vmem:[%s5620_s26 + $0xf0] sm:$0xff]  ;;  %v5871_v56 = vld [vmem:[%s5620_s26 + $0xb8] sm:$0xff]  ;;  %4848 = vmatprep.mubr.msk.f32.mxu0 %vm382_vm3, %v5711_v28 }
  0x1f   : > { %v5879_v58 = vld [vmem:[%s5620_s26 + $0xf8] sm:$0xff] }
  0x20   : > { %4904 = vmatmul.mubr.msk.f32.gmra.mrb[6].mxu1 %vm714_vm0, %v5684_v22  ;;  %1057 = vrot.lane.b32.xlu0 %v5697_v25, %s5533_s29 }
  0x21   : > { %4910 = vmatprep.mubr.msk.f32.mxu1 %vm714_vm0, %v5623_v8  ;;  %4849 = vmatmul.mubr.msk.f32.gmra.mrb[4].mxu0 %vm382_vm3, %v5716_v29 }
  0x22   : > { %1059 = vrot.lane.b32.xlu1 %v5702_v26, %s5533_s29  ;;  %4851 = vmatprep.mubr.msk.f32.mxu0 %vm382_vm3, %v5739_v32 }
  0x24   : > { %4911 = vmatmul.mubr.msk.f32.vlgmr.msra.gmra.mrb[8].mxu1 %vm714_vm0, %v5626_v9  ;;  %867 = vrot.lane.b32.xlu0 %v5711_v28, %s5533_s29 }
  0x25   : > { %4913 = vmatprep.mubr.msk.f32.mxu1 %vm714_vm0, %v5629_v10  ;;  %5253 = vmatpush3.bf16.msra.mxu1 %v5250_v11 }
  0x26   : > { %5255 = vmatprep.subr.bf16.mxu1 %v5254_v27  ;;  %869 = vrot.lane.b32.xlu1 %v5716_v29, %s5533_s29 }
  0x27   : > { %4852 = vmatmul.mubr.msk.f32.gmra.mrb[6].mxu0 %vm382_vm3, %v5744_v33 }
  0x28   : > { %4914 = vmatmul.mubr.msk.f32.gmra.mrb[10].mxu1 %vm714_vm0, %v5641_v13  ;;  %1061 = vrot.lane.b32.xlu0 %v5725_v30, %s5533_s29 }
  0x29   : > { %4916 = vmatprep.mubr.msk.f32.mxu1 %vm714_vm0, %v5647_v15  ;;  %4854 = vmatprep.mubr.msk.f32.mxu0 %vm382_vm3, %v5644_v14 }
  0x2a   : > { %1063 = vrot.lane.b32.xlu1 %v5730_v31, %s5533_s29 }
  0x2b   : > { %4855 = vmatmul.mubr.msk.f32.gmra.mrb[8].mxu0 %vm382_vm3, %v5659_v17 }
  0x2c   : > { %4917 = vmatmul.mubr.msk.f32.gmra.mrb[12].mxu1 %vm714_vm0, %v5664_v18  ;;  %871 = vrot.lane.b32.xlu0 %v5739_v32, %s5533_s29 }
  0x2d   : > { %4919 = vmatprep.mubr.msk.f32.mxu1 %vm714_vm0, %v5667_v19  ;;  %4857 = vmatprep.mubr.msk.f32.mxu0 %vm382_vm3, %v5697_v25 }
  0x2e   : > { %873 = vrot.lane.b32.xlu1 %v5744_v33, %s5533_s29 }
  0x2f   : > { %4858 = vmatmul.mubr.msk.f32.gmra.mrb[10].mxu0 %vm382_vm3, %v5702_v26 }
  0x30   : > { %4920 = vmatmul.mubr.msk.f32.gmra.mrb[14].mxu1 %vm714_vm0, %v5684_v22  ;;  %1065 = vrot.lane.b32.xlu0 %v5753_v34, %s5533_s29 }
  0x31   : > { %4926 = vmatprep.mubr.msk.f32.mxu1 %vm714_vm0, %v5623_v8  ;;  %4860 = vmatprep.mubr.msk.f32.mxu0 %vm382_vm3, %v5725_v30 }
  0x32   : > { %1067 = vrot.lane.b32.xlu1 %v5758_v35, %s5533_s29 }
  0x33   : > { %4861 = vmatmul.mubr.msk.f32.gmra.mrb[12].mxu0 %vm382_vm3, %v5730_v31 }
  0x34   : > { %4927 = vmatmul.mubr.msk.f32.vlgmr.msra.gmra.mrb[16].mxu1 %vm714_vm0, %v5626_v9  ;;  %1241 = vrot.lane.b32.xlu0 %v5765_v36, %s5533_s29 }
  0x35   : > { %4929 = vmatprep.mubr.msk.f32.mxu1 %vm714_vm0, %v5629_v10  ;;  %5257 = vmatpush3.bf16.msra.mxu1 %v5254_v27 }
  0x36   : > { %1429 = vrot.lane.b32.xlu1 %v5772_v37, %s5533_s29  ;;  %4863 = vmatprep.mubr.msk.f32.mxu0 %vm382_vm3, %v5753_v34 }
  0x37   : > { %4864 = vmatmul.mubr.msk.f32.gmra.mrb[14].mxu0 %vm382_vm3, %v5758_v35 }
  0x38   : > { %4930 = vmatmul.mubr.msk.f32.gmra.mrb[18].mxu1 %vm714_vm0, %v5641_v13  ;;  %1243 = vrot.lane.b32.xlu0 %v5779_v38, %s5533_s29 }
  0x39   : > { %4932 = vmatprep.mubr.msk.f32.mxu1 %vm714_vm0, %v5647_v15  ;;  %4866 = vmatprep.mubr.msk.f32.mxu0 %vm382_vm3, %v5765_v36 }
  0x3a   : > { %1245 = vrot.lane.b32.xlu1 %v5786_v39, %s5533_s29 }
  0x3b   : > { %4867 = vmatmul.mubr.msk.f32.gmra.mrb[16].mxu0 %vm382_vm3, %v5779_v38 }
  0x3c   : > { %4933 = vmatmul.mubr.msk.f32.gmra.mrb[20].mxu1 %vm714_vm0, %v5664_v18  ;;  %1431 = vrot.lane.b32.xlu0 %v5793_v40, %s5533_s29 }
  0x3d   : > { %4935 = vmatprep.mubr.msk.f32.mxu1 %vm714_vm0, %v5667_v19  ;;  %4869 = vmatprep.mubr.msk.f32.mxu0 %vm382_vm3, %v5786_v39 }
  0x3e   : > { %1433 = vrot.lane.b32.xlu1 %v5800_v41, %s5533_s29 }
  0x3f   : > { %4870 = vmatmul.mubr.msk.f32.gmra.mrb[18].mxu0 %vm382_vm3, %v5807_v42 }
  0x40   : > { %4936 = vmatmul.mubr.msk.f32.gmra.mrb[22].mxu1 %vm714_vm0, %v5684_v22  ;;  %1247 = vrot.lane.b32.xlu0 %v5807_v42, %s5533_s29 }
  0x41   : > { %4942 = vmatprep.mubr.msk.f32.mxu1 %vm714_vm0, %v5623_v8  ;;  %4872 = vmatprep.mubr.msk.f32.mxu0 %vm382_vm3, %v5814_v43 }
  0x42   : > { %1249 = vrot.lane.b32.xlu1 %v5814_v43, %s5533_s29 }
  0x43   : > { %4873 = vmatmul.mubr.msk.f32.gmra.mrb[20].mxu0 %vm382_vm3, %v5835_v48 }
  0x44   : > { %4943 = vmatmul.mubr.msk.f32.vlgmr.msra.gmra.mrb[24].mxu1 %vm714_vm0, %v5626_v9  ;;  %1435 = vrot.lane.b32.xlu0 %v5821_v44, %s5533_s29 }
  0x45   : > { %4945 = vmatprep.mubr.msk.f32.mxu1 %vm714_vm0, %v5629_v10  ;;  %4875 = vmatprep.mubr.msk.f32.mxu0 %vm382_vm3, %v5842_v49 }
  0x46   : > { %1437 = vrot.lane.b32.xlu1 %v5828_v45, %s5533_s29 }
  0x47   : > { %4876 = vmatmul.mubr.msk.f32.gmra.mrb[22].mxu0 %vm382_vm3, %v5871_v56 }
  0x48   : > { %4946 = vmatmul.mubr.msk.f32.gmra.mrb[26].mxu1 %vm714_vm0, %v5641_v13  ;;  %1251 = vrot.lane.b32.xlu0 %v5835_v48, %s5533_s29 }
  0x49   : > { %4948 = vmatprep.mubr.msk.f32.mxu1 %vm714_vm0, %v5647_v15  ;;  %4878 = vmatprep.mubr.msk.f32.mxu0 %vm382_vm3, %v5772_v37 }
  0x4a   : > { %1253 = vrot.lane.b32.xlu1 %v5842_v49, %s5533_s29 }
  0x4b   : > { %4879 = vmatmul.mubr.msk.f32.gmra.mrb[24].mxu0 %vm382_vm3, %v5793_v40 }
  0x4c   : > { %4949 = vmatmul.mubr.msk.f32.gmra.mrb[28].mxu1 %vm714_vm0, %v5664_v18  ;;  %1439 = vrot.lane.b32.xlu0 %v5855_v52, %s5533_s29 }
  0x4d   : > { %4951 = vmatprep.mubr.msk.f32.mxu1 %vm714_vm0, %v5667_v19  ;;  %4881 = vmatprep.mubr.msk.f32.mxu0 %vm382_vm3, %v5800_v41 }
  0x4e   : > { %1441 = vrot.lane.b32.xlu1 %v5864_v55, %s5533_s29 }
  0x4f   : > { %4882 = vmatmul.mubr.msk.f32.gmra.mrb[26].mxu0 %vm382_vm3, %v5821_v44 }
  0x50   : > { %4952 = vmatmul.mubr.msk.f32.gmra.mrb[30].mxu1 %vm714_vm0, %v5684_v22  ;;  %1255 = vrot.lane.b32.xlu0 %v5871_v56, %s5533_s29 }
  0x51   : > { %4884 = vmatprep.mubr.msk.f32.mxu0 %vm382_vm3, %v5828_v45 }
  0x52   : > { %1443 = vrot.lane.b32.xlu1 %v5879_v58, %s5533_s29  ;;  %s348_s29 = scalar_lea.vmem %s7907_s8, %s4347_s24 }
  0x53   : > { %4885 = vmatmul.mubr.msk.f32.gmra.mrb[28].mxu0 %vm382_vm3, %v5855_v52 }
  0x54   : > { %5479 = vrot.lane.b32.xlu0 %v5478_v59, %s5535_s12  ;;  %4887 = vmatprep.mubr.msk.f32.mxu0 %vm382_vm3, %v5864_v55  ;;  %v4419_v55 = vld [vmem:[%s7903_s4 + $0x30] sm:$0xff] }
  0x56   : > { %2201 = vrot.lane.b32.xlu1 %v5848_v51, %s5535_s12 }
  0x57   : > { %4888 = vmatmul.mubr.msk.f32.gmra.mrb[30].mxu0 %vm382_vm3, %v5879_v58 }
  0x58   : > { %5484 = vrot.lane.b32.xlu0 %v5483_v60, %s5536_s13 }
  0x86   : > { %v860_v63 = vpop.permute.xlu0 %859 }
  0x88   : > { %v5903_v62 = vpop.permute.xlu1 %1053 }
  0x8a   : > { %v862_v3 = vpop.permute.xlu0 %861 }
  0x8c   : > { %v5918_v1 = vpop.permute.xlu1 %1055 }
  0x8e   : > { %v864_v21 = vpop.permute.xlu0 %863 }
  0x90   : > { %v866_v11 = vpop.permute.xlu1 %865 }
  0x92   : > { %v5972_v54 = vpop.permute.xlu0 %1057 }
  0x94   : > { %v5949_v26 = vpop.permute.xlu1 %1059 }
  0x98   : > { %v870_v59 = vpop.permute.xlu1 %869 }
  0xe7   : > { %v4896_v2 = vpop.f32.mrb[0].mxu1 }
  0xe8   : > { %v852_v4 = vadd.f32 %v4896_v2, %v5916_v0  ;;  %v805_v5 = vpop.f32.mrb[1].mxu1 }
  0xe9   : > { %v851_v6 = vadd.f32 %v5916_v0, %v805_v5  ;;  %v868_v5 = vpop.permute.xlu0 %867 }
  0xea   : > { %v884_v7 = vsel %vm382_vm3, %v852_v4, %v862_v3 }
  0xeb   : > { %v883_v8 = vsel %vm382_vm3, %v851_v6, %v860_v63  ;;  %v901_v9 = vrot.slane %v884_v7, 7  ;;  %v4899_v10 = vpop.f32.mrb[2].mxu1 }
  0xec   : > { %v900_v12 = vrot.slane %v883_v8, 7  ;;  %v854_v13 = vadd.f32 %v4899_v10, %v5916_v0  ;;  %v815_v14 = vpop.f32.mrb[3].mxu1  ;;  %v6000_v8 = vpop.permute.xlu1 %1063 }
  0xed   : > { %v5934_v15 = vsel %vm918_vm1, 0.0, %v901_v9  ;;  %v5937_v16 = vsel %vm918_vm1, %v901_v9, 0.0  ;;  %v853_v17 = vadd.f32 %v5916_v0, %v815_v14 }
  0xee   : > { %v1667_v18 = vrot.slane %v5934_v15, 1  ;;  %v1668_v19 = vrot.slane %v5937_v16, 1  ;;  %v886_v20 = vsel %vm382_vm3, %v854_v13, %v866_v11  ;;  %v5944_v22 = vsel %vm918_vm1, 0.0, %v900_v12 }
  0xef   : > { %v4902_v23 = vpop.f32.mrb[4].mxu1  ;;  %v903_v24 = vrot.slane %v886_v20, 7  ;;  %v5947_v25 = vsel %vm918_vm1, %v900_v12, 0.0  ;;  %v1664_v29 = vrot.slane %v5944_v22, 1  ;;  %v885_v32 = vsel %vm382_vm3, %v853_v17, %v864_v21  ;;  %v6031_v21 = vpop.permute.xlu0 %1061 }
  0xf0   : > { %2418 = vrot.lane.b32.xlu1 %v1668_v19, %s5536_s13  ;;  %v1669_v27 = vsel %vm1517_vm2, %v1667_v18, %v1668_v19  ;;  %v825_v28 = vpop.f32.mrb[5].mxu1  ;;  %v1665_v30 = vrot.slane %v5947_v25, 1  ;;  %v856_v47 = vadd.f32 %v4902_v23, %v5916_v0  ;;  %v902_v57 = vrot.slane %v885_v32, 7  ;;  %v874_v23 = vpop.permute.xlu1 %873 }
  0xf1   : > { %2416 = vrot.lane.b32.xlu0 %v1669_v27, %s5536_s13  ;;  %v5962_v33 = vsel %vm918_vm1, 0.0, %v903_v24  ;;  %v5965_v31 = vsel %vm918_vm1, %v903_v24, 0.0  ;;  %v855_v4 = vadd.f32 %v5916_v0, %v825_v28 }
  0xf2   : > { %v1666_v34 = vsel %vm1517_vm2, %v1664_v29, %v1665_v30  ;;  %v1673_v60 = vrot.slane %v5962_v33, 1  ;;  %v1674_v35 = vrot.slane %v5965_v31, 1  ;;  %v888_v2 = vsel %vm382_vm3, %v856_v47, %v870_v59 }
  0xf3   : > { %v4905_v46 = vpop.f32.mrb[6].mxu1  ;;  %v5990_v36 = vsel %vm918_vm1, 0.0, %v902_v57  ;;  %v5993_v3 = vsel %vm918_vm1, %v902_v57, 0.0  ;;  %v905_v7 = vrot.slane %v888_v2, 7  ;;  %v887_v12 = vsel %vm382_vm3, %v855_v4, %v868_v5  ;;  %v872_v59 = vpop.permute.xlu0 %871 }
  0xf4   : > { %1690 = vrot.lane.b32.xlu1 %v1669_v27, %s5535_s12  ;;  %v835_v53 = vpop.f32.mrb[7].mxu1  ;;  %v1675_v38 = vsel %vm1517_vm2, %v1673_v60, %v1674_v35  ;;  %v1670_v39 = vrot.slane %v5990_v36, 1  ;;  %v1671_v9 = vrot.slane %v5993_v3, 1  ;;  %v858_v17 = vadd.f32 %v4905_v46, %v5916_v0 }
  0xf5   : > { %1688 = vrot.lane.b32.xlu0 %v1666_v34, %s5535_s12  ;;  %v6015_v13 = vsel %vm918_vm1, 0.0, %v905_v7  ;;  %v6018_v42 = vsel %vm918_vm1, %v905_v7, 0.0  ;;  %v904_v20 = vrot.slane %v887_v12, 7  ;;  %v857_v47 = vadd.f32 %v5916_v0, %v835_v53 }
  0xf6   : > { %v1672_v43 = vsel %vm1517_vm2, %v1670_v39, %v1671_v9  ;;  %v1679_v24 = vrot.slane %v6015_v13, 1  ;;  %v1680_v27 = vrot.slane %v6018_v42, 1  ;;  %v890_v49 = vsel %vm382_vm3, %v858_v17, %v874_v23 }
  0xf7   : > { %v5979_v61 = vpop.f32.mrb[8].mxu1  ;;  %v6048_v32 = vsel %vm918_vm1, 0.0, %v904_v20  ;;  %v6051_v46 = vsel %vm918_vm1, %v904_v20, 0.0  ;;  %v907_v57 = vrot.slane %v890_v49, 7  ;;  %v889_v40 = vsel %vm382_vm3, %v857_v47, %v872_v59 }
  0xf8   : > { %2414 = vrot.lane.b32.xlu1 %v1665_v30, %s5536_s13  ;;  %v5984_v63 = vpop.f32.mrb[9].mxu1  ;;  %v1676_v37 = vrot.slane %v6048_v32, 1 }
  0xf9   : > { %2412 = vrot.lane.b32.xlu0 %v1666_v34, %s5536_s13  ;;  %v1681_v34 = vsel %vm1517_vm2, %v1679_v24, %v1680_v27  ;;  %v6078_v5 = vsel %vm918_vm1, %v907_v57, 0.0  ;;  %v1045_v58 = vadd.f32 %v5916_v0, %v5984_v63 }
  0xfa   : > { %7993 = vst [vmem:[#allocation4_spill] sm:$0xff] %v6078_v5  ;;  %v1686_v44 = vrot.slane %v6078_v5, 1 }
  0xfb   : > { %v5998_v6 = vpop.f32.mrb[10].mxu1 }
  0xfc   : > { %2426 = vrot.lane.b32.xlu1 %v1674_v35, %s5536_s13  ;;  %v1016_v10 = vpop.f32.mrb[11].mxu1  ;;  %v1677_v35 = vrot.slane %v6051_v46, 1 }
  0xfd   : > { %2424 = vrot.lane.b32.xlu0 %v1675_v38, %s5536_s13  ;;  %v6011_v11 = vadd.f32 %v5916_v0, %v1016_v10  ;;  %v906_v10 = vrot.slane %v889_v40, 7 }
  0xfe   : > { %v1678_v41 = vsel %vm1517_vm2, %v1676_v37, %v1677_v35  ;;  %v4421_v37 = vld [vmem:[%s7903_s4 + $0x40] sm:$0xff] }
  0xff   : > { %v4918_v14 = vpop.f32.mrb[12].mxu1  ;;  %v6106_v20 = vsel %vm918_vm1, 0.0, %v906_v10  ;;  %v6109_v23 = vsel %vm918_vm1, %v906_v10, 0.0 }
 0x100   : > { %1694 = vrot.lane.b32.xlu1 %v1675_v38, %s5535_s12  ;;  %v6026_v18 = vadd.f32 %v4918_v14, %v5916_v0  ;;  %v1026_v19 = vpop.f32.mrb[13].mxu1  ;;  %v6075_v38 = vsel %vm918_vm1, 0.0, %v907_v57  ;;  %7994 = vst [vmem:[#allocation5_spill] sm:$0xff] %v6106_v20  ;;  %7995 = vst [vmem:[#allocation6_spill] sm:$0xff] %v6109_v23  ;;  %v1683_v49 = vrot.slane %v6109_v23, 1 }
 0x101   : > { %1692 = vrot.lane.b32.xlu0 %v1672_v43, %s5535_s12  ;;  %v6034_v48 = vadd.f32 %v5916_v0, %v1026_v19  ;;  %7992 = vst [vmem:[#allocation3_spill] sm:$0xff] %v6075_v38  ;;  %v1685_v14 = vrot.slane %v6075_v38, 1  ;;  %v1046_v19 = vadd.f32 %v5979_v61, %v5916_v0  ;;  %v4420_v61 = vld [vmem:[%s7903_s4 + $0x38] sm:$0xff] }
 0x102   : > { %v6138_v59 = vpack.c.bf16 %v4420_v61, %v4419_v55 }
 0x103   : > { %v4921_v28 = vpop.f32.mrb[14].mxu1  ;;  %v1687_v24 = vsel %vm1517_vm2, %v1685_v14, %v1686_v44 }
 0x104   : > { %2422 = vrot.lane.b32.xlu1 %v1671_v9, %s5536_s13  ;;  %v6043_v29 = vadd.f32 %v4921_v28, %v5916_v0  ;;  %v1036_v30 = vpop.f32.mrb[15].mxu1  ;;  %v1682_v28 = vrot.slane %v6106_v20, 1  ;;  %7996 = vst [vmem:[#allocation7_spill] sm:$0xff] %v6138_v59  ;;  %5259 = vmatprep.subr.bf16.mxu0 %v6138_v59 }
 0x105   : > { %2420 = vrot.lane.b32.xlu0 %v1672_v43, %s5536_s13  ;;  %v6055_v56 = vadd.f32 %v5916_v0, %v1036_v30  ;;  %5295 = vmatprep.subr.bf16.mxu1 %v6138_v59 }
 0x106   : > { %5261 = vmatpush3.bf16.msra.mxu0 %v6138_v59  ;;  %5297 = vmatpush3.bf16.msra.mxu1 %v6138_v59 }
 0x107   : > { %v4928_v60 = vpop.f32.mrb[16].mxu1 }
 0x108   : > { %2434 = vrot.lane.b32.xlu1 %v1680_v27, %s5536_s13  ;;  %v6065_v2 = vadd.f32 %v4928_v60, %v5916_v0  ;;  %v1194_v4 = vpop.f32.mrb[17].mxu1 }
 0x109   : > { %2432 = vrot.lane.b32.xlu0 %v1681_v34, %s5536_s13  ;;  %v6071_v53 = vadd.f32 %v5916_v0, %v1194_v4 }
 0x10b   : > { %v4931_v7 = vpop.f32.mrb[18].mxu1 }
 0x10c   : > { %1698 = vrot.lane.b32.xlu1 %v1681_v34, %s5535_s12  ;;  %v6085_v39 = vadd.f32 %v4931_v7, %v5916_v0  ;;  %v1204_v9 = vpop.f32.mrb[19].mxu1  ;;  %v1078_v34 = vsel %vm382_vm3, %v1046_v19, %v5918_v1  ;;  %v1684_v1 = vsel %vm1517_vm2, %v1682_v28, %v1683_v49 }
 0x10d   : > { %1696 = vrot.lane.b32.xlu0 %v1678_v41, %s5535_s12  ;;  %v6091_v12 = vadd.f32 %v5916_v0, %v1204_v9  ;;  %v1094_v4 = vrot.slane %v1078_v34, 7 }
 0x10f   : > { %v4934_v17 = vpop.f32.mrb[20].mxu1  ;;  %v6165_v14 = vsel %vm918_vm1, 0.0, %v1094_v4  ;;  %v1118_v19 = vsel %vm918_vm1, %v1094_v4, 0.0 }
 0x110   : > { %2430 = vrot.lane.b32.xlu1 %v1677_v35, %s5536_s13  ;;  %v6099_v43 = vadd.f32 %v4934_v17, %v5916_v0  ;;  %v1214_v45 = vpop.f32.mrb[21].mxu1  ;;  %v4422_v35 = vld [vmem:[%s7903_s4 + $0x48] sm:$0xff]  ;;  %v1731_v34 = vrot.slane %v6165_v14, 1 }
 0x111   : > { %2428 = vrot.lane.b32.xlu0 %v1678_v41, %s5536_s13  ;;  %v6113_v52 = vadd.f32 %v5916_v0, %v1214_v45  ;;  %v1077_v41 = vsel %vm382_vm3, %v1045_v58, %v5903_v62  ;;  %v6161_v9 = vpack.c.bf16 %v4422_v35, %v4421_v37  ;;  %v1732_v58 = vrot.slane %v1118_v19, 1 }
 0x112   : > { %v1093_v62 = vrot.slane %v1077_v41, 7 }
 0x113   : > { %v4937_v27 = vpop.f32.mrb[22].mxu1  ;;  %7997 = vst [vmem:[#allocation8_spill] sm:$0xff] %v6161_v9  ;;  %5263 = vmatprep.subr.bf16.mxu0 %v6161_v9  ;;  %5299 = vmatprep.subr.bf16.mxu1 %v6161_v9 }
 0x114   : > { %2442 = vrot.lane.b32.xlu1 %v1686_v44, %s5536_s13  ;;  %v6128_v30 = vadd.f32 %v4937_v27, %v5916_v0  ;;  %v1224_v47 = vpop.f32.mrb[23].mxu1  ;;  %5265 = vmatpush3.bf16.msra.mxu0 %v6161_v9  ;;  %v1048_v27 = vadd.f32 %v5998_v6, %v5916_v0  ;;  %v6188_v28 = vsel %vm918_vm1, 0.0, %v1093_v62  ;;  %v6195_v6 = vpop.permute.xlu0 %1065 }
 0x115   : > { %2440 = vrot.lane.b32.xlu0 %v1687_v24, %s5536_s13  ;;  %v6134_v57 = vadd.f32 %v5916_v0, %v1224_v47  ;;  %5301 = vmatpush3.bf16.msra.mxu1 %v6161_v9  ;;  %v1728_v35 = vrot.slane %v6188_v28, 1 }
 0x116   : > { %v1080_v37 = vsel %vm382_vm3, %v1048_v27, %v5949_v26  ;;  %v1068_v26 = vpop.permute.xlu1 %1067 }
 0x117   : > { %v4944_v60 = vpop.f32.mrb[24].mxu1 }
 0x118   : > { %1702 = vrot.lane.b32.xlu1 %v1687_v24, %s5535_s12  ;;  %v6149_v40 = vadd.f32 %v4944_v60, %v5916_v0  ;;  %v1382_v63 = vpop.f32.mrb[25].mxu1  ;;  %v1242_v27 = vpop.permute.xlu0 %1241 }
 0x119   : > { %1700 = vrot.lane.b32.xlu0 %v1684_v1, %s5535_s12  ;;  %v6154_v7 = vadd.f32 %v5916_v0, %v1382_v63 }
 0x11b   : > { %v4947_v10 = vpop.f32.mrb[26].mxu1 }
 0x11c   : > { %2438 = vrot.lane.b32.xlu1 %v1683_v49, %s5536_s13  ;;  %v6168_v44 = vadd.f32 %v4947_v10, %v5916_v0  ;;  %v1392_v17 = vpop.f32.mrb[27].mxu1  ;;  %v1117_v49 = vsel %vm918_vm1, %v1093_v62, 0.0  ;;  %v1079_v10 = vsel %vm382_vm3, %v6011_v11, %v5972_v54  ;;  %v1733_v62 = vsel %vm1517_vm2, %v1731_v34, %v1732_v58  ;;  %v4424_v54 = vld [vmem:[%s7903_s4 + $0x58] sm:$0xff] }
 0x11d   : > { %2368 = vrot.lane.b32.xlu0 %v6165_v14, %s5535_s12  ;;  %v6174_v45 = vadd.f32 %v5916_v0, %v1392_v17  ;;  %v1096_v17 = vrot.slane %v1080_v37, 7 }
 0x11f   : > { %v4950_v24 = vpop.f32.mrb[28].mxu1  ;;  %v1120_v11 = vsel %vm918_vm1, %v1096_v17, 0.0 }
 0x120   : > { %2370 = vrot.lane.b32.xlu1 %v1118_v19, %s5535_s12  ;;  %v6184_v55 = vadd.f32 %v4950_v24, %v5916_v0  ;;  %v1402_v61 = vpop.f32.mrb[29].mxu1  ;;  %v1095_v24 = vrot.slane %v1079_v10, 7  ;;  %v1738_v37 = vrot.slane %v1120_v11, 1 }
 0x121   : > { %2436 = vrot.lane.b32.xlu0 %v1684_v1, %s5536_s13  ;;  %v6192_v47 = vadd.f32 %v5916_v0, %v1402_v61  ;;  %v1729_v1 = vrot.slane %v1117_v49, 1  ;;  %v6225_v61 = vsel %vm918_vm1, 0.0, %v1096_v17 }
 0x122   : > { %v6234_v58 = vsel %vm918_vm1, 0.0, %v1095_v24 }
 0x123   : > { %v4953_v60 = vpop.f32.mrb[30].mxu1  ;;  %v1730_v19 = vsel %vm1517_vm2, %v1728_v35, %v1729_v1  ;;  %v1737_v35 = vrot.slane %v6225_v61, 1  ;;  %v1244_v1 = vpop.permute.xlu0 %1243  ;;  %v1734_v10 = vrot.slane %v6234_v58, 1 }
 0x124   : > { %2364 = vrot.lane.b32.xlu1 %v6188_v28, %s5535_s12  ;;  %v6203_v4 = vadd.f32 %v4953_v60, %v5916_v0  ;;  %v1412_v63 = vpop.f32.mrb[31].mxu1  ;;  %v1119_v60 = vsel %vm918_vm1, %v1095_v24, 0.0 }
 0x125   : > { %2366 = vrot.lane.b32.xlu0 %v1117_v49, %s5535_s12  ;;  %v6207_v41 = vadd.f32 %v5916_v0, %v1412_v63  ;;  %v4423_v0 = vld [vmem:[%s7903_s4 + $0x50] sm:$0xff]  ;;  %v6227_v49 = vpop.permute.xlu1 %1429  ;;  %v1082_v63 = vsel %vm382_vm3, %v6026_v18, %v6000_v8  ;;  %v1735_v17 = vrot.slane %v1119_v60, 1 }
 0x126   : > { %v6229_v34 = vpack.c.bf16 %v4424_v54, %v4423_v0  ;;  %v1098_v24 = vrot.slane %v1082_v63, 7  ;;  %v1739_v0 = vsel %vm1517_vm2, %v1737_v35, %v1738_v37 }
 0x127   : > { %v1736_v8 = vsel %vm1517_vm2, %v1734_v10, %v1735_v17  ;;  %v6258_v54 = vpop.permute.xlu0 %1431  ;;  %v1084_v17 = vsel %vm382_vm3, %v6043_v29, %v1068_v26 }
 0x128   : > { %1754 = vrot.lane.b32.xlu1 %v1733_v62, %s5536_s13  ;;  %7998 = vst [vmem:[#allocation9_spill] sm:$0xff] %v6229_v34  ;;  %5267 = vmatprep.subr.bf16.mxu0 %v6229_v34  ;;  %v1081_v62 = vsel %vm382_vm3, %v6034_v48, %v6031_v21  ;;  %v6263_v21 = vsel %vm918_vm1, 0.0, %v1098_v24 }
 0x129   : > { %1752 = vrot.lane.b32.xlu0 %v1730_v19, %s5536_s13  ;;  %5303 = vmatprep.subr.bf16.mxu1 %v6229_v34  ;;  %v6252_v19 = vpop.permute.xlu1 %1245  ;;  %v1097_v18 = vrot.slane %v1081_v62, 7  ;;  %v1743_v63 = vrot.slane %v6263_v21, 1 }
 0x12a   : > { %5269 = vmatpush3.bf16.msra.mxu0 %v6229_v34  ;;  %5305 = vmatpush3.bf16.msra.mxu1 %v6229_v34  ;;  %v1266_v34 = vsel %vm382_vm3, %v6065_v2, %v1244_v1 }
 0x12b   : > { %v1121_v37 = vsel %vm918_vm1, %v1097_v18, 0.0  ;;  %v1248_v10 = vpop.permute.xlu0 %1247 }
 0x12c   : > { %2378 = vrot.lane.b32.xlu1 %v1120_v11, %s5535_s12  ;;  %v1122_v11 = vsel %vm918_vm1, %v1098_v24, 0.0  ;;  %v1741_v24 = vrot.slane %v1121_v37, 1 }
 0x12d   : > { %2376 = vrot.lane.b32.xlu0 %v6225_v61, %s5535_s12  ;;  %v6265_v48 = vpop.permute.xlu1 %1433  ;;  %v1744_v35 = vrot.slane %v1122_v11, 1 }
 0x12f   : > { %v6289_v9 = vpop.permute.xlu0 %1435 }
 0x130   : > { %2372 = vrot.lane.b32.xlu1 %v6234_v58, %s5535_s12 }
 0x131   : > { %2374 = vrot.lane.b32.xlu0 %v1119_v60, %s5535_s12  ;;  %v6270_v60 = vsel %vm918_vm1, 0.0, %v1097_v18  ;;  %v1100_v18 = vrot.slane %v1084_v17, 7 }
 0x132   : > { %v1740_v62 = vrot.slane %v6270_v60, 1 }
 0x134   : > { %1758 = vrot.lane.b32.xlu1 %v1739_v0, %s5536_s13  ;;  %v1083_v0 = vsel %vm382_vm3, %v6055_v56, %v6195_v6  ;;  %v1742_v29 = vsel %vm1517_vm2, %v1740_v62, %v1741_v24  ;;  %v1265_v56 = vsel %vm382_vm3, %v6071_v53, %v1242_v27  ;;  %v1282_v6 = vrot.slane %v1266_v34, 7  ;;  %v1252_v27 = vpop.permute.xlu0 %1251 }
 0x135   : > { %1756 = vrot.lane.b32.xlu0 %v1736_v8, %s5536_s13  ;;  %v1250_v8 = vpop.permute.xlu1 %1249  ;;  %v1099_v26 = vrot.slane %v1083_v0, 7  ;;  %v1281_v17 = vrot.slane %v1265_v56, 7 }
 0x136   : > { %v6308_v34 = vsel %vm918_vm1, 0.0, %v1282_v6  ;;  %v6311_v24 = vsel %vm918_vm1, %v1282_v6, 0.0 }
 0x137   : > { %v6303_v2 = vsel %vm918_vm1, 0.0, %v1099_v26  ;;  %v1123_v1 = vsel %vm918_vm1, %v1099_v26, 0.0  ;;  %8001 = vst [vmem:[#allocation12_spill] sm:$0xff] %v6308_v34  ;;  %8002 = vst [vmem:[#allocation13_spill] sm:$0xff] %v6311_v24  ;;  %v1525_v26 = vrot.slane %v6311_v24, 1  ;;  %v6321_v56 = vsel %vm918_vm1, 0.0, %v1281_v17 }
 0x138   : > { %2386 = vrot.lane.b32.xlu1 %v1122_v11, %s5535_s12  ;;  %v1745_v11 = vsel %vm1517_vm2, %v1743_v63, %v1744_v35  ;;  %v6296_v35 = vsel %vm918_vm1, 0.0, %v1100_v18  ;;  %8000 = vst [vmem:[#allocation11_spill] sm:$0xff] %v6303_v2  ;;  %v1746_v0 = vrot.slane %v6303_v2, 1  ;;  %8003 = vst [vmem:[#allocation14_spill] sm:$0xff] %v6321_v56  ;;  %v6324_v6 = vsel %vm918_vm1, %v1281_v17, 0.0 }
 0x139   : > { %2384 = vrot.lane.b32.xlu0 %v6263_v21, %s5535_s12  ;;  %7999 = vst [vmem:[#allocation10_spill] sm:$0xff] %v6296_v35  ;;  %v6298_v63 = vpop.permute.xlu1 %1437  ;;  %v1749_v53 = vrot.slane %v6296_v35, 1  ;;  %8004 = vst [vmem:[#allocation15_spill] sm:$0xff] %v6324_v6  ;;  %v1521_v24 = vrot.slane %v6321_v56, 1 }
 0x13c   : > { %2380 = vrot.lane.b32.xlu1 %v6270_v60, %s5535_s12 }
 0x13d   : > { %2382 = vrot.lane.b32.xlu0 %v1121_v37, %s5535_s12  ;;  %v1124_v37 = vsel %vm918_vm1, %v1100_v18, 0.0  ;;  %v1747_v18 = vrot.slane %v1123_v1, 1 }
 0x13e   : > { %v1750_v62 = vrot.slane %v1124_v37, 1 }
 0x13f   : > { %v1748_v59 = vsel %vm1517_vm2, %v1746_v0, %v1747_v18  ;;  %v1267_v0 = vsel %vm382_vm3, %v6091_v12, %v6252_v19 }
 0x140   : > { %1762 = vrot.lane.b32.xlu1 %v1745_v11, %s5536_s13  ;;  %v1254_v11 = vpop.permute.xlu1 %1253 }
 0x141   : > { %1760 = vrot.lane.b32.xlu0 %v1742_v29, %s5536_s13  ;;  %v1524_v29 = vrot.slane %v6308_v34, 1  ;;  %v6331_v34 = vpop.permute.xlu0 %1439 }
 0x144   : > { %2394 = vrot.lane.b32.xlu1 %v1124_v37, %s5535_s12  ;;  %v1751_v37 = vsel %vm1517_vm2, %v1749_v53, %v1750_v62  ;;  %v1522_v62 = vrot.slane %v6324_v6, 1  ;;  %v1526_v53 = vsel %vm1517_vm2, %v1524_v29, %v1525_v26  ;;  %v6337_v17 = vpop.permute.xlu1 %1441 }
 0x145   : > { %2392 = vrot.lane.b32.xlu0 %v6296_v35, %s5535_s12 }
 0x148   : > { %2388 = vrot.lane.b32.xlu1 %v6303_v2, %s5535_s12 }
 0x149   : > { %2390 = vrot.lane.b32.xlu0 %v1123_v1, %s5535_s12  ;;  %v1268_v1 = vsel %vm382_vm3, %v6085_v39, %v1248_v10  ;;  %v6343_v39 = vpop.permute.xlu0 %1255  ;;  %v1283_v10 = vrot.slane %v1267_v0, 7 }
 0x14a   : > { %v1284_v2 = vrot.slane %v1268_v1, 7 }
 0x14c   : > { %1766 = vrot.lane.b32.xlu1 %v1751_v37, %s5536_s13  ;;  %v6347_v18 = vsel %vm918_vm1, 0.0, %v1284_v2  ;;  %v6350_v29 = vsel %vm918_vm1, %v1284_v2, 0.0  ;;  %v6354_v37 = vpop.permute.xlu1 %1443  ;;  %v1269_v2 = vsel %vm382_vm3, %v6113_v52, %v1250_v8 }
 0x14d   : > { %1764 = vrot.lane.b32.xlu0 %v1748_v59, %s5536_s13  ;;  %v1523_v59 = vsel %vm1517_vm2, %v1521_v24, %v1522_v62  ;;  %8005 = vst [vmem:[#allocation16_spill] sm:$0xff] %v6347_v18  ;;  %8006 = vst [vmem:[#allocation17_spill] sm:$0xff] %v6350_v29  ;;  %v1530_v12 = vrot.slane %v6347_v18, 1  ;;  %v1531_v19 = vrot.slane %v6350_v29, 1  ;;  %v6362_v24 = vsel %vm918_vm1, %v1283_v10, 0.0  ;;  %v6367_v1 = vpop.permute.xlu0 %5479 }
 0x14e   : > { %8008 = vst [vmem:[#allocation19_spill] sm:$0xff] %v6362_v24  ;;  %v1528_v29 = vrot.slane %v6362_v24, 1 }
 0x14f   : > { %v1532_v18 = vsel %vm1517_vm2, %v1530_v12, %v1531_v19 }
 0x150   : > { %2253 = vrot.lane.b32.xlu1 %v1526_v53, %s5536_s13 }
 0x151   : > { %2255 = vrot.lane.b32.xlu0 %v1525_v26, %s5536_s13  ;;  %v6359_v26 = vsel %vm918_vm1, 0.0, %v1283_v10  ;;  %v1285_v10 = vrot.slane %v1269_v2, 7  ;;  %v6379_v52 = vpop.permute.xlu0 %5484 }
 0x152   : > { %8007 = vst [vmem:[#allocation18_spill] sm:$0xff] %v6359_v26  ;;  %v1527_v0 = vrot.slane %v6359_v26, 1  ;;  %v1642_v26 = vld [vmem:[%s7903_s4] sm:$0xff] }
 0x154   : > { %1544 = vrot.lane.b32.xlu1 %v1523_v59, %s5535_s12  ;;  %v1529_v8 = vsel %vm1517_vm2, %v1527_v0, %v1528_v29 }
 0x155   : > { %1546 = vrot.lane.b32.xlu0 %v1526_v53, %s5535_s12  ;;  %v1270_v53 = vsel %vm382_vm3, %v6099_v43, %v1252_v27  ;;  %v6383_v43 = vsel %vm918_vm1, 0.0, %v1285_v10  ;;  %v6386_v27 = vsel %vm918_vm1, %v1285_v10, 0.0 }
 0x156   : > { %v1286_v56 = vrot.slane %v1270_v53, 7  ;;  %8010 = vst [vmem:[#allocation21_spill] sm:$0xff] %v6383_v43  ;;  %8011 = vst [vmem:[#allocation22_spill] sm:$0xff] %v6386_v27  ;;  %v1533_v53 = vrot.slane %v6383_v43, 1  ;;  %v1534_v0 = vrot.slane %v6386_v27, 1 }
 0x158   : > { %2249 = vrot.lane.b32.xlu1 %v1523_v59, %s5536_s13  ;;  %v6376_v59 = vpop.permute.xlu1 %2201  ;;  %v6393_v12 = vsel %vm918_vm1, %v1286_v56, 0.0  ;;  %v1535_v6 = vsel %vm1517_vm2, %v1533_v53, %v1534_v0 }
 0x159   : > { %2251 = vrot.lane.b32.xlu0 %v1522_v62, %s5536_s13  ;;  %8009 = vst [vmem:[#allocation20_spill] sm:$0xff] %v6376_v59  ;;  %v6390_v62 = vsel %vm918_vm1, 0.0, %v1286_v56  ;;  %v1643_v56 = vld [vmem:[%s7903_s4 + $0x8] sm:$0xff] }
 0x15a   : > { %8012 = vst [vmem:[#allocation23_spill] sm:$0xff] %v6390_v62  ;;  %v6413_v43 = vpack.c.bf16 %v1643_v56, %v1642_v26  ;;  %v1454_v26 = vsel %vm382_vm3, %v6149_v40, %v6258_v54 }
 0x15b   : > { %v1470_v35 = vrot.slane %v1454_v26, 7 }
 0x15c   : > { %2261 = vrot.lane.b32.xlu1 %v1532_v18, %s5536_s13  ;;  %8013 = vst [vmem:[#allocation24_spill] sm:$0xff] %v6413_v43  ;;  %5271 = vmatprep.subr.bf16.mxu0 %v6413_v43 }
 0x15d   : > { %2263 = vrot.lane.b32.xlu0 %v1531_v19, %s5536_s13  ;;  %v1271_v19 = vsel %vm382_vm3, %v6134_v57, %v1254_v11  ;;  %v1536_v57 = vrot.slane %v6390_v62, 1  ;;  %v7927_v11 = vrot.slane %v6393_v12, 1  ;;  %5307 = vmatprep.subr.bf16.mxu1 %v6413_v43 }
 0x160   : > { %1548 = vrot.lane.b32.xlu1 %v1529_v8, %s5535_s12 }
 0x161   : > { %1550 = vrot.lane.b32.xlu0 %v1532_v18, %s5535_s12  ;;  %v1287_v18 = vrot.slane %v1271_v19, 7 }
 0x162   : > { %v6398_v2 = vpop.permute.xlu1 %2418 }
 0x163   : > { %v6402_v10 = vpop.permute.xlu0 %2416  ;;  %v6424_v62 = vsel %vm918_vm1, 0.0, %v1287_v18  ;;  %v6427_v19 = vsel %vm918_vm1, %v1287_v18, 0.0 }
 0x164   : > { %2257 = vrot.lane.b32.xlu1 %v1529_v8, %s5536_s13  ;;  %8014 = vst [vmem:[#allocation25_spill] sm:$0xff] %v6424_v62  ;;  %8015 = vst [vmem:[#allocation26_spill] sm:$0xff] %v6427_v19  ;;  %v1539_v53 = vrot.slane %v6424_v62, 1  ;;  %v7930_v56 = vrot.slane %v6427_v19, 1 }
 0x165   : > { %2259 = vrot.lane.b32.xlu0 %v1528_v29, %s5536_s13  ;;  %v6433_v29 = vsel %vm1517_vm2, %v1536_v57, %v7927_v11  ;;  %v1453_v57 = vsel %vm382_vm3, %v6154_v7, %v6227_v49  ;;  %v6465_v7 = vsel %vm918_vm1, 0.0, %v1470_v35 }
 0x166   : > { %v6416_v27 = vpop.permute.xlu1 %1690  ;;  %v6458_v11 = vsel %vm1517_vm2, %v1539_v53, %v7930_v56  ;;  %v1469_v62 = vrot.slane %v1453_v57, 7  ;;  %8016 = vst [vmem:[#allocation27_spill] sm:$0xff] %v6465_v7  ;;  %v1583_v23 = vrot.slane %v6465_v7, 1 }
 0x167   : > { %v6420_v24 = vpop.permute.xlu0 %1688 }
 0x168   : > { %1552 = vrot.lane.b32.xlu1 %v1535_v6, %s5535_s12  ;;  %v1493_v53 = vsel %vm918_vm1, %v1469_v62, 0.0  ;;  %v6476_v57 = vsel %vm918_vm1, 0.0, %v1469_v62 }
 0x169   : > { %1554 = vrot.lane.b32.xlu0 %v6433_v29, %s5535_s12  ;;  %8017 = vst [vmem:[#allocation28_spill] sm:$0xff] %v6476_v57  ;;  %v1581_v20 = vrot.slane %v1493_v53, 1  ;;  %v1580_v38 = vrot.slane %v6476_v57, 1 }
 0x16a   : > { %v6440_v8 = vpop.permute.xlu1 %2414 }
 0x16b   : > { %v6444_v18 = vpop.permute.xlu0 %2412 }
 0x16c   : > { %2265 = vrot.lane.b32.xlu1 %v1535_v6, %s5536_s13  ;;  %v1494_v6 = vsel %vm918_vm1, %v1470_v35, 0.0  ;;  %v1456_v35 = vsel %vm382_vm3, %v6168_v44, %v6289_v9 }
 0x16d   : > { %2267 = vrot.lane.b32.xlu0 %v1534_v0, %s5536_s13  ;;  %v1584_v26 = vrot.slane %v1494_v6, 1  ;;  %v1472_v5 = vrot.slane %v1456_v35, 7 }
 0x16e   : > { %v6451_v40 = vpop.permute.xlu1 %2426 }
 0x16f   : > { %v6453_v54 = vpop.permute.xlu0 %2424  ;;  %v1585_v62 = vsel %vm1517_vm2, %v1583_v23, %v1584_v26  ;;  %v1496_v35 = vsel %vm918_vm1, %v1472_v5, 0.0  ;;  %v6503_v23 = vsel %vm918_vm1, 0.0, %v1472_v5  ;;  %v1457_v5 = vsel %vm382_vm3, %v6192_v47, %v6298_v63 }
 0x170   : > { %1556 = vrot.lane.b32.xlu1 %v6458_v11, %s5535_s12  ;;  %8018 = vst [vmem:[#allocation29_spill] sm:$0xff] %v6503_v23  ;;  %v1459_v63 = vsel %vm382_vm3, %v6207_v41, %v6337_v17 }
 0x171   : > { %2209 = vrot.lane.b32.xlu0 %v1494_v6, %s5535_s12 }
 0x172   : > { %v6467_v49 = vpop.permute.xlu1 %1694 }
 0x173   : > { %v6469_v0 = vpop.permute.xlu0 %1692 }
 0x174   : > { %2207 = vrot.lane.b32.xlu1 %v6465_v7, %s5535_s12  ;;  %v1455_v7 = vsel %vm382_vm3, %v6174_v45, %v6265_v48  ;;  %v1458_v45 = vsel %vm382_vm3, %v6184_v55, %v6331_v34 }
 0x175   : > { %2205 = vrot.lane.b32.xlu0 %v1493_v53, %s5535_s12  ;;  %v1582_v53 = vsel %vm1517_vm2, %v1580_v38, %v1581_v20  ;;  %v1471_v51 = vrot.slane %v1455_v7, 7  ;;  %v1589_v38 = vrot.slane %v6503_v23, 1  ;;  %v1474_v55 = vrot.slane %v1458_v45, 7 }
 0x176   : > { %v6482_v56 = vpop.permute.xlu1 %2422 }
 0x177   : > { %v6484_v6 = vpop.permute.xlu0 %2420  ;;  %v1495_v20 = vsel %vm918_vm1, %v1471_v51, 0.0  ;;  %v6517_v7 = vsel %vm918_vm1, 0.0, %v1471_v51  ;;  %v6532_v59 = vsel %vm918_vm1, 0.0, %v1474_v55  ;;  %v1498_v47 = vsel %vm918_vm1, %v1474_v55, 0.0 }
 0x178   : > { %2203 = vrot.lane.b32.xlu1 %v6476_v57, %s5535_s12  ;;  %8019 = vst [vmem:[#allocation30_spill] sm:$0xff] %v6517_v7  ;;  %v1586_v57 = vrot.slane %v6517_v7, 1 }
 0x179   : > { %1605 = vrot.lane.b32.xlu0 %v1585_v62, %s5536_s13  ;;  %v1590_v62 = vrot.slane %v1496_v35, 1 }
 0x17a   : > { %v6494_v9 = vpop.permute.xlu1 %2434 }
 0x17b   : > { %v6496_v44 = vpop.permute.xlu0 %2432  ;;  %v1591_v51 = vsel %vm1517_vm2, %v1589_v38, %v1590_v62  ;;  %v1596_v62 = vrot.slane %v1498_v47, 1 }
 0x17c   : > { %1603 = vrot.lane.b32.xlu1 %v1582_v53, %s5536_s13  ;;  %v1587_v53 = vrot.slane %v1495_v20, 1 }
 0x17d   : > { %2217 = vrot.lane.b32.xlu0 %v1496_v35, %s5535_s12 }
 0x17e   : > { %v6508_v48 = vpop.permute.xlu1 %1698 }
 0x17f   : > { %v6510_v26 = vpop.permute.xlu0 %1696 }
 0x180   : > { %2215 = vrot.lane.b32.xlu1 %v6503_v23, %s5535_s12  ;;  %v1473_v23 = vrot.slane %v1457_v5, 7  ;;  %v1588_v5 = vsel %vm1517_vm2, %v1586_v57, %v1587_v53 }
 0x181   : > { %2213 = vrot.lane.b32.xlu0 %v1495_v20, %s5535_s12 }
 0x182   : > { %v6523_v34 = vpop.permute.xlu1 %2430  ;;  %v1497_v38 = vsel %vm918_vm1, %v1473_v23, 0.0  ;;  %v6548_v55 = vsel %vm918_vm1, 0.0, %v1473_v23 }
 0x183   : > { %v6525_v35 = vpop.permute.xlu0 %2428  ;;  %v1593_v17 = vrot.slane %v1497_v38, 1  ;;  %v1592_v57 = vrot.slane %v6548_v55, 1 }
 0x184   : > { %2211 = vrot.lane.b32.xlu1 %v6517_v7, %s5535_s12  ;;  %v1595_v7 = vrot.slane %v6532_v59, 1 }
 0x185   : > { %1609 = vrot.lane.b32.xlu0 %v1591_v51, %s5536_s13  ;;  %v1475_v51 = vrot.slane %v1459_v63, 7 }
 0x186   : > { %v6539_v45 = vpop.permute.xlu1 %2442  ;;  %v1597_v53 = vsel %vm1517_vm2, %v1595_v7, %v1596_v62 }
 0x187   : > { %8020 = vst [vmem:[#allocation31_spill] sm:$0xff] %v6539_v45  ;;  %v6541_v20 = vpop.permute.xlu0 %2440  ;;  %v1499_v23 = vsel %vm918_vm1, %v1475_v51, 0.0 }
 0x188   : > { %8021 = vst [vmem:[#allocation32_spill] sm:$0xff] %v6541_v20  ;;  %1607 = vrot.lane.b32.xlu1 %v1588_v5, %s5536_s13  ;;  %v6560_v5 = vsel %vm918_vm1, 0.0, %v1475_v51  ;;  %v1599_v20 = vrot.slane %v1499_v23, 1  ;;  %v1272_v51 = vsel %vm382_vm3, %v6128_v30, %v6343_v39 }
 0x189   : > { %2221 = vrot.lane.b32.xlu0 %v1497_v38, %s5535_s12  ;;  %v1594_v38 = vsel %vm1517_vm2, %v1592_v57, %v1593_v17  ;;  %v1288_v30 = vrot.slane %v1272_v51, 7 }
 0x18a   : > { %v6551_v41 = vpop.permute.xlu1 %1702 }
 0x18b   : > { %8022 = vst [vmem:[#allocation33_spill] sm:$0xff] %v6551_v41  ;;  %v6553_v45 = vpop.permute.xlu0 %1700 }
 0x18c   : > { %8023 = vst [vmem:[#allocation34_spill] sm:$0xff] %v6553_v45  ;;  %2219 = vrot.lane.b32.xlu1 %v6548_v55, %s5535_s12  ;;  %v1598_v45 = vrot.slane %v6560_v5, 1 }
 0x18d   : > { %1613 = vrot.lane.b32.xlu0 %v1597_v53, %s5536_s13 }
 0x18e   : > { %v6564_v63 = vpop.permute.xlu1 %2438  ;;  %v1600_v17 = vsel %vm1517_vm2, %v1598_v45, %v1599_v20 }
 0x18f   : > { %v2369_v41 = vpop.permute.xlu0 %2368 }
 0x190   : > { %1611 = vrot.lane.b32.xlu1 %v1594_v38, %s5536_s13  ;;  %v2462_v57 = vsel %vm714_vm0, %v5934_v15, %v2369_v41 }
 0x191   : > { %2225 = vrot.lane.b32.xlu0 %v1498_v47, %s5535_s12  ;;  %v1460_v47 = vsel %vm382_vm3, %v6203_v4, %v6354_v37  ;;  %v2478_v15 = vsel %vm1633_vm4, %v2462_v57, %v6402_v10  ;;  %v6608_v10 = vsel %vm918_vm1, 0.0, %v1288_v30 }
 0x192   : > { %v2371_v7 = vpop.permute.xlu1 %2370  ;;  %v1476_v4 = vrot.slane %v1460_v47, 7  ;;  %8024 = vst [vmem:[#allocation35_spill] sm:$0xff] %v6608_v10  ;;  %v2511_v47 = vrot.slane %v2478_v15, 1 }
 0x193   : > { %v6570_v62 = vpop.permute.xlu0 %2436  ;;  %v2463_v53 = vsel %vm714_vm0, %v5937_v16, %v2371_v7 }
 0x194   : > { %2223 = vrot.lane.b32.xlu1 %v6532_v59, %s5535_s12  ;;  %v2479_v16 = vsel %vm1633_vm4, %v2463_v53, %v6398_v2  ;;  %v6611_v53 = vsel %vm918_vm1, %v1288_v30, 0.0  ;;  %v6628_v30 = vsel %vm918_vm1, 0.0, %v1476_v4 }
 0x195   : > { %1615 = vrot.lane.b32.xlu0 %v1600_v17, %s5536_s13  ;;  %8025 = vst [vmem:[#allocation36_spill] sm:$0xff] %v6611_v53  ;;  %v1777_v17 = vsel %vm714_vm0, %v6165_v14, %v6416_v27  ;;  %8028 = vst [vmem:[#allocation39_spill] sm:$0xff] %v6628_v30  ;;  %v8030_v14 = vrot.slane %v6393_v12, 1  ;;  %v2068_v15 = vrot.slane %v6628_v30, 1 }
 0x196   : > { %v2365_v38 = vpop.permute.xlu1 %2364 }
 0x197   : > { %v2460_v39 = vsel %vm714_vm0, %v5944_v22, %v2365_v38  ;;  %v2367_v7 = vpop.permute.xlu0 %2366  ;;  %v2512_v22 = vrot.slane %v2479_v16, 1 }
 0x198   : > { %v2476_v45 = vsel %vm1633_vm4, %v2460_v39, %v6444_v18  ;;  %v2461_v20 = vsel %vm714_vm0, %v5947_v25, %v2367_v7  ;;  %2227 = vrot.lane.b32.xlu1 %v6560_v5, %s5535_s12  ;;  %v1644_v25 = vld [vmem:[%s7903_s4 + $0x10] sm:$0xff]  ;;  %v1645_v18 = vld [vmem:[%s7903_s4 + $0x18] sm:$0xff]  ;;  %v1646_v39 = vld [vmem:[%s7903_s4 + $0x20] sm:$0xff] }
 0x199   : > { %v2508_v37 = vrot.slane %v2476_v45, 1  ;;  %v2477_v2 = vsel %vm1633_vm4, %v2461_v20, %v6440_v8  ;;  %2229 = vrot.lane.b32.xlu0 %v1499_v23, %s5535_s12  ;;  %v1776_v8 = vsel %vm714_vm0, %v6188_v28, %v6420_v24  ;;  %v1500_v28 = vsel %vm918_vm1, %v1476_v4, 0.0  ;;  %v1647_v7 = vld [vmem:[%s7903_s4 + $0x28] sm:$0xff] }
 0x19a   : > { %v2509_v41 = vrot.slane %v2477_v2, 1  ;;  %v1755_v51 = vpop.permute.xlu1 %1754  ;;  %v6639_v27 = vpack.c.bf16 %v1645_v18, %v1644_v25  ;;  %v6646_v16 = vsel %vm1517_vm2, %v2511_v47, %v2512_v22  ;;  %v2060_v45 = vrot.slane %v6608_v10, 1  ;;  %v8070_v10 = vld [vmem:[#allocation12_spill] sm:$0xff] }
 0x19b   : > { %v1753_v23 = vpop.permute.xlu0 %1752  ;;  %v6632_v24 = vsel %vm1633_vm4, %v1777_v17, %v1755_v51  ;;  %8032 = vst [vmem:[#allocation42_spill] sm:$0xff] %v6646_v16  ;;  %v2061_v20 = vrot.slane %v6611_v53, 1  ;;  %v6671_v51 = vpack.c.bf16 %v1647_v7, %v1646_v39  ;;  %v1778_v7 = vsel %vm714_vm0, %v6234_v58, %v6469_v0  ;;  %v6733_v0 = vpop.f32.mrb[0].mxu0  ;;  %v8069_v53 = vld [vmem:[#allocation13_spill] sm:$0xff] }
 0x19c   : > { %v6620_v57 = vsel %vm1633_vm4, %v1776_v8, %v1753_v23  ;;  %2269 = vrot.lane.b32.xlu1 %v6433_v29, %s5536_s13  ;;  %v6625_v38 = vsel %vm1517_vm2, %v2508_v37, %v2509_v41  ;;  %8029 = vst [vmem:[#allocation40_spill] sm:$0xff] %v6632_v24  ;;  %8031 = vst [vmem:[#allocation41_spill] sm:$0xff] %v6639_v27  ;;  %v2069_v37 = vrot.slane %v1500_v28, 1  ;;  %v8033_v41 = vrot.slane %v6427_v19, 1  ;;  %v8071_v19 = vld [vmem:[#allocation15_spill] sm:$0xff] }
 0x19d   : > { %8026 = vst [vmem:[#allocation37_spill] sm:$0xff] %v6620_v57  ;;  %8027 = vst [vmem:[#allocation38_spill] sm:$0xff] %v6625_v38  ;;  %2271 = vrot.lane.b32.xlu0 %v8030_v14, %s5536_s13  ;;  %4966 = vmatprep.mubr.msk.f32.mxu0 %vm1799_vm5, %v6620_v57  ;;  %v2062_v8 = vsel %vm1517_vm2, %v2060_v45, %v2061_v20 }
 0x19e   : > { %5038 = vmatprep.mubr.msk.f32.mxu1 %vm1799_vm5, %v6625_v38  ;;  %v2379_v29 = vpop.permute.xlu1 %2378  ;;  %4967 = vmatmul.mubr.msk.f32.vlgmr.msra.gmra.mrb[32].mxu0 %vm1799_vm5, %v6632_v24  ;;  %8034 = vst [vmem:[#allocation43_spill] sm:$0xff] %v6671_v51 }
 0x19f   : > { %5039 = vmatmul.mubr.msk.f32.vlgmr.msra.gmra.mrb[32].mxu1 %vm1799_vm5, %v6646_v16  ;;  %v2377_v4 = vpop.permute.xlu0 %2376  ;;  %5273 = vmatpush3.bf16.msra.mxu0 %v6413_v43  ;;  %v2467_v2 = vsel %vm714_vm0, %v5965_v31, %v2379_v29 }
 0x1a0   : > { %v2466_v22 = vsel %vm714_vm0, %v5962_v33, %v2377_v4  ;;  %2273 = vrot.lane.b32.xlu1 %v6458_v11, %s5536_s13  ;;  %5309 = vmatpush3.bf16.msra.mxu1 %v6413_v43  ;;  %v2483_v31 = vsel %vm1633_vm4, %v2467_v2, %v6451_v40  ;;  %v2070_v40 = vsel %vm1517_vm2, %v2068_v15, %v2069_v37 }
 0x1a1   : > { %2275 = vrot.lane.b32.xlu0 %v8033_v41, %s5536_s13  ;;  %5275 = vmatprep.subr.bf16.mxu0 %v6639_v27  ;;  %v2482_v33 = vsel %vm1633_vm4, %v2466_v22, %v6453_v54  ;;  %v4442_v54 = vld [vmem:[%s7903_s4 + $0x68] sm:$0xff]  ;;  %v3761_v22 = vsel %vm382_vm3, %v6733_v0, 0.0 }
 0x1a2   : > { %v2373_v25 = vpop.permute.xlu1 %2372  ;;  %5311 = vmatprep.subr.bf16.mxu1 %v6639_v27  ;;  %v2517_v14 = vrot.slane %v2482_v33, 1 }
 0x1a3   : > { %v2464_v11 = vsel %vm714_vm0, %v5990_v36, %v2373_v25  ;;  %v2375_v18 = vpop.permute.xlu0 %2374  ;;  %5277 = vmatpush3.bf16.msra.mxu0 %v6639_v27  ;;  %v4441_v36 = vld [vmem:[%s7903_s4 + $0x60] sm:$0xff] }
 0x1a4   : > { %v2480_v23 = vsel %vm1633_vm4, %v2464_v11, %v6484_v6  ;;  %v2465_v17 = vsel %vm714_vm0, %v5993_v3, %v2375_v18  ;;  %2063 = vrot.lane.b32.xlu1 %v2062_v8, %s5535_s12  ;;  %5313 = vmatpush3.bf16.msra.mxu1 %v6639_v27  ;;  %v2518_v3 = vrot.slane %v2483_v31, 1  ;;  %v6706_v4 = vpack.c.bf16 %v4442_v54, %v4441_v36 }
 0x1a5   : > { %v2514_v47 = vrot.slane %v2480_v23, 1  ;;  %v2481_v6 = vsel %vm1633_vm4, %v2465_v17, %v6482_v56  ;;  %2071 = vrot.lane.b32.xlu0 %v2070_v40, %s5536_s13  ;;  %5279 = vmatprep.subr.bf16.mxu0 %v6671_v51  ;;  %v1779_v56 = vsel %vm714_vm0, %v6225_v61, %v6467_v49 }
 0x1a6   : > { %v2515_v29 = vrot.slane %v2481_v6, 1  ;;  %v1759_v39 = vpop.permute.xlu1 %1758  ;;  %5315 = vmatprep.subr.bf16.mxu1 %v6671_v51  ;;  %v6731_v49 = vsel %vm1517_vm2, %v2517_v14, %v2518_v3  ;;  %v5482_v3 = vunpack.i.h.bf16 %v6367_v1 }
 0x1a7   : > { %v1757_v45 = vpop.permute.xlu0 %1756  ;;  %5281 = vmatpush3.bf16.msra.mxu0 %v6671_v51  ;;  %v6721_v58 = vsel %vm1633_vm4, %v1779_v56, %v1759_v39  ;;  %8038 = vst [vmem:[#allocation47_spill] sm:$0xff] %v6731_v49  ;;  %v1780_v39 = vsel %vm714_vm0, %v6270_v60, %v6510_v26 }
 0x1a8   : > { %v6712_v15 = vsel %vm1633_vm4, %v1778_v7, %v1757_v45  ;;  %2774 = vrot.lane.b32.xlu1 %v6628_v30, %s5535_s12  ;;  %v6717_v37 = vsel %vm1517_vm2, %v2514_v47, %v2515_v29  ;;  %5317 = vmatpush3.bf16.msra.mxu1 %v6671_v51  ;;  %8037 = vst [vmem:[#allocation46_spill] sm:$0xff] %v6721_v58 }
 0x1a9   : > { %8035 = vst [vmem:[#allocation44_spill] sm:$0xff] %v6712_v15  ;;  %8036 = vst [vmem:[#allocation45_spill] sm:$0xff] %v6717_v37  ;;  %2776 = vrot.lane.b32.xlu0 %v1500_v28, %s5535_s12  ;;  %4969 = vmatprep.mubr.msk.f32.mxu0 %vm1799_vm5, %v6712_v15 }
 0x1aa   : > { %5041 = vmatprep.mubr.msk.f32.mxu1 %vm1799_vm5, %v6717_v37  ;;  %v2387_v61 = vpop.permute.xlu1 %2386  ;;  %4970 = vmatmul.mubr.msk.f32.gmra.mrb[34].mxu0 %vm1799_vm5, %v6721_v58 }
 0x1ab   : > { %v2471_v2 = vsel %vm714_vm0, %v6018_v42, %v2387_v61  ;;  %5042 = vmatmul.mubr.msk.f32.gmra.mrb[34].mxu1 %vm1799_vm5, %v6731_v49  ;;  %v2385_v28 = vpop.permute.xlu0 %2384  ;;  %5283 = vmatprep.subr.bf16.mxu0 %v6706_v4  ;;  %v6748_v42 = vpop.f32.mrb[1].mxu0 }
 0x1ac   : > { %v2487_v41 = vsel %vm1633_vm4, %v2471_v2, %v6494_v9  ;;  %v2470_v25 = vsel %vm714_vm0, %v6015_v13, %v2385_v28  ;;  %2780 = vrot.lane.b32.xlu1 %v2062_v8, %s5536_s13  ;;  %5319 = vmatprep.subr.bf16.mxu1 %v6706_v4  ;;  %v3760_v31 = vsel %vm382_vm3, %v6748_v42, 0.0  ;;  %v6757_v18 = vpop.f32.mrb[2].mxu0  ;;  %v2292_v28 = vsel %vm714_vm0, %v5845_v50, %v5482_v3 }
 0x1ad   : > { %2782 = vrot.lane.b32.xlu0 %v2061_v20, %s5536_s13  ;;  %v2486_v33 = vsel %vm1633_vm4, %v2470_v25, %v6496_v44  ;;  %v3762_v11 = vadd.f32 %v3761_v22, %v3760_v31  ;;  %v2524_v13 = vrot.slane %v2487_v41, 1  ;;  %v6761_v17 = vpop.f32.mrb[3].mxu0  ;;  %v3765_v44 = vsel %vm382_vm3, %v6757_v18, 0.0 }
 0x1ae   : > { %v2381_v9 = vpop.permute.xlu1 %2380  ;;  %v3763_v36 = vsel %vm382_vm3, %v6761_v17, 0.0  ;;  %v2523_v54 = vrot.slane %v2486_v33, 1  ;;  %v5486_v22 = vunpack.i.l.bf16 %v6379_v52  ;;  %v5487_v31 = vunpack.i.h.bf16 %v6379_v52  ;;  %v8043_v33 = vld [vmem:[#allocation20_spill] sm:$0xff] }
 0x1af   : > { %v2468_v8 = vsel %vm714_vm0, %v6048_v32, %v2381_v9  ;;  %v2383_v23 = vpop.permute.xlu0 %2382  ;;  %v3764_v6 = vadd.f32 %v3763_v36, %v3762_v11  ;;  %v8044_v9 = vld [vmem:[#allocation2_spill] sm:$0xff]  ;;  %v5481_v3 = vunpack.i.l.bf16 %v6367_v1 }
 0x1b0   : > { %v2484_v20 = vsel %vm1633_vm4, %v2468_v8, %v6525_v35  ;;  %v2469_v40 = vsel %vm714_vm0, %v6051_v46, %v2383_v23  ;;  %v6774_v35 = vpop.f32.mrb[4].mxu0  ;;  %v1781_v46 = vsel %vm714_vm0, %v6263_v21, %v6508_v48  ;;  %v6802_v60 = vsel %vm1517_vm2, %v2523_v54, %v2524_v13  ;;  %v8045_v13 = vld [vmem:[#allocation4_spill] sm:$0xff]  ;;  %v8047_v54 = vld [vmem:[#allocation3_spill] sm:$0xff] }
 0x1b1   : > { %v2520_v47 = vrot.slane %v2484_v20, 1  ;;  %v2485_v32 = vsel %vm1633_vm4, %v2469_v40, %v6523_v34  ;;  %v6782_v45 = vpop.f32.mrb[5].mxu0  ;;  %v3766_v56 = vadd.f32 %v3765_v44, %v3764_v6  ;;  %v3769_v2 = vsel %vm382_vm3, %v6774_v35, 0.0  ;;  %8042 = vst [vmem:[#allocation51_spill] sm:$0xff] %v6802_v60  ;;  %v8046_v44 = vld [vmem:[#allocation31_spill] sm:$0xff] }
 0x1b2   : > { %v2521_v14 = vrot.slane %v2485_v32, 1  ;;  %v1763_v29 = vpop.permute.xlu1 %1762  ;;  %v3767_v21 = vsel %vm382_vm3, %v6782_v45, 0.0  ;;  %v6811_v25 = vpop.f32.mrb[6].mxu0  ;;  %v2293_v11 = vsel %vm714_vm0, %v8044_v9, %v8043_v33 }
 0x1b3   : > { %v1761_v7 = vpop.permute.xlu0 %1760  ;;  %v6795_v48 = vsel %vm1633_vm4, %v1781_v46, %v1763_v29  ;;  %v3768_v26 = vadd.f32 %v3767_v21, %v3766_v56  ;;  %v6819_v20 = vpop.f32.mrb[7].mxu0  ;;  %v3773_v52 = vsel %vm382_vm3, %v6811_v25, 0.0  ;;  %v8048_v29 = vld [vmem:[#allocation32_spill] sm:$0xff]  ;;  %v2309_v56 = vsel %vm1633_vm4, %v2293_v11, %v5487_v31  ;;  %v8049_v21 = vld [vmem:[#allocation5_spill] sm:$0xff] }
 0x1b4   : > { %v6785_v34 = vsel %vm1633_vm4, %v1780_v39, %v1761_v7  ;;  %v6788_v61 = vsel %vm1517_vm2, %v2520_v47, %v2521_v14  ;;  %8041 = vst [vmem:[#allocation50_spill] sm:$0xff] %v6795_v48  ;;  %v3771_v32 = vsel %vm382_vm3, %v6819_v20, 0.0  ;;  %v2308_v14 = vsel %vm1633_vm4, %v2292_v28, %v5486_v22  ;;  %v6833_v7 = vpop.f32.mrb[8].mxu0  ;;  %v8050_v28 = vld [vmem:[#allocation6_spill] sm:$0xff] }
 0x1b5   : > { %8039 = vst [vmem:[#allocation48_spill] sm:$0xff] %v6785_v34  ;;  %8040 = vst [vmem:[#allocation49_spill] sm:$0xff] %v6788_v61  ;;  %4972 = vmatprep.mubr.msk.f32.mxu0 %vm1799_vm5, %v6785_v34  ;;  %5044 = vmatprep.mubr.msk.f32.mxu1 %vm1799_vm5, %v6788_v61  ;;  %v3770_v40 = vadd.f32 %v3769_v2, %v3768_v26  ;;  %v6838_v33 = vpop.f32.mrb[9].mxu0 }
 0x1b6   : > { %v2395_v41 = vpop.permute.xlu1 %2394  ;;  %4973 = vmatmul.mubr.msk.f32.gmra.mrb[36].mxu0 %vm1799_vm5, %v6795_v48  ;;  %5045 = vmatmul.mubr.msk.f32.gmra.mrb[36].mxu1 %vm1799_vm5, %v6802_v60  ;;  %v3775_v31 = vsel %vm382_vm3, %v6838_v33, 0.0 }
 0x1b7   : > { %v2475_v8 = vsel %vm714_vm0, %v8045_v13, %v2395_v41  ;;  %v2393_v23 = vpop.permute.xlu0 %2392  ;;  %v3772_v6 = vadd.f32 %v3771_v32, %v3770_v40  ;;  %v8051_v32 = vld [vmem:[#allocation33_spill] sm:$0xff] }
 0x1b8   : > { %v2491_v36 = vsel %vm1633_vm4, %v2475_v8, %v8046_v44  ;;  %v2474_v47 = vsel %vm714_vm0, %v8047_v54, %v2393_v23  ;;  %v3777_v8 = vsel %vm382_vm3, %v6833_v7, 0.0  ;;  %v2341_v54 = vrot.slane %v2309_v56, 1 }
 0x1b9   : > { %v2490_v46 = vsel %vm1633_vm4, %v2474_v47, %v8048_v29  ;;  %v2530_v2 = vrot.slane %v2491_v36, 1  ;;  %v3774_v9 = vadd.f32 %v3773_v52, %v3772_v6  ;;  %v2340_v36 = vrot.slane %v2308_v14, 1  ;;  %v8052_v6 = vld [vmem:[#allocation10_spill] sm:$0xff] }
 0x1ba   : > { %v2389_v39 = vpop.permute.xlu1 %2388  ;;  %v2529_v11 = vrot.slane %v2490_v46, 1  ;;  %v1783_v29 = vsel %vm714_vm0, %v8052_v6, %v8051_v32 }
 0x1bb   : > { %v2472_v26 = vsel %vm714_vm0, %v8049_v21, %v2389_v39  ;;  %v2391_v41 = vpop.permute.xlu0 %2390  ;;  %v3776_v44 = vadd.f32 %v3775_v31, %v3774_v9  ;;  %v8053_v39 = vld [vmem:[#allocation34_spill] sm:$0xff]  ;;  %v8054_v21 = vld [vmem:[#allocation11_spill] sm:$0xff] }
 0x1bc   : > { %v2488_v1 = vsel %vm1633_vm4, %v2472_v26, %v6570_v62  ;;  %v2473_v13 = vsel %vm714_vm0, %v8050_v28, %v2391_v41  ;;  %v6850_v62 = vpop.f32.mrb[10].mxu0  ;;  %v1782_v26 = vsel %vm714_vm0, %v8054_v21, %v8053_v39  ;;  %v1625_v41 = vsel %vm714_vm0, %v5845_v50, %v5481_v3 }
 0x1bd   : > { %v2526_v23 = vrot.slane %v2488_v1, 1  ;;  %v2489_v40 = vsel %vm1633_vm4, %v2473_v13, %v6564_v63  ;;  %v6860_v63 = vpop.f32.mrb[11].mxu0  ;;  %v3778_v14 = vadd.f32 %v3777_v8, %v3776_v44  ;;  %v3781_v1 = vsel %vm382_vm3, %v6850_v62, 0.0 }
 0x1be   : > { %v2527_v47 = vrot.slane %v2489_v40, 1  ;;  %v1767_v52 = vpop.permute.xlu1 %1766  ;;  %v3779_v28 = vsel %vm382_vm3, %v6860_v63, 0.0  ;;  %v6880_v50 = vsel %vm1517_vm2, %v2529_v11, %v2530_v2  ;;  %v6889_v31 = vsel %vm1633_vm4, %v1625_v41, %v5486_v22  ;;  %v6894_v40 = vpop.f32.mrb[12].mxu0 }
 0x1bf   : > { %v1765_v46 = vpop.permute.xlu0 %1764  ;;  %v6873_v13 = vsel %vm1633_vm4, %v1783_v29, %v1767_v52  ;;  %8058 = vst [vmem:[#allocation31_spill] sm:$0xff] %v6880_v50  ;;  %v3780_v3 = vadd.f32 %v3779_v28, %v3778_v14  ;;  %8059 = vst [vmem:[#allocation3_spill] sm:$0xff] %v6889_v31  ;;  %v6902_v11 = vpop.f32.mrb[13].mxu0  ;;  %v3785_v22 = vsel %vm382_vm3, %v6894_v40, 0.0 }
 0x1c0   : > { %v6863_v56 = vsel %vm1633_vm4, %v1782_v26, %v1765_v46  ;;  %v6866_v9 = vsel %vm1517_vm2, %v2526_v23, %v2527_v47  ;;  %8057 = vst [vmem:[#allocation4_spill] sm:$0xff] %v6873_v13  ;;  %v6892_v23 = vsel %vm1517_vm2, %v2340_v36, %v2341_v54  ;;  %v3783_v36 = vsel %vm382_vm3, %v6902_v11, 0.0  ;;  %v6910_v52 = vpop.f32.mrb[14].mxu0 }
 0x1c1   : > { %8055 = vst [vmem:[#allocation20_spill] sm:$0xff] %v6863_v56  ;;  %8056 = vst [vmem:[#allocation2_spill] sm:$0xff] %v6866_v9  ;;  %4975 = vmatprep.mubr.msk.f32.mxu0 %vm1799_vm5, %v6863_v56  ;;  %5047 = vmatprep.mubr.msk.f32.mxu1 %vm1799_vm5, %v6866_v9  ;;  %v3782_v44 = vadd.f32 %v3781_v1, %v3780_v3  ;;  %v6914_v6 = vpop.f32.mrb[15].mxu0  ;;  %v3789_v39 = vsel %vm382_vm3, %v6910_v52, 0.0 }
 0x1c2   : > { %v6882_v8 = vpop.permute.xlu1 %2253  ;;  %4976 = vmatmul.mubr.msk.f32.gmra.mrb[38].mxu0 %vm1799_vm5, %v6873_v13  ;;  %5048 = vmatmul.mubr.msk.f32.gmra.mrb[38].mxu1 %vm1799_vm5, %v6880_v50  ;;  %8060 = vst [vmem:[#allocation32_spill] sm:$0xff] %v6892_v23  ;;  %8061 = vst [vmem:[#allocation5_spill] sm:$0xff] %v6910_v52  ;;  %v3787_v21 = vsel %vm382_vm3, %v6914_v6, 0.0  ;;  %v6922_v41 = vpop.f32.mrb[16].mxu0 }
 0x1c3   : > { %4990 = vmatprep.mubr.msk.f32.mxu0 %vm1799_vm5, %v6889_v31  ;;  %5062 = vmatprep.mubr.msk.f32.mxu1 %vm1799_vm5, %v6892_v23  ;;  %v6900_v2 = vpop.permute.xlu0 %2255  ;;  %v3784_v54 = vadd.f32 %v3783_v36, %v3782_v44  ;;  %8062 = vst [vmem:[#allocation6_spill] sm:$0xff] %v6922_v41  ;;  %v5490_v1 = vpack.i.bf16 %v6922_v41, %v6733_v0  ;;  %v6928_v28 = vpop.f32.mrb[17].mxu0  ;;  %v3793_v44 = vsel %vm382_vm3, %v6922_v41, 0.0 }
 0x1c4   : > { %8063 = vst [vmem:[#allocation33_spill] sm:$0xff] %v6928_v28  ;;  %v3791_v36 = vsel %vm382_vm3, %v6928_v28, 0.0 }
 0x1c5   : > { %v3786_v29 = vadd.f32 %v3785_v22, %v3784_v54  ;;  %v5488_v22 = vpack.i.bf16 %v6928_v28, %v6748_v42 }
 0x1c6   : > { %v6908_v47 = vpop.permute.xlu1 %1544 }
 0x1c7   : > { %v6912_v32 = vpop.permute.xlu0 %1546  ;;  %v3788_v26 = vadd.f32 %v3787_v21, %v3786_v29  ;;  %v6938_v21 = vpop.f32.mrb[18].mxu0 }
 0x1c8   : > { %8064 = vst [vmem:[#allocation10_spill] sm:$0xff] %v6938_v21  ;;  %v5494_v31 = vpack.i.bf16 %v6938_v21, %v6757_v18  ;;  %v3797_v50 = vsel %vm382_vm3, %v6938_v21, 0.0 }
 0x1c9   : > { %v3790_v3 = vadd.f32 %v3789_v39, %v3788_v26  ;;  %v6944_v39 = vpop.f32.mrb[19].mxu0 }
 0x1ca   : > { %v6920_v46 = vpop.permute.xlu1 %2249  ;;  %8065 = vst [vmem:[#allocation34_spill] sm:$0xff] %v6944_v39  ;;  %v5492_v9 = vpack.i.bf16 %v6944_v39, %v6761_v17  ;;  %v6954_v61 = vpop.f32.mrb[20].mxu0 }
 0x1cb   : > { %v6924_v14 = vpop.permute.xlu0 %2251  ;;  %v3792_v54 = vadd.f32 %v3791_v36, %v3790_v3  ;;  %v3795_v3 = vsel %vm382_vm3, %v6944_v39, 0.0  ;;  %8066 = vst [vmem:[#allocation11_spill] sm:$0xff] %v6954_v61  ;;  %v3801_v16 = vsel %vm382_vm3, %v6954_v61, 0.0 }
 0x1cd   : > { %v3794_v26 = vadd.f32 %v3793_v44, %v3792_v54  ;;  %v6960_v44 = vpop.f32.mrb[21].mxu0 }
 0x1ce   : > { %v6936_v29 = vpop.permute.xlu1 %2261  ;;  %8067 = vst [vmem:[#allocation52_spill] sm:$0xff] %v6960_v44  ;;  %v5496_v38 = vpack.i.bf16 %v6960_v44, %v6782_v45  ;;  %v6970_v56 = vpop.f32.mrb[22].mxu0 }
 0x1cf   : > { %v6940_v23 = vpop.permute.xlu0 %2263  ;;  %v3796_v36 = vadd.f32 %v3795_v3, %v3794_v26  ;;  %v3799_v26 = vsel %vm382_vm3, %v6960_v44, 0.0  ;;  %v3805_v34 = vsel %vm382_vm3, %v6970_v56, 0.0 }
 0x1d1   : > { %v3798_v54 = vadd.f32 %v3797_v50, %v3796_v36  ;;  %v6976_v36 = vpop.f32.mrb[23].mxu0 }
 0x1d2   : > { %v6952_v60 = vpop.permute.xlu1 %1548  ;;  %v6986_v15 = vpop.f32.mrb[24].mxu0 }
 0x1d3   : > { %v6956_v49 = vpop.permute.xlu0 %1550  ;;  %v3800_v3 = vadd.f32 %v3799_v26, %v3798_v54  ;;  %v3809_v58 = vsel %vm382_vm3, %v6986_v15, 0.0 }
 0x1d5   : > { %5489 = vxpose.xlu1.b32.start [1/16] (narrow) %v5488_v22, 8  ;;  %v3802_v37 = vadd.f32 %v3801_v16, %v3800_v3  ;;  %v3803_v22 = vsel %vm382_vm3, %v6976_v36, 0.0  ;;  %v6992_v3 = vpop.f32.mrb[25].mxu0 }
 0x1d6   : > { %v6968_v13 = vpop.permute.xlu1 %2257  ;;  %v7002_v21 = vpop.f32.mrb[26].mxu0 }
 0x1d7   : > { %v6972_v48 = vpop.permute.xlu0 %2259  ;;  %v3804_v54 = vadd.f32 %v3803_v22, %v3802_v37  ;;  %v3807_v37 = vsel %vm382_vm3, %v6992_v3, 0.0  ;;  %v3813_v24 = vsel %vm382_vm3, %v7002_v21, 0.0 }
 0x1d9   : > { %5491 = vxpose.xlu1.b32.cont [2/16] (narrow) %v5490_v1, 8  ;;  %v3806_v50 = vadd.f32 %v3805_v34, %v3804_v54  ;;  %v7008_v54 = vpop.f32.mrb[27].mxu0 }
 0x1da   : > { %v6984_v26 = vpop.permute.xlu1 %1552  ;;  %v7018_v41 = vpop.f32.mrb[28].mxu0 }
 0x1db   : > { %v6988_v44 = vpop.permute.xlu0 %1554  ;;  %v3808_v1 = vadd.f32 %v3807_v37, %v3806_v50  ;;  %v3817_v51 = vsel %vm382_vm3, %v7018_v41, 0.0 }
 0x1dd   : > { %5493 = vxpose.xlu1.b32.cont [3/16] (narrow) %v5492_v9, 8  ;;  %v3810_v16 = vadd.f32 %v3809_v58, %v3808_v1  ;;  %v3811_v9 = vsel %vm382_vm3, %v7008_v54, 0.0  ;;  %v7022_v58 = vpop.f32.mrb[29].mxu0 }
 0x1de   : > { %v7000_v22 = vpop.permute.xlu1 %2265  ;;  %v7030_v27 = vpop.f32.mrb[30].mxu0 }
 0x1df   : > { %v7004_v57 = vpop.permute.xlu0 %2267  ;;  %v3812_v50 = vadd.f32 %v3811_v9, %v3810_v16  ;;  %8068 = vst [vmem:[#allocation53_spill] sm:$0xff] %v7030_v27  ;;  %v7038_v30 = vpop.f32.mrb[31].mxu0 }
 0x1e1   : > { %5495 = vxpose.xlu1.b32.cont [4/16] (narrow) %v5494_v31, 8  ;;  %v3814_v1 = vadd.f32 %v3813_v24, %v3812_v50  ;;  %v3815_v31 = vsel %vm382_vm3, %v7022_v58, 0.0 }
 0x1e2   : > { %v7016_v37 = vpop.permute.xlu1 %1556 }
 0x1e3   : > { %v2210_v28 = vpop.permute.xlu0 %2209  ;;  %v3816_v16 = vadd.f32 %v3815_v31, %v3814_v1 }
 0x1e4   : > { %v2297_v34 = vsel %vm714_vm0, %v8069_v53, %v2210_v28  ;;  %v3819_v53 = vsel %vm382_vm3, %v7038_v30, 0.0 }
 0x1e5   : > { %5497 = vxpose.xlu1.b32.cont [5/16] (narrow) %v5496_v38, 8  ;;  %v3818_v39 = vadd.f32 %v3817_v51, %v3816_v16  ;;  %v3821_v38 = vsel %vm382_vm3, %v7030_v27, 0.0  ;;  %v2313_v16 = vsel %vm1633_vm4, %v2297_v34, %v6900_v2  ;;  %v8074_v34 = vpack.i.bf16 %v6976_v36, %v6819_v20 }
 0x1e6   : > { %v2208_v9 = vpop.permute.xlu1 %2207 }
 0x1e7   : > { %v2296_v24 = vsel %vm714_vm0, %v8070_v10, %v2208_v9  ;;  %v2206_v50 = vpop.permute.xlu0 %2205  ;;  %v3820_v28 = vadd.f32 %v3819_v53, %v3818_v39  ;;  %v8072_v9 = vpack.i.bf16 %v6954_v61, %v6774_v35  ;;  %v4444_v39 = vld [vmem:[%s7903_s4 + $0x78] sm:$0xff]  ;;  %v2347_v61 = vrot.slane %v2313_v16, 1 }
 0x1e8   : > { %v2295_v1 = vsel %vm714_vm0, %v8071_v19, %v2206_v50  ;;  %v2312_v10 = vsel %vm1633_vm4, %v2296_v24, %v6882_v8  ;;  %v8073_v50 = vld [vmem:[#allocation14_spill] sm:$0xff]  ;;  %v4443_v8 = vld [vmem:[%s7903_s4 + $0x70] sm:$0xff] }
 0x1e9   : > { %5499 = vxpose.xlu1.b32.cont [6/16] (narrow) %v8072_v9, 8  ;;  %v2311_v19 = vsel %vm1633_vm4, %v2295_v1, %v6924_v14  ;;  %v3822_v24 = vadd.f32 %v3821_v38, %v3820_v28  ;;  %v2346_v53 = vrot.slane %v2312_v10, 1  ;;  %v7073_v27 = vpack.c.bf16 %v4444_v39, %v4443_v8  ;;  %v8076_v38 = vld [vmem:[#allocation27_spill] sm:$0xff] }
 0x1ea   : > { %v2204_v51 = vpop.permute.xlu1 %2203  ;;  %v2344_v1 = vrot.slane %v2311_v19, 1  ;;  %v1627_v10 = vsel %vm714_vm0, %v8076_v38, %v6912_v32  ;;  %v4446_v32 = vld [vmem:[%s7903_s4 + $0x88] sm:$0xff] }
 0x1eb   : > { %v2294_v43 = vsel %vm714_vm0, %v8073_v50, %v2204_v51  ;;  %v1606_v31 = vpop.permute.xlu0 %1605  ;;  %v3823_v2 = vrot.slane %v3822_v24, 4  ;;  %v8075_v51 = vld [vmem:[#allocation28_spill] sm:$0xff] }
 0x1ec   : > { %v2310_v14 = vsel %vm1633_vm4, %v2294_v43, %v6920_v46  ;;  %v1626_v50 = vsel %vm714_vm0, %v8075_v51, %v6908_v47  ;;  %v7092_v47 = vsel %vm1517_vm2, %v2346_v53, %v2347_v61  ;;  %v8077_v61 = vld [vmem:[#allocation16_spill] sm:$0xff]  ;;  %v8078_v53 = vld [vmem:[#allocation17_spill] sm:$0xff] }
 0x1ed   : > { %v2343_v9 = vrot.slane %v2310_v14, 1  ;;  %5501 = vxpose.xlu1.b32.cont [7/16] (narrow) %v8074_v34, 8  ;;  %v3824_v19 = vadd.f32 %v3823_v2, %v3822_v24  ;;  %v7085_v14 = vsel %vm1633_vm4, %v1627_v10, %v1606_v31  ;;  %v8080_v34 = vpack.i.bf16 %v6970_v56, %v6811_v25 }
 0x1ee   : > { %v1604_v52 = vpop.permute.xlu1 %1603 }
 0x1ef   : > { %v7079_v43 = vsel %vm1633_vm4, %v1626_v50, %v1604_v52  ;;  %v2218_v46 = vpop.permute.xlu0 %2217  ;;  %v7082_v28 = vsel %vm1517_vm2, %v2343_v9, %v2344_v1  ;;  %v4445_v52 = vld [vmem:[%s7903_s4 + $0x80] sm:$0xff]  ;;  %v3825_v24 = vrot.slane %v3824_v19, 2  ;;  %v8079_v9 = vld [vmem:[#allocation19_spill] sm:$0xff] }
 0x1f0   : > { %4991 = vmatmul.mubr.msk.f32.vlgmr.msra.gmra.mrb[32].mxu0 %vm1799_vm5, %v7079_v43  ;;  %5063 = vmatmul.mubr.msk.f32.vlgmr.msra.gmra.mrb[32].mxu1 %vm1799_vm5, %v7082_v28  ;;  %v7109_v39 = vpack.c.bf16 %v4446_v32, %v4445_v52  ;;  %v2301_v1 = vsel %vm714_vm0, %v8078_v53, %v2218_v46  ;;  %v8081_v46 = vld [vmem:[#allocation18_spill] sm:$0xff] }
 0x1f1   : > { %4993 = vmatprep.mubr.msk.f32.mxu0 %vm1799_vm5, %v7085_v14  ;;  %5065 = vmatprep.mubr.msk.f32.mxu1 %vm1799_vm5, %v7092_v47  ;;  %v2317_v10 = vsel %vm1633_vm4, %v2301_v1, %v6940_v23  ;;  %v8083_v23 = vld [vmem:[#allocation30_spill] sm:$0xff] }
 0x1f2   : > { %v2216_v31 = vpop.permute.xlu1 %2215  ;;  %5285 = vmatpush3.bf16.msra.mxu0 %v6706_v4  ;;  %5321 = vmatpush3.bf16.msra.mxu1 %v6706_v4  ;;  %v1628_v53 = vsel %vm714_vm0, %v8083_v23, %v6952_v60  ;;  %v2353_v1 = vrot.slane %v2317_v10, 1 }
 0x1f3   : > { %v2300_v16 = vsel %vm714_vm0, %v8077_v61, %v2216_v31  ;;  %v2214_v8 = vpop.permute.xlu0 %2213  ;;  %5287 = vmatprep.subr.bf16.mxu0 %v7073_v27  ;;  %5323 = vmatprep.subr.bf16.mxu1 %v7073_v27  ;;  %v8082_v61 = vpack.i.bf16 %v6992_v3, %v6838_v33 }
 0x1f4   : > { %v2299_v2 = vsel %vm714_vm0, %v8079_v9, %v2214_v8  ;;  %5503 = vxpose.xlu1.b32.cont [8/16] (narrow) %v8080_v34, 8  ;;  %v2316_v51 = vsel %vm1633_vm4, %v2300_v16, %v6936_v29  ;;  %v3826_v29 = vadd.f32 %v3825_v24, %v3824_v19  ;;  %v8084_v19 = vld [vmem:[#allocation29_spill] sm:$0xff] }
 0x1f5   : > { %v2315_v50 = vsel %vm1633_vm4, %v2299_v2, %v6972_v48  ;;  %v2352_v31 = vrot.slane %v2316_v51, 1  ;;  %v8085_v51 = vld [vmem:[#allocation7_spill] sm:$0xff] }
 0x1f6   : > { %v2212_v38 = vpop.permute.xlu1 %2211  ;;  %5289 = vmatpush3.bf16.msra.mxu0 %v7073_v27  ;;  %5325 = vmatpush3.bf16.msra.mxu1 %v7073_v27  ;;  %v2350_v16 = vrot.slane %v2315_v50, 1  ;;  %v3827_v60 = vrot.slane %v3826_v29, 1 }
 0x1f7   : > { %v2298_v52 = vsel %vm714_vm0, %v8081_v46, %v2212_v38  ;;  %v1610_v32 = vpop.permute.xlu0 %1609  ;;  %5291 = vmatprep.subr.bf16.mxu0 %v7109_v39  ;;  %5327 = vmatprep.subr.bf16.mxu1 %v7109_v39  ;;  %v8086_v38 = vld [vmem:[#allocation22_spill] sm:$0xff] }
 0x1f8   : > { %v2314_v48 = vsel %vm1633_vm4, %v2298_v52, %v6968_v13  ;;  %5505 = vxpose.xlu1.b32.cont [9/16] (narrow) %v8082_v61, 8  ;;  %v1629_v13 = vsel %vm714_vm0, %v8084_v19, %v6956_v49  ;;  %v7162_v49 = vsel %vm1517_vm2, %v2352_v31, %v2353_v1  ;;  %v3828_v31 = vadd.f32 %v3827_v60, %v3826_v29 }
 0x1f9   : > { %v2349_v8 = vrot.slane %v2314_v48, 1  ;;  %v7153_v50 = vsel %vm1633_vm4, %v1629_v13, %v1610_v32  ;;  %v8087_v32 = vpack.i.bf16 %v6986_v15, %v6833_v7  ;;  %v8088_v48 = vld [vmem:[#allocation21_spill] sm:$0xff]  ;;  %v1630_v1 = vsel %vm714_vm0, %v6548_v55, %v6984_v26 }
 0x1fa   : > { %v1608_v9 = vpop.permute.xlu1 %1607  ;;  %5293 = vmatpush3.bf16.msra.mxu0 %v7109_v39  ;;  %5329 = vmatpush3.bf16.msra.mxu1 %v7109_v39  ;;  %v1631_v19 = vsel %vm714_vm0, %v6532_v59, %v6988_v44  ;;  %v8090_v44 = vpack.i.bf16 %v7002_v21, %v6850_v62  ;;  %v1632_v26 = vsel %vm714_vm0, %v6560_v5, %v7016_v37 }
 0x1fb   : > { %v7145_v24 = vsel %vm1633_vm4, %v1628_v53, %v1608_v9  ;;  %v2222_v2 = vpop.permute.xlu0 %2221  ;;  %v7148_v34 = vsel %vm1517_vm2, %v2349_v8, %v2350_v16  ;;  %5331 = vmatprep.subr.bf16.mxu0 %v8085_v51  ;;  %5367 = vmatprep.subr.bf16.mxu1 %v8085_v51  ;;  %v8089_v9 = vpack.i.bf16 %v7008_v54, %v6860_v63 }
 0x1fc   : > { %v2303_v10 = vsel %vm714_vm0, %v8086_v38, %v2222_v2  ;;  %4994 = vmatmul.mubr.msk.f32.gmra.mrb[34].mxu0 %vm1799_vm5, %v7145_v24  ;;  %5066 = vmatmul.mubr.msk.f32.gmra.mrb[34].mxu1 %vm1799_vm5, %v7148_v34  ;;  %v7192_v2 = vmul.f32 0.00390625, %v3828_v31 }
 0x1fd   : > { %4996 = vmatprep.mubr.msk.f32.mxu0 %vm1799_vm5, %v7153_v50  ;;  %5068 = vmatprep.mubr.msk.f32.mxu1 %vm1799_vm5, %v7162_v49  ;;  %v2319_v46 = vsel %vm1633_vm4, %v2303_v10, %v7004_v57 }
 0x1fe   : > { %v2220_v52 = vpop.permute.xlu1 %2219  ;;  %5507 = vxpose.xlu1.b32.cont [10/16] (narrow) %v8087_v32, 8  ;;  %v2356_v23 = vrot.slane %v2319_v46, 1  ;;  %v3830_v38 = vsub.f32 %v6748_v42, %v7192_v2  ;;  %v3831_v46 = vsub.f32 %v6733_v0, %v7192_v2  ;;  %v3833_v42 = vsub.f32 %v6757_v18, %v7192_v2 }
 0x1ff   : > { %v2302_v61 = vsel %vm714_vm0, %v8088_v48, %v2220_v52  ;;  %v1614_v16 = vpop.permute.xlu0 %1613  ;;  %v3832_v52 = vsub.f32 %v6761_v17, %v7192_v2  ;;  %v8091_v48 = vpack.i.bf16 %v7022_v58, %v6902_v11  ;;  %v3834_v0 = vsub.f32 %v6782_v45, %v7192_v2 }
 0x200   : > { %v2318_v8 = vsel %vm1633_vm4, %v2302_v61, %v7000_v22  ;;  %v7195_v55 = vsel %vm1633_vm4, %v1631_v19, %v1614_v16  ;;  %v3862_v37 = vmul.f32 %v3830_v38, %v3830_v38  ;;  %v3863_v17 = vmul.f32 %v3831_v46, %v3831_v46  ;;  %v8092_v16 = vld [vmem:[#allocation23_spill] sm:$0xff]  ;;  %v8095_v46 = vld [vmem:[#allocation25_spill] sm:$0xff] }
 0x201   : > { %v2355_v53 = vrot.slane %v2318_v8, 1  ;;  %v3864_v61 = vmul.f32 %v3832_v52, %v3832_v52  ;;  %v3835_v18 = vsub.f32 %v6774_v35, %v7192_v2  ;;  %v3837_v35 = vsub.f32 %v6811_v25, %v7192_v2 }
 0x202   : > { %v1612_v57 = vpop.permute.xlu1 %1611  ;;  %5509 = vxpose.xlu1.b32.cont [11/16] (narrow) %v8089_v9, 8  ;;  %v3894_v9 = vsel %vm382_vm3, %v3862_v37, 0.0  ;;  %v8096_v37 = vld [vmem:[#allocation26_spill] sm:$0xff] }
 0x203   : > { %v7187_v29 = vsel %vm1633_vm4, %v1630_v1, %v1612_v57  ;;  %v2226_v13 = vpop.permute.xlu0 %2225  ;;  %v7190_v22 = vsel %vm1517_vm2, %v2355_v53, %v2356_v23  ;;  %v8093_v1 = vld [vmem:[#allocation8_spill] sm:$0xff]  ;;  %v3865_v57 = vmul.f32 %v3833_v42, %v3833_v42  ;;  %v3897_v38 = vsel %vm382_vm3, %v3864_v61, 0.0  ;;  %v8097_v61 = vld [vmem:[#allocation9_spill] sm:$0xff] }
 0x204   : > { %4997 = vmatmul.mubr.msk.f32.gmra.mrb[36].mxu0 %vm1799_vm5, %v7187_v29  ;;  %5069 = vmatmul.mubr.msk.f32.gmra.mrb[36].mxu1 %vm1799_vm5, %v7190_v22  ;;  %v2305_v23 = vsel %vm714_vm0, %v6393_v12, %v2226_v13  ;;  %v8094_v12 = vpack.i.bf16 %v7018_v41, %v6894_v40  ;;  %v3867_v25 = vmul.f32 %v3835_v18, %v3835_v18 }
 0x205   : > { %4999 = vmatprep.mubr.msk.f32.mxu0 %vm1799_vm5, %v7195_v55 }
 0x206   : > { %v2224_v59 = vpop.permute.xlu1 %2223  ;;  %5511 = vxpose.xlu1.b32.cont [12/16] (narrow) %v8090_v44, 8  ;;  %v3836_v44 = vsub.f32 %v6819_v20, %v7192_v2 }
 0x207   : > { %v1616_v60 = vpop.permute.xlu0 %1615  ;;  %v2304_v31 = vsel %vm714_vm0, %v8092_v16, %v2224_v59 }
 0x208   : > { %v7212_v10 = vsel %vm1633_vm4, %v1632_v26, %v1616_v60  ;;  %v3866_v26 = vmul.f32 %v3834_v0, %v3834_v0  ;;  %v3895_v60 = vsel %vm382_vm3, %v3863_v17, 0.0 }
 0x209   : > { %5000 = vmatmul.mubr.msk.f32.gmra.mrb[38].mxu0 %vm1799_vm5, %v7212_v10  ;;  %v3896_v42 = vadd.f32 %v3895_v60, %v3894_v9 }
 0x20a   : > { %v2228_v32 = vpop.permute.xlu1 %2227  ;;  %5014 = vmatprep.mubr.msk.f32.mxu0 %vm1799_vm5, %v7079_v43  ;;  %5513 = vxpose.xlu1.b32.cont [13/16] (narrow) %v8091_v48, 8 }
 0x20b   : > { %v2230_v5 = vpop.permute.xlu0 %2229  ;;  %v2306_v52 = vsel %vm714_vm0, %v8095_v46, %v2228_v32  ;;  %v3899_v32 = vsel %vm382_vm3, %v3865_v57, 0.0  ;;  %v3898_v18 = vadd.f32 %v3897_v38, %v3896_v42  ;;  %v3901_v57 = vsel %vm382_vm3, %v3866_v26, 0.0 }
 0x20c   : > { %v2307_v48 = vsel %vm714_vm0, %v8096_v37, %v2230_v5  ;;  %v8098_v5 = vpack.i.bf16 %v7038_v30, %v6914_v6  ;;  %v3903_v26 = vsel %vm382_vm3, %v3867_v25, 0.0 }
 0x20d   : > { %5015 = vmatmul.mubr.msk.f32.vlgmr.msra.gmra.mrb[32].mxu0 %vm1799_vm5, %v7085_v14 }
 0x20e   : > { %5333 = vmatpush3.bf16.msra.mxu0 %v8085_v51  ;;  %v2270_v8 = vpop.permute.xlu1 %2269  ;;  %5017 = vmatprep.mubr.msk.f32.mxu0 %vm1799_vm5, %v7145_v24 }
 0x20f   : > { %v2320_v53 = vsel %vm1633_vm4, %v2304_v31, %v2270_v8  ;;  %v2272_v45 = vpop.permute.xlu0 %2271  ;;  %5335 = vmatprep.subr.bf16.mxu0 %v8093_v1  ;;  %5515 = vxpose.xlu1.b32.cont [14/16] (narrow) %v8094_v12, 8  ;;  %v8099_v12 = vld [vmem:[#allocation39_spill] sm:$0xff] }
 0x210   : > { %v2358_v19 = vrot.slane %v2320_v53, 1  ;;  %v2321_v59 = vsel %vm1633_vm4, %v2305_v23, %v2272_v45  ;;  %v3838_v53 = vsub.f32 %v6838_v33, %v7192_v2  ;;  %v3868_v45 = vmul.f32 %v3836_v44, %v3836_v44  ;;  %v8100_v33 = vld [vmem:[#allocation24_spill] sm:$0xff] }
 0x211   : > { %v2359_v13 = vrot.slane %v2321_v59, 1  ;;  %5018 = vmatmul.mubr.msk.f32.gmra.mrb[34].mxu0 %vm1799_vm5, %v7153_v50  ;;  %v3900_v59 = vadd.f32 %v3899_v32, %v3898_v18  ;;  %v3869_v44 = vmul.f32 %v3837_v35, %v3837_v35  ;;  %v3840_v35 = vsub.f32 %v6860_v63, %v7192_v2 }
 0x212   : > { %v2274_v20 = vpop.permute.xlu1 %2273  ;;  %5020 = vmatprep.mubr.msk.f32.mxu0 %vm1799_vm5, %v7187_v29  ;;  %5337 = vmatpush3.bf16.msra.mxu0 %v8093_v1  ;;  %v3870_v25 = vmul.f32 %v3838_v53, %v3838_v53  ;;  %v3905_v37 = vsel %vm382_vm3, %v3868_v45, 0.0  ;;  %v3841_v32 = vsub.f32 %v6850_v62, %v7192_v2  ;;  %v3842_v63 = vsub.f32 %v6902_v11, %v7192_v2  ;;  %v8104_v45 = vld [vmem:[#allocation35_spill] sm:$0xff] }
 0x213   : > { %v2322_v0 = vsel %vm1633_vm4, %v2306_v52, %v2274_v20  ;;  %v2276_v16 = vpop.permute.xlu0 %2275  ;;  %v7264_v17 = vsel %vm1517_vm2, %v2358_v19, %v2359_v13  ;;  %5339 = vmatprep.subr.bf16.mxu0 %v8097_v61  ;;  %5517 = vxpose.xlu1.b32.cont [15/16] (narrow) %v8098_v5, 8  ;;  %v3839_v19 = vsub.f32 %v6833_v7, %v7192_v2  ;;  %v8101_v52 = vld [vmem:[#allocation53_spill] sm:$0xff] }
 0x214   : > { %v2361_v31 = vrot.slane %v2322_v0, 1  ;;  %v2323_v8 = vsel %vm1633_vm4, %v2307_v48, %v2276_v16  ;;  %5071 = vmatprep.mubr.msk.f32.mxu1 %vm1799_vm5, %v7264_v17  ;;  %v3902_v7 = vadd.f32 %v3901_v57, %v3900_v59  ;;  %v8102_v20 = vld [vmem:[#allocation5_spill] sm:$0xff]  ;;  %v3909_v5 = vsel %vm382_vm3, %v3870_v25, 0.0 }
 0x215   : > { %v2362_v23 = vrot.slane %v2323_v8, 1  ;;  %5021 = vmatmul.mubr.msk.f32.gmra.mrb[36].mxu0 %vm1799_vm5, %v7195_v55  ;;  %v8103_v42 = vpack.i.bf16 %v8101_v52, %v8102_v20  ;;  %v3907_v8 = vsel %vm382_vm3, %v3869_v44, 0.0  ;;  %v3873_v59 = vmul.f32 %v3841_v32, %v3841_v32 }
 0x216   : > { %v2064_v9 = vpop.permute.xlu1 %2063  ;;  %5023 = vmatprep.mubr.msk.f32.mxu0 %vm1799_vm5, %v7212_v10  ;;  %5341 = vmatpush3.bf16.msra.mxu0 %v8097_v61  ;;  %v3904_v0 = vadd.f32 %v3903_v26, %v3902_v7  ;;  %v3845_v26 = vsub.f32 %v8102_v20, %v7192_v2  ;;  %v8108_v20 = vld [vmem:[#allocation33_spill] sm:$0xff] }
 0x217   : > { %v2074_v13 = vsel %vm714_vm0, %v8099_v12, %v2064_v9  ;;  %v2072_v60 = vpop.permute.xlu0 %2071  ;;  %v7287_v38 = vsel %vm1517_vm2, %v2361_v31, %v2362_v23  ;;  %5343 = vmatprep.subr.bf16.mxu0 %v8100_v33  ;;  %5519 = vxpose.xlu1.b32.end [16/16] (narrow) %v8103_v42, 8  ;;  %v3871_v31 = vmul.f32 %v3839_v19, %v3839_v19  ;;  %v8105_v9 = vld [vmem:[#allocation36_spill] sm:$0xff]  ;;  %v8106_v19 = vld [vmem:[#allocation41_spill] sm:$0xff] }
 0x218   : > { %v7292_v46 = vsel %vm1633_vm4, %v2074_v13, %v2072_v60  ;;  %5072 = vmatmul.mubr.msk.f32.gmra.mrb[38].mxu1 %vm1799_vm5, %v7287_v38  ;;  %v3906_v18 = vadd.f32 %v3905_v37, %v3904_v0  ;;  %v3843_v23 = vsub.f32 %v6894_v40, %v7192_v2  ;;  %v3874_v60 = vmul.f32 %v3842_v63, %v3842_v63 }
 0x219   : > { %5024 = vmatmul.mubr.msk.f32.gmra.mrb[38].mxu0 %vm1799_vm5, %v7292_v46  ;;  %5086 = vmatprep.mubr.msk.f32.mxu1 %vm1799_vm5, %v7082_v28 }
 0x21a   : > { %v2775_v48 = vpop.permute.xlu1 %2774  ;;  %5110 = vmatprep.mubr.msk.f32.mxu0 %vm1799_vm5, %v7079_v43  ;;  %v3872_v43 = vmul.f32 %v3840_v35, %v3840_v35  ;;  %v3908_v53 = vadd.f32 %v3907_v8, %v3906_v18  ;;  %v3875_v25 = vmul.f32 %v3843_v23, %v3843_v23  ;;  %v8112_v23 = vld [vmem:[#allocation10_spill] sm:$0xff] }
 0x21b   : > { %v2777_v16 = vpop.permute.xlu0 %2776  ;;  %v2786_v57 = vsel %vm714_vm0, %v8104_v45, %v2775_v48  ;;  %v3917_v48 = vsel %vm382_vm3, %v3874_v60, 0.0  ;;  %v8117_v60 = vld [vmem:[#allocation46_spill] sm:$0xff] }
 0x21c   : > { %5087 = vmatmul.mubr.msk.f32.vlgmr.msra.gmra.mrb[32].mxu1 %vm1799_vm5, %v7092_v47  ;;  %v3910_v13 = vadd.f32 %v3909_v5, %v3908_v53  ;;  %v3913_v44 = vsel %vm382_vm3, %v3872_v43, 0.0  ;;  %v3919_v8 = vsel %vm382_vm3, %v3875_v25, 0.0  ;;  %v8111_v5 = vld [vmem:[#allocation37_spill] sm:$0xff]  ;;  %v3849_v53 = vsub.f32 %v8112_v23, %v7192_v2  ;;  %v8119_v25 = vld [vmem:[#allocation50_spill] sm:$0xff]  ;;  %v8125_v23 = vld [vmem:[#allocation47_spill] sm:$0xff] }
 0x21d   : > { %5089 = vmatprep.mubr.msk.f32.mxu1 %vm1799_vm5, %v7148_v34  ;;  %5111 = vmatmul.mubr.msk.f32.vlgmr.msra.gmra.mrb[40].mxu0 %vm1799_vm5, %v7085_v14  ;;  %v2787_v14 = vsel %vm714_vm0, %v8105_v9, %v2777_v16  ;;  %v8114_v9 = vld [vmem:[#allocation52_spill] sm:$0xff] }
 0x21e   : > { %5345 = vmatpush3.bf16.msra.mxu0 %v8100_v33  ;;  %5369 = vmatpush3.bf16.msra.mxu1 %v8085_v51  ;;  %v2781_v62 = vpop.permute.xlu1 %2780  ;;  %v3911_v51 = vsel %vm382_vm3, %v3871_v31, 0.0  ;;  %v3877_v31 = vmul.f32 %v3845_v26, %v3845_v26 }
 0x21f   : > { %5113 = vmatprep.mubr.msk.f32.mxu0 %vm1799_vm5, %v7145_v24  ;;  %v2783_v11 = vpop.permute.xlu0 %2782  ;;  %5347 = vmatprep.subr.bf16.mxu0 %v8106_v19  ;;  %v2788_v12 = vsel %vm1633_vm4, %v2786_v57, %v2781_v62  ;;  %v3844_v24 = vsub.f32 %v6914_v6, %v7192_v2  ;;  %v3912_v7 = vadd.f32 %v3911_v51, %v3910_v13  ;;  %v3915_v6 = vsel %vm382_vm3, %v3873_v59, 0.0 }
 0x220   : > { %v2789_v40 = vsel %vm1633_vm4, %v2787_v14, %v2783_v11  ;;  %5090 = vmatmul.mubr.msk.f32.gmra.mrb[34].mxu1 %vm1799_vm5, %v7162_v49  ;;  %5371 = vmatprep.subr.bf16.mxu1 %v8093_v1  ;;  %v2792_v42 = vrot.slane %v2788_v12, 1  ;;  %v3923_v57 = vsel %vm382_vm3, %v3877_v31, 0.0  ;;  %v3850_v14 = vsub.f32 %v8114_v9, %v7192_v2  ;;  %v8115_v12 = vld [vmem:[#allocation44_spill] sm:$0xff] }
 0x221   : > { %5092 = vmatprep.mubr.msk.f32.mxu1 %vm1799_vm5, %v7190_v22  ;;  %5114 = vmatmul.mubr.msk.f32.gmra.mrb[42].mxu0 %vm1799_vm5, %v7153_v50  ;;  %v2793_v35 = vrot.slane %v2789_v40, 1  ;;  %v8107_v50 = vld [vmem:[#allocation43_spill] sm:$0xff]  ;;  %v3876_v37 = vmul.f32 %v3844_v24, %v3844_v24 }
 0x222   : > { %5116 = vmatprep.mubr.msk.f32.mxu0 %vm1799_vm5, %v7187_v29  ;;  %5349 = vmatpush3.bf16.msra.mxu0 %v8106_v19  ;;  %v3914_v29 = vadd.f32 %v3913_v44, %v3912_v7  ;;  %v3882_v44 = vmul.f32 %v3850_v14, %v3850_v14  ;;  %v8118_v7 = vld [vmem:[#allocation48_spill] sm:$0xff]  ;;  %v8127_v14 = vld [vmem:[#allocation51_spill] sm:$0xff] }
 0x223   : > { %5373 = vmatpush3.bf16.msra.mxu1 %v8093_v1  ;;  %5351 = vmatprep.subr.bf16.mxu0 %v8107_v50  ;;  %v3846_v1 = vsub.f32 %v8108_v20, %v7192_v2  ;;  %v7366_v16 = vsel %vm1517_vm2, %v2792_v42, %v2793_v35  ;;  %v3921_v43 = vsel %vm382_vm3, %v3876_v37, 0.0  ;;  %v3853_v42 = vsub.f32 %v6970_v56, %v7192_v2  ;;  %v8121_v37 = vld [vmem:[#allocation4_spill] sm:$0xff] }
 0x224   : > { %5093 = vmatmul.mubr.msk.f32.gmra.mrb[36].mxu1 %vm1799_vm5, %v7264_v17  ;;  %5375 = vmatprep.subr.bf16.mxu1 %v8097_v61  ;;  %v3916_v0 = vadd.f32 %v3915_v6, %v3914_v29  ;;  %v3933_v56 = vsel %vm382_vm3, %v3882_v44, 0.0  ;;  %v8120_v29 = vld [vmem:[#allocation20_spill] sm:$0xff]  ;;  %v3855_v20 = vsub.f32 %v6986_v15, %v7192_v2 }
 0x225   : > { %5095 = vmatprep.mubr.msk.f32.mxu1 %vm1799_vm5, %v7287_v38  ;;  %5117 = vmatmul.mubr.msk.f32.gmra.mrb[44].mxu0 %vm1799_vm5, %v7195_v55  ;;  %v8109_v55 = vld [vmem:[#allocation6_spill] sm:$0xff]  ;;  %v3878_v63 = vmul.f32 %v3846_v1, %v3846_v1  ;;  %v3885_v1 = vmul.f32 %v3853_v42, %v3853_v42  ;;  %v8131_v44 = vld [vmem:[#allocation32_spill] sm:$0xff] }
 0x226   : > { %5119 = vmatprep.mubr.msk.f32.mxu0 %vm1799_vm5, %v7212_v10  ;;  %5353 = vmatpush3.bf16.msra.mxu0 %v8107_v50  ;;  %v3847_v32 = vsub.f32 %v8109_v55, %v7192_v2  ;;  %v3918_v10 = vadd.f32 %v3917_v48, %v3916_v0  ;;  %v8122_v48 = vld [vmem:[#allocation38_spill] sm:$0xff] }
 0x227   : > { %5377 = vmatpush3.bf16.msra.mxu1 %v8097_v61  ;;  %5355 = vmatprep.subr.bf16.mxu0 %v6706_v4  ;;  %v8110_v61 = vld [vmem:[#allocation34_spill] sm:$0xff]  ;;  %v3925_v59 = vsel %vm382_vm3, %v3878_v63, 0.0  ;;  %v3939_v31 = vsel %vm382_vm3, %v3885_v1, 0.0 }
 0x228   : > { %5096 = vmatmul.mubr.msk.f32.gmra.mrb[38].mxu1 %vm1799_vm5, %v7366_v16  ;;  %5379 = vmatprep.subr.bf16.mxu1 %v8100_v33  ;;  %v3848_v18 = vsub.f32 %v8110_v61, %v7192_v2  ;;  %v3920_v62 = vadd.f32 %v3919_v8, %v3918_v10  ;;  %v3879_v45 = vmul.f32 %v3847_v32, %v3847_v32  ;;  %v8123_v8 = vld [vmem:[#allocation42_spill] sm:$0xff] }
 0x229   : > { %5120 = vmatmul.mubr.msk.f32.gmra.mrb[46].mxu0 %vm1799_vm5, %v7292_v46  ;;  %5182 = vmatprep.mubr.msk.f32.mxu1 %vm1799_vm5, %v7082_v28  ;;  %v8113_v46 = vld [vmem:[#allocation40_spill] sm:$0xff]  ;;  %v3887_v32 = vmul.f32 %v3855_v20, %v3855_v20  ;;  %v3858_v61 = vsub.f32 %v7022_v58, %v7192_v2 }
 0x22a   : > { %5134 = vmatprep.mubr.msk.f32.mxu0 %vm1799_vm5, %v8111_v5  ;;  %v3922_v28 = vadd.f32 %v3921_v43, %v3920_v62  ;;  %v3880_v11 = vmul.f32 %v3848_v18, %v3848_v18  ;;  %v3927_v13 = vsel %vm382_vm3, %v3879_v45, 0.0  ;;  %v3859_v43 = vsub.f32 %v7018_v41, %v7192_v2 }
 0x22b   : > { %v3943_v62 = vsel %vm382_vm3, %v3887_v32, 0.0  ;;  %v3890_v45 = vmul.f32 %v3858_v61, %v3858_v61 }
 0x22c   : > { %5183 = vmatmul.mubr.msk.f32.vlgmr.msra.gmra.mrb[40].mxu1 %vm1799_vm5, %v7092_v47  ;;  %v3924_v51 = vadd.f32 %v3923_v57, %v3922_v28  ;;  %v8116_v47 = vld [vmem:[#allocation11_spill] sm:$0xff]  ;;  %v3929_v26 = vsel %vm382_vm3, %v3880_v11, 0.0  ;;  %v3861_v28 = vsub.f32 %v8101_v52, %v7192_v2  ;;  %v8128_v11 = vld [vmem:[#allocation2_spill] sm:$0xff] }
 0x22d   : > { %5135 = vmatmul.mubr.msk.f32.vlgmr.msra.gmra.mrb[40].mxu0 %vm1799_vm5, %v8113_v46  ;;  %5185 = vmatprep.mubr.msk.f32.mxu1 %vm1799_vm5, %v7148_v34  ;;  %v3851_v40 = vsub.f32 %v8116_v47, %v7192_v2  ;;  %v3881_v34 = vmul.f32 %v3849_v53, %v3849_v53  ;;  %v3860_v53 = vsub.f32 %v7038_v30, %v7192_v2  ;;  %v8129_v47 = vld [vmem:[#allocation31_spill] sm:$0xff] }
 0x22e   : > { %5357 = vmatpush3.bf16.msra.mxu0 %v6706_v4  ;;  %5381 = vmatpush3.bf16.msra.mxu1 %v8100_v33  ;;  %v3926_v24 = vadd.f32 %v3925_v59, %v3924_v51  ;;  %v3852_v33 = vsub.f32 %v6976_v36, %v7192_v2  ;;  %v3949_v59 = vsel %vm382_vm3, %v3890_v45, 0.0  ;;  %v3893_v51 = vmul.f32 %v3861_v28, %v3861_v28 }
 0x22f   : > { %5137 = vmatprep.mubr.msk.f32.mxu0 %vm1799_vm5, %v8115_v12  ;;  %5359 = vmatprep.subr.bf16.mxu0 %v7073_v27  ;;  %v3931_v35 = vsel %vm382_vm3, %v3881_v34, 0.0  ;;  %v8130_v34 = vld [vmem:[#allocation3_spill] sm:$0xff] }
 0x230   : > { %5186 = vmatmul.mubr.msk.f32.gmra.mrb[42].mxu1 %vm1799_vm5, %v7162_v49  ;;  %5383 = vmatprep.subr.bf16.mxu1 %v8106_v19  ;;  %v3928_v49 = vadd.f32 %v3927_v13, %v3926_v24  ;;  %v3884_v6 = vmul.f32 %v3852_v33, %v3852_v33 }
 0x231   : > { %5138 = vmatmul.mubr.msk.f32.gmra.mrb[42].mxu0 %vm1799_vm5, %v8117_v60  ;;  %5188 = vmatprep.mubr.msk.f32.mxu1 %vm1799_vm5, %v7190_v22  ;;  %v3883_v22 = vmul.f32 %v3851_v40, %v3851_v40 }
 0x232   : > { %5140 = vmatprep.mubr.msk.f32.mxu0 %vm1799_vm5, %v8118_v7  ;;  %5361 = vmatpush3.bf16.msra.mxu0 %v7073_v27  ;;  %v3930_v36 = vadd.f32 %v3929_v26, %v3928_v49  ;;  %v3937_v15 = vsel %vm382_vm3, %v3884_v6, 0.0 }
 0x233   : > { %5385 = vmatpush3.bf16.msra.mxu1 %v8106_v19  ;;  %5363 = vmatprep.subr.bf16.mxu0 %v7109_v39  ;;  %v3854_v19 = vsub.f32 %v6992_v3, %v7192_v2 }
 0x234   : > { %5189 = vmatmul.mubr.msk.f32.gmra.mrb[44].mxu1 %vm1799_vm5, %v7264_v17  ;;  %5387 = vmatprep.subr.bf16.mxu1 %v8107_v50  ;;  %v3932_v17 = vadd.f32 %v3931_v35, %v3930_v36 }
 0x235   : > { %5141 = vmatmul.mubr.msk.f32.gmra.mrb[44].mxu0 %vm1799_vm5, %v8119_v25  ;;  %5191 = vmatprep.mubr.msk.f32.mxu1 %vm1799_vm5, %v7287_v38  ;;  %v3935_v38 = vsel %vm382_vm3, %v3883_v22, 0.0  ;;  %v3886_v0 = vmul.f32 %v3854_v19, %v3854_v19 }
 0x236   : > { %5143 = vmatprep.mubr.msk.f32.mxu0 %vm1799_vm5, %v8120_v29  ;;  %5365 = vmatpush3.bf16.msra.mxu0 %v7109_v39  ;;  %v3934_v3 = vadd.f32 %v3933_v56, %v3932_v17 }
 0x237   : > { %5389 = vmatpush3.bf16.msra.mxu1 %v8107_v50  ;;  %v3856_v50 = vsub.f32 %v7008_v54, %v7192_v2  ;;  %v8124_v54 = vld [vmem:[#allocation45_spill] sm:$0xff]  ;;  %v3941_v63 = vsel %vm382_vm3, %v3886_v0, 0.0 }
 0x238   : > { %5192 = vmatmul.mubr.msk.f32.gmra.mrb[46].mxu1 %vm1799_vm5, %v7366_v16  ;;  %5391 = vmatprep.subr.bf16.mxu1 %v6706_v4  ;;  %v3936_v55 = vadd.f32 %v3935_v38, %v3934_v3  ;;  %v3857_v16 = vsub.f32 %v7002_v21, %v7192_v2 }
 0x239   : > { %5144 = vmatmul.mubr.msk.f32.gmra.mrb[46].mxu0 %vm1799_vm5, %v8121_v37  ;;  %5206 = vmatprep.mubr.msk.f32.mxu1 %vm1799_vm5, %v8122_v48  ;;  %v3888_v18 = vmul.f32 %v3856_v50, %v3856_v50 }
 0x23a   : > { %5158 = vmatprep.mubr.msk.f32.mxu0 %vm1799_vm5, %v8113_v46  ;;  %v3938_v10 = vadd.f32 %v3937_v15, %v3936_v55  ;;  %v3889_v5 = vmul.f32 %v3857_v16, %v3857_v16  ;;  %v3891_v46 = vmul.f32 %v3859_v43, %v3859_v43 }
 0x23b   : > { %v3945_v57 = vsel %vm382_vm3, %v3888_v18, 0.0 }
 0x23c   : > { %5207 = vmatmul.mubr.msk.f32.vlgmr.msra.gmra.mrb[40].mxu1 %vm1799_vm5, %v8123_v8  ;;  %v3940_v21 = vadd.f32 %v3939_v31, %v3938_v10  ;;  %v3947_v9 = vsel %vm382_vm3, %v3889_v5, 0.0 }
 0x23d   : > { %5159 = vmatmul.mubr.msk.f32.vlgmr.msra.gmra.mrb[40].mxu0 %vm1799_vm5, %v8115_v12  ;;  %5209 = vmatprep.mubr.msk.f32.mxu1 %vm1799_vm5, %v8124_v54  ;;  %v3951_v12 = vsel %vm382_vm3, %v3891_v46, 0.0 }
 0x23e   : > { %5393 = vmatpush3.bf16.msra.mxu1 %v6706_v4  ;;  %5161 = vmatprep.mubr.msk.f32.mxu0 %vm1799_vm5, %v8117_v60  ;;  %v3942_v58 = vadd.f32 %v3941_v63, %v3940_v21  ;;  %v8126_v4 = vld [vmem:[#allocation49_spill] sm:$0xff] }
 0x23f   : > { %5395 = vmatprep.subr.bf16.mxu1 %v7073_v27 }
 0x240   : > { %5210 = vmatmul.mubr.msk.f32.gmra.mrb[42].mxu1 %vm1799_vm5, %v8125_v23  ;;  %v3944_v41 = vadd.f32 %v3943_v62, %v3942_v58 }
 0x241   : > { %5162 = vmatmul.mubr.msk.f32.gmra.mrb[42].mxu0 %vm1799_vm5, %v8118_v7  ;;  %5212 = vmatprep.mubr.msk.f32.mxu1 %vm1799_vm5, %v8126_v4 }
 0x242   : > { %5164 = vmatprep.mubr.msk.f32.mxu0 %vm1799_vm5, %v8119_v25  ;;  %5397 = vmatpush3.bf16.msra.mxu1 %v7073_v27  ;;  %v3946_v30 = vadd.f32 %v3945_v57, %v3944_v41  ;;  %v3892_v27 = vmul.f32 %v3860_v53, %v3860_v53 }
 0x243   : > { %5399 = vmatprep.subr.bf16.mxu1 %v7109_v39 }
 0x244   : > { %5213 = vmatmul.mubr.msk.f32.gmra.mrb[44].mxu1 %vm1799_vm5, %v8127_v14  ;;  %v3948_v52 = vadd.f32 %v3947_v9, %v3946_v30  ;;  %v3953_v13 = vsel %vm382_vm3, %v3892_v27, 0.0 }
 0x245   : > { %5165 = vmatmul.mubr.msk.f32.gmra.mrb[44].mxu0 %vm1799_vm5, %v8120_v29  ;;  %5215 = vmatprep.mubr.msk.f32.mxu1 %vm1799_vm5, %v8128_v11 }
 0x246   : > { %5167 = vmatprep.mubr.msk.f32.mxu0 %vm1799_vm5, %v8121_v37  ;;  %5401 = vmatpush3.bf16.msra.mxu1 %v7109_v39  ;;  %v3950_v40 = vadd.f32 %v3949_v59, %v3948_v52  ;;  %v3955_v39 = vsel %vm382_vm3, %v3893_v51, 0.0 }
 0x248   : > { %5216 = vmatmul.mubr.msk.f32.gmra.mrb[46].mxu1 %vm1799_vm5, %v8129_v47  ;;  %v3952_v24 = vadd.f32 %v3951_v12, %v3950_v40 }
 0x249   : > { %5168 = vmatmul.mubr.msk.f32.gmra.mrb[46].mxu0 %vm1799_vm5, %v8130_v34  ;;  %5230 = vmatprep.mubr.msk.f32.mxu1 %vm1799_vm5, %v8123_v8 }
 0x24a   : > { %v3954_v60 = vadd.f32 %v3953_v13, %v3952_v24 }
 0x24c   : > { %5231 = vmatmul.mubr.msk.f32.vlgmr.msra.gmra.mrb[40].mxu1 %vm1799_vm5, %v8124_v54  ;;  %v7510_v33 = vadd.f32 %v3955_v39, %v3954_v60 }
 0x24d   : > { %5233 = vmatprep.mubr.msk.f32.mxu1 %vm1799_vm5, %v8125_v23 }
 0x250   : > { %5234 = vmatmul.mubr.msk.f32.gmra.mrb[42].mxu1 %vm1799_vm5, %v8126_v4 }
 0x251   : > { %5236 = vmatprep.mubr.msk.f32.mxu1 %vm1799_vm5, %v8127_v14 }
 0x254   : > { %5237 = vmatmul.mubr.msk.f32.gmra.mrb[44].mxu1 %vm1799_vm5, %v8128_v11 }
 0x255   : > { %5239 = vmatprep.mubr.msk.f32.mxu1 %vm1799_vm5, %v8129_v47 }
 0x258   : > { %5240 = vmatmul.mubr.msk.f32.gmra.mrb[46].mxu1 %vm1799_vm5, %v8131_v44 }
 0x2e0   : > { %v7528_v26 = vpop.f32.mrb[32].mxu0 }
 0x2e1   : > { %v3557_v7 = vsel %vm382_vm3, %v7528_v26, 0.0  ;;  %v4567_v49 = vpack.c.bf16 %v7528_v26, %v7528_v26  ;;  %v7534_v42 = vpop.f32.mrb[33].mxu0 }
 0x2e2   : > { %v3556_v22 = vsel %vm382_vm3, %v7534_v42, 0.0  ;;  %v4566_v35 = vpack.c.bf16 %v7534_v42, %v7534_v42 }
 0x2e3   : > { %4099 = vst.msk [vmem:[%s7526_s19 + $0x4] sm:$0xf] %vm3968_vm6, %v4567_v49  ;;  %v3558_v36 = vadd.f32 %v3557_v7, %v3556_v22 }
 0x2e4   : > { %4098 = vst.msk [vmem:[%s7526_s19] sm:$0xf] %vm3968_vm6, %v4566_v35  ;;  %v7544_v25 = vpop.f32.mrb[34].mxu0 }
 0x2e5   : > { %v4569_v19 = vpack.c.bf16 %v7544_v25, %v7544_v25  ;;  %v7548_v6 = vpop.f32.mrb[35].mxu0  ;;  %v3561_v20 = vsel %vm382_vm3, %v7544_v25, 0.0 }
 0x2e6   : > { %v3559_v56 = vsel %vm382_vm3, %v7548_v6, 0.0  ;;  %v4568_v29 = vpack.c.bf16 %v7548_v6, %v7548_v6 }
 0x2e7   : > { %4101 = vst.msk [vmem:[%s7526_s19 + $0xc] sm:$0xf] %vm3968_vm6, %v4569_v19  ;;  %v3560_v17 = vadd.f32 %v3559_v56, %v3558_v36 }
 0x2e8   : > { %4100 = vst.msk [vmem:[%s7526_s19 + $0x8] sm:$0xf] %vm3968_vm6, %v4568_v29  ;;  %v7560_v1 = vpop.f32.mrb[36].mxu0 }
 0x2e9   : > { %v4571_v38 = vpack.c.bf16 %v7560_v1, %v7560_v1  ;;  %v7564_v3 = vpop.f32.mrb[37].mxu0  ;;  %v3562_v37 = vadd.f32 %v3561_v20, %v3560_v17  ;;  %v3565_v15 = vsel %vm382_vm3, %v7560_v1, 0.0 }
 0x2ea   : > { %v3563_v48 = vsel %vm382_vm3, %v7564_v3, 0.0  ;;  %v4570_v50 = vpack.c.bf16 %v7564_v3, %v7564_v3 }
 0x2eb   : > { %4103 = vst.msk [vmem:[%s7526_s19 + $0x14] sm:$0xf] %vm3968_vm6, %v4571_v38  ;;  %v3564_v0 = vadd.f32 %v3563_v48, %v3562_v37 }
 0x2ec   : > { %4102 = vst.msk [vmem:[%s7526_s19 + $0x10] sm:$0xf] %vm3968_vm6, %v4570_v50  ;;  %v7576_v55 = vpop.f32.mrb[38].mxu0 }
 0x2ed   : > { %v4573_v16 = vpack.c.bf16 %v7576_v55, %v7576_v55  ;;  %v7580_v32 = vpop.f32.mrb[39].mxu0  ;;  %v3566_v31 = vadd.f32 %v3565_v15, %v3564_v0  ;;  %v3569_v18 = vsel %vm382_vm3, %v7576_v55, 0.0 }
 0x2ee   : > { %v3567_v8 = vsel %vm382_vm3, %v7580_v32, 0.0  ;;  %v4572_v10 = vpack.c.bf16 %v7580_v32, %v7580_v32 }
 0x2ef   : > { %4105 = vst.msk [vmem:[%s7526_s19 + $0x1c] sm:$0xf] %vm3968_vm6, %v4573_v16  ;;  %v3568_v54 = vadd.f32 %v3567_v8, %v3566_v31  ;;  %v7588_v61 = vpop.f32.mrb[32].mxu1 }
 0x2f0   : > { %4104 = vst.msk [vmem:[%s7526_s19 + $0x18] sm:$0xf] %vm3968_vm6, %v4572_v10  ;;  %v4575_v63 = vpack.c.bf16 %v7588_v61, %v7588_v61  ;;  %v7596_v21 = vpop.f32.mrb[33].mxu1  ;;  %v3573_v4 = vsel %vm382_vm3, %v7588_v61, 0.0 }
 0x2f1   : > { %v3570_v43 = vadd.f32 %v3569_v18, %v3568_v54  ;;  %v3571_v5 = vsel %vm382_vm3, %v7596_v21, 0.0  ;;  %v4574_v62 = vpack.c.bf16 %v7596_v21, %v7596_v21 }
 0x2f2   : > { %4107 = vst.msk [vmem:[%s7526_s19 + $0x24] sm:$0xf] %vm3968_vm6, %v4575_v63 }
 0x2f3   : > { %v3572_v23 = vadd.f32 %v3571_v5, %v3570_v43  ;;  %4106 = vst.msk [vmem:[%s7526_s19 + $0x20] sm:$0xf] %vm3968_vm6, %v4574_v62  ;;  %v7606_v58 = vpop.f32.mrb[34].mxu1 }
 0x2f4   : > { %v4577_v53 = vpack.c.bf16 %v7606_v58, %v7606_v58  ;;  %v7612_v45 = vpop.f32.mrb[35].mxu1  ;;  %v3577_v14 = vsel %vm382_vm3, %v7606_v58, 0.0 }
 0x2f5   : > { %v3574_v57 = vadd.f32 %v3573_v4, %v3572_v23  ;;  %v3575_v41 = vsel %vm382_vm3, %v7612_v45, 0.0  ;;  %v4576_v28 = vpack.c.bf16 %v7612_v45, %v7612_v45 }
 0x2f6   : > { %4109 = vst.msk [vmem:[%s7526_s19 + $0x2c] sm:$0xf] %vm3968_vm6, %v4577_v53 }
 0x2f7   : > { %v3576_v46 = vadd.f32 %v3575_v41, %v3574_v57  ;;  %4108 = vst.msk [vmem:[%s7526_s19 + $0x28] sm:$0xf] %vm3968_vm6, %v4576_v28  ;;  %v7622_v9 = vpop.f32.mrb[36].mxu1 }
 0x2f8   : > { %v4579_v30 = vpack.c.bf16 %v7622_v9, %v7622_v9  ;;  %v7628_v11 = vpop.f32.mrb[37].mxu1  ;;  %v3581_v47 = vsel %vm382_vm3, %v7622_v9, 0.0 }
 0x2f9   : > { %v3578_v27 = vadd.f32 %v3577_v14, %v3576_v46  ;;  %v3579_v59 = vsel %vm382_vm3, %v7628_v11, 0.0  ;;  %v4578_v52 = vpack.c.bf16 %v7628_v11, %v7628_v11  ;;  %v5520_v46 = vpop.trf.xlu1 }
 0x2fa   : > { %4111 = vst.msk [vmem:[%s7526_s19 + $0x34] sm:$0xf] %vm3968_vm6, %v4579_v30 }
 0x2fb   : > { %v3580_v51 = vadd.f32 %v3579_v59, %v3578_v27  ;;  %4110 = vst.msk [vmem:[%s7526_s19 + $0x30] sm:$0xf] %vm3968_vm6, %v4578_v52  ;;  %v7638_v12 = vpop.f32.mrb[38].mxu1  ;;  %v5524_v59 = vunpack.i.h.bf16 %v5520_v46 }
 0x2fc   : > { %v4581_v40 = vpack.c.bf16 %v7638_v12, %v7638_v12  ;;  %v7644_v34 = vpop.f32.mrb[39].mxu1  ;;  %v3585_v44 = vsel %vm382_vm3, %v7638_v12, 0.0 }
 0x2fd   : > { %v3582_v13 = vadd.f32 %v3581_v47, %v3580_v51  ;;  %v3583_v24 = vsel %vm382_vm3, %v7644_v34, 0.0  ;;  %v4580_v39 = vpack.c.bf16 %v7644_v34, %v7644_v34 }
 0x2fe   : > { %4113 = vst.msk [vmem:[%s7526_s19 + $0x3c] sm:$0xf] %vm3968_vm6, %v4581_v40  ;;  %v5521_v40 = vunpack.i.l.bf16 %v5520_v46 }
 0x2ff   : > { %v3584_v60 = vadd.f32 %v3583_v24, %v3582_v13  ;;  %4112 = vst.msk [vmem:[%s7526_s19 + $0x38] sm:$0xf] %vm3968_vm6, %v4580_v39 }
 0x301   : > { %v3586_v7 = vadd.f32 %v3585_v44, %v3584_v60 }
 0x310   : > { %v7656_v49 = vpop.f32.mrb[40].mxu0 }
 0x311   : > { %v4583_v22 = vpack.c.bf16 %v7656_v49, %v7656_v49  ;;  %v7660_v35 = vpop.f32.mrb[41].mxu0  ;;  %v3589_v29 = vsel %vm382_vm3, %v7656_v49, 0.0 }
 0x312   : > { %v3587_v36 = vsel %vm382_vm3, %v7660_v35, 0.0  ;;  %v4582_v19 = vpack.c.bf16 %v7660_v35, %v7660_v35 }
 0x313   : > { %4115 = vst.msk [vmem:[%s7526_s19 + $0x44] sm:$0xf] %vm3968_vm6, %v4583_v22  ;;  %v3588_v56 = vadd.f32 %v3587_v36, %v3586_v7  ;;  %v4598_v7 = vpack.c.bf16 %v5524_v59, %v5521_v40 }
 0x314   : > { %4114 = vst.msk [vmem:[%s7526_s19 + $0x40] sm:$0xf] %vm3968_vm6, %v4582_v19  ;;  %v7672_v17 = vpop.f32.mrb[42].mxu0 }
 0x315   : > { %v4585_v20 = vpack.c.bf16 %v7672_v17, %v7672_v17  ;;  %v7676_v38 = vpop.f32.mrb[43].mxu0  ;;  %v3590_v37 = vadd.f32 %v3589_v29, %v3588_v56  ;;  %v3593_v15 = vsel %vm382_vm3, %v7672_v17, 0.0  ;;  %4202 = vst [vmem:[%s344_s23] sm:$0xff] %v4598_v7 }
 0x316   : > { %v3591_v48 = vsel %vm382_vm3, %v7676_v38, 0.0  ;;  %v4584_v50 = vpack.c.bf16 %v7676_v38, %v7676_v38 }
 0x317   : > { %4117 = vst.msk [vmem:[%s7526_s19 + $0x4c] sm:$0xf] %vm3968_vm6, %v4585_v20  ;;  %v3592_v0 = vadd.f32 %v3591_v48, %v3590_v37 }
 0x318   : > { %4116 = vst.msk [vmem:[%s7526_s19 + $0x48] sm:$0xf] %vm3968_vm6, %v4584_v50  ;;  %v7688_v16 = vpop.f32.mrb[44].mxu0 }
 0x319   : > { %v4587_v31 = vpack.c.bf16 %v7688_v16, %v7688_v16  ;;  %v7692_v8 = vpop.f32.mrb[45].mxu0  ;;  %v3594_v10 = vadd.f32 %v3593_v15, %v3592_v0  ;;  %v3597_v43 = vsel %vm382_vm3, %v7688_v16, 0.0 }
 0x31a   : > { %v3595_v54 = vsel %vm382_vm3, %v7692_v8, 0.0  ;;  %v4586_v18 = vpack.c.bf16 %v7692_v8, %v7692_v8 }
 0x31b   : > { %4119 = vst.msk [vmem:[%s7526_s19 + $0x54] sm:$0xf] %vm3968_vm6, %v4587_v31  ;;  %v3596_v63 = vadd.f32 %v3595_v54, %v3594_v10 }
 0x31c   : > { %4118 = vst.msk [vmem:[%s7526_s19 + $0x50] sm:$0xf] %vm3968_vm6, %v4586_v18  ;;  %v7704_v5 = vpop.f32.mrb[46].mxu0 }
 0x31d   : > { %v4589_v62 = vpack.c.bf16 %v7704_v5, %v7704_v5  ;;  %v7708_v23 = vpop.f32.mrb[47].mxu0  ;;  %v3598_v4 = vadd.f32 %v3597_v43, %v3596_v63  ;;  %v3601_v14 = vsel %vm382_vm3, %v7704_v5, 0.0 }
 0x31e   : > { %v3599_v53 = vsel %vm382_vm3, %v7708_v23, 0.0  ;;  %v4588_v57 = vpack.c.bf16 %v7708_v23, %v7708_v23 }
 0x31f   : > { %4121 = vst.msk [vmem:[%s7526_s19 + $0x5c] sm:$0xf] %vm3968_vm6, %v4589_v62  ;;  %v3600_v41 = vadd.f32 %v3599_v53, %v3598_v4  ;;  %v7716_v28 = vpop.f32.mrb[40].mxu1 }
 0x320   : > { %4120 = vst.msk [vmem:[%s7526_s19 + $0x58] sm:$0xf] %vm3968_vm6, %v4588_v57  ;;  %v4591_v30 = vpack.c.bf16 %v7716_v28, %v7716_v28  ;;  %v7724_v27 = vpop.f32.mrb[41].mxu1  ;;  %v3605_v39 = vsel %vm382_vm3, %v7716_v28, 0.0 }
 0x321   : > { %v3602_v52 = vadd.f32 %v3601_v14, %v3600_v41  ;;  %v3603_v51 = vsel %vm382_vm3, %v7724_v27, 0.0  ;;  %v4590_v47 = vpack.c.bf16 %v7724_v27, %v7724_v27 }
 0x322   : > { %4123 = vst.msk [vmem:[%s7526_s19 + $0x64] sm:$0xf] %vm3968_vm6, %v4591_v30 }
 0x323   : > { %v3604_v13 = vadd.f32 %v3603_v51, %v3602_v52  ;;  %4122 = vst.msk [vmem:[%s7526_s19 + $0x60] sm:$0xf] %vm3968_vm6, %v4590_v47  ;;  %v7735_v24 = vpop.f32.mrb[42].mxu1 }
 0x324   : > { %v4593_v60 = vpack.c.bf16 %v7735_v24, %v7735_v24  ;;  %v7744_v44 = vpop.f32.mrb[43].mxu1  ;;  %v3609_v20 = vsel %vm382_vm3, %v7735_v24, 0.0 }
 0x325   : > { %v3606_v22 = vadd.f32 %v3605_v39, %v3604_v13  ;;  %v3607_v36 = vsel %vm382_vm3, %v7744_v44, 0.0  ;;  %v4592_v19 = vpack.c.bf16 %v7744_v44, %v7744_v44 }
 0x326   : > { %4125 = vst.msk [vmem:[%s7526_s19 + $0x6c] sm:$0xf] %vm3968_vm6, %v4593_v60 }
 0x327   : > { %v3608_v56 = vadd.f32 %v3607_v36, %v3606_v22  ;;  %4124 = vst.msk [vmem:[%s7526_s19 + $0x68] sm:$0xf] %vm3968_vm6, %v4592_v19  ;;  %v7754_v29 = vpop.f32.mrb[44].mxu1 }
 0x328   : > { %v4595_v37 = vpack.c.bf16 %v7754_v29, %v7754_v29  ;;  %v7760_v48 = vpop.f32.mrb[45].mxu1  ;;  %v3613_v54 = vsel %vm382_vm3, %v7754_v29, 0.0 }
 0x329   : > { %v3610_v50 = vadd.f32 %v3609_v20, %v3608_v56  ;;  %v3611_v0 = vsel %vm382_vm3, %v7760_v48, 0.0  ;;  %v4594_v15 = vpack.c.bf16 %v7760_v48, %v7760_v48 }
 0x32a   : > { %4127 = vst.msk [vmem:[%s7526_s19 + $0x74] sm:$0xf] %vm3968_vm6, %v4595_v37 }
 0x32b   : > { %v3612_v31 = vadd.f32 %v3611_v0, %v3610_v50  ;;  %4126 = vst.msk [vmem:[%s7526_s19 + $0x70] sm:$0xf] %vm3968_vm6, %v4594_v15  ;;  %v7770_v10 = vpop.f32.mrb[46].mxu1 }
 0x32c   : > { %v4597_v18 = vpack.c.bf16 %v7770_v10, %v7770_v10  ;;  %v7776_v63 = vpop.f32.mrb[47].mxu1  ;;  %v3617_v57 = vsel %vm382_vm3, %v7770_v10, 0.0 }
 0x32d   : > { %v3614_v43 = vadd.f32 %v3613_v54, %v3612_v31  ;;  %v3615_v62 = vsel %vm382_vm3, %v7776_v63, 0.0  ;;  %v4596_v4 = vpack.c.bf16 %v7776_v63, %v7776_v63 }
 0x32e   : > { %4129 = vst.msk [vmem:[%s7526_s19 + $0x7c] sm:$0xf] %vm3968_vm6, %v4597_v18 }
 0x32f   : > { %v3616_v53 = vadd.f32 %v3615_v62, %v3614_v43  ;;  %4128 = vst.msk [vmem:[%s7526_s19 + $0x78] sm:$0xf] %vm3968_vm6, %v4596_v4 }
 0x331   : > { %v3618_v41 = vadd.f32 %v3617_v57, %v3616_v53 }
 0x333   : > { %v3619_v46 = vrot.slane %v3618_v41, 4 }
 0x335   : > { %v3620_v14 = vadd.f32 %v3619_v46, %v3618_v41 }
 0x337   : > { %v3621_v30 = vrot.slane %v3620_v14, 2 }
 0x339   : > { %v3622_v59 = vadd.f32 %v3621_v30, %v3620_v14 }
 0x33b   : > { %v3623_v52 = vrot.slane %v3622_v59, 1 }
 0x33d   : > { %v3624_v51 = vadd.f32 %v3623_v52, %v3622_v59 }
 0x33f   : > { %v7788_v47 = vmul.f32 0.00390625, %v3624_v51 }
 0x341   : > { %v3627_v40 = vsub.f32 %v7534_v42, %v7788_v47  ;;  %v3628_v13 = vsub.f32 %v7528_v26, %v7788_v47  ;;  %v3629_v39 = vsub.f32 %v7548_v6, %v7788_v47  ;;  %v3630_v60 = vsub.f32 %v7544_v25, %v7788_v47 }
 0x342   : > { %v3631_v36 = vsub.f32 %v7564_v3, %v7788_v47  ;;  %v3632_v56 = vsub.f32 %v7560_v1, %v7788_v47  ;;  %v3633_v6 = vsub.f32 %v7580_v32, %v7788_v47  ;;  %v3634_v3 = vsub.f32 %v7576_v55, %v7788_v47 }
 0x343   : > { %v3659_v7 = vmul.f32 %v3627_v40, %v3627_v40  ;;  %v3660_v22 = vmul.f32 %v3628_v13, %v3628_v13  ;;  %v3661_v19 = vmul.f32 %v3629_v39, %v3629_v39  ;;  %v3662_v20 = vmul.f32 %v3630_v60, %v3630_v60 }
 0x344   : > { %v3663_v50 = vmul.f32 %v3631_v36, %v3631_v36  ;;  %v3664_v15 = vmul.f32 %v3632_v56, %v3632_v56  ;;  %v3635_v54 = vsub.f32 %v7596_v21, %v7788_v47  ;;  %v3665_v18 = vmul.f32 %v3633_v6, %v3633_v6 }
 0x345   : > { %v3691_v42 = vsel %vm382_vm3, %v3659_v7, 0.0  ;;  %v3692_v26 = vsel %vm382_vm3, %v3660_v22, 0.0  ;;  %v3694_v25 = vsel %vm382_vm3, %v3661_v19, 0.0  ;;  %v3696_v31 = vsel %vm382_vm3, %v3662_v20, 0.0 }
 0x346   : > { %v3693_v37 = vadd.f32 %v3692_v26, %v3691_v42  ;;  %v3698_v43 = vsel %vm382_vm3, %v3663_v50, 0.0  ;;  %v3636_v32 = vsub.f32 %v7588_v61, %v7788_v47  ;;  %v3666_v4 = vmul.f32 %v3634_v3, %v3634_v3 }
 0x347   : > { %v3700_v53 = vsel %vm382_vm3, %v3664_v15, 0.0  ;;  %v3637_v55 = vsub.f32 %v7612_v45, %v7788_v47  ;;  %v3667_v41 = vmul.f32 %v3635_v54, %v3635_v54  ;;  %v3702_v46 = vsel %vm382_vm3, %v3665_v18, 0.0 }
 0x348   : > { %v3695_v0 = vadd.f32 %v3694_v25, %v3693_v37  ;;  %v3638_v21 = vsub.f32 %v7606_v58, %v7788_v47  ;;  %v3668_v30 = vmul.f32 %v3636_v32, %v3636_v32  ;;  %v3704_v59 = vsel %vm382_vm3, %v3666_v4, 0.0 }
 0x349   : > { %v3639_v61 = vsub.f32 %v7628_v11, %v7788_v47  ;;  %v3669_v51 = vmul.f32 %v3637_v55, %v3637_v55  ;;  %v3706_v40 = vsel %vm382_vm3, %v3667_v41, 0.0  ;;  %v3640_v45 = vsub.f32 %v7622_v9, %v7788_v47 }
 0x34a   : > { %v3697_v1 = vadd.f32 %v3696_v31, %v3695_v0  ;;  %v3670_v39 = vmul.f32 %v3638_v21, %v3638_v21  ;;  %v3708_v60 = vsel %vm382_vm3, %v3668_v30, 0.0  ;;  %v3641_v58 = vsub.f32 %v7644_v34, %v7788_v47 }
 0x34b   : > { %v3671_v22 = vmul.f32 %v3639_v61, %v3639_v61  ;;  %v3710_v36 = vsel %vm382_vm3, %v3669_v51, 0.0  ;;  %v3642_v11 = vsub.f32 %v7638_v12, %v7788_v47  ;;  %v3672_v56 = vmul.f32 %v3640_v45, %v3640_v45 }
 0x34c   : > { %v3699_v62 = vadd.f32 %v3698_v43, %v3697_v1  ;;  %v3712_v20 = vsel %vm382_vm3, %v3670_v39, 0.0  ;;  %v3643_v9 = vsub.f32 %v7660_v35, %v7788_v47  ;;  %v3673_v26 = vmul.f32 %v3641_v58, %v3641_v58 }
 0x34d   : > { %v3714_v37 = vsel %vm382_vm3, %v3671_v22, 0.0  ;;  %v3644_v34 = vsub.f32 %v7656_v49, %v7788_v47  ;;  %v3674_v50 = vmul.f32 %v3642_v11, %v3642_v11  ;;  %v3716_v25 = vsel %vm382_vm3, %v3672_v56, 0.0 }
 0x34e   : > { %v3701_v57 = vadd.f32 %v3700_v53, %v3699_v62  ;;  %v3645_v12 = vsub.f32 %v7676_v38, %v7788_v47  ;;  %v3675_v3 = vmul.f32 %v3643_v9, %v3643_v9  ;;  %v3718_v15 = vsel %vm382_vm3, %v3673_v26, 0.0 }
 0x34f   : > { %v3646_v35 = vsub.f32 %v7672_v17, %v7788_v47  ;;  %v3676_v1 = vmul.f32 %v3644_v34, %v3644_v34  ;;  %v3720_v54 = vsel %vm382_vm3, %v3674_v50, 0.0  ;;  %v3647_v49 = vsub.f32 %v7692_v8, %v7788_v47 }
 0x350   : > { %v3703_v14 = vadd.f32 %v3702_v46, %v3701_v57  ;;  %v3677_v43 = vmul.f32 %v3645_v12, %v3645_v12  ;;  %v3722_v62 = vsel %vm382_vm3, %v3675_v3, 0.0  ;;  %v3648_v38 = vsub.f32 %v7688_v16, %v7788_v47 }
 0x351   : > { %v3678_v4 = vmul.f32 %v3646_v35, %v3646_v35  ;;  %v3724_v53 = vsel %vm382_vm3, %v3676_v1, 0.0  ;;  %v3649_v17 = vsub.f32 %v7708_v23, %v7788_v47  ;;  %v3679_v55 = vmul.f32 %v3647_v49, %v3647_v49 }
 0x352   : > { %v3705_v52 = vadd.f32 %v3704_v59, %v3703_v14  ;;  %v3726_v41 = vsel %vm382_vm3, %v3677_v43, 0.0  ;;  %v3650_v8 = vsub.f32 %v7704_v5, %v7788_v47  ;;  %v3680_v14 = vmul.f32 %v3648_v38, %v3648_v38 }
 0x353   : > { %v3728_v21 = vsel %vm382_vm3, %v3678_v4, 0.0  ;;  %v3651_v16 = vsub.f32 %v7724_v27, %v7788_v47  ;;  %v3681_v59 = vmul.f32 %v3649_v17, %v3649_v17  ;;  %v3652_v23 = vsub.f32 %v7716_v28, %v7788_v47 }
 0x354   : > { %v3707_v13 = vadd.f32 %v3706_v40, %v3705_v52  ;;  %v3730_v52 = vsel %vm382_vm3, %v3679_v55, 0.0  ;;  %v3682_v51 = vmul.f32 %v3650_v8, %v3650_v8  ;;  %v3732_v40 = vsel %vm382_vm3, %v3680_v14, 0.0 }
 0x355   : > { %v3653_v5 = vsub.f32 %v7744_v44, %v7788_v47  ;;  %v3683_v45 = vmul.f32 %v3651_v16, %v3651_v16  ;;  %v3734_v39 = vsel %vm382_vm3, %v3681_v59, 0.0  ;;  %v3654_v27 = vsub.f32 %v7735_v24, %v7788_v47 }
 0x356   : > { %v3709_v7 = vadd.f32 %v3708_v60, %v3707_v13  ;;  %v3736_v58 = vsel %vm382_vm3, %v3682_v51, 0.0  ;;  %v3655_v28 = vsub.f32 %v7760_v48, %v7788_v47  ;;  %v3656_v44 = vsub.f32 %v7754_v29, %v7788_v47 }
 0x357   : > { %v3686_v56 = vmul.f32 %v3654_v27, %v3654_v27  ;;  %v3657_v24 = vsub.f32 %v7776_v63, %v7788_v47  ;;  %v3658_v48 = vsub.f32 %v7770_v10, %v7788_v47 }
 0x358   : > { %v3711_v19 = vadd.f32 %v3710_v36, %v3709_v7  ;;  %v3684_v7 = vmul.f32 %v3652_v23, %v3652_v23  ;;  %v3685_v36 = vmul.f32 %v3653_v5, %v3653_v5  ;;  %v3687_v9 = vmul.f32 %v3655_v28, %v3655_v28 }
 0x359   : > { %v3744_v34 = vsel %vm382_vm3, %v3686_v56, 0.0  ;;  %v3690_v3 = vmul.f32 %v3658_v48, %v3658_v48 }
 0x35a   : > { %v3713_v42 = vadd.f32 %v3712_v20, %v3711_v19  ;;  %v3738_v19 = vsel %vm382_vm3, %v3683_v45, 0.0  ;;  %v3740_v20 = vsel %vm382_vm3, %v3684_v7, 0.0  ;;  %v3742_v26 = vsel %vm382_vm3, %v3685_v36, 0.0 }
 0x35b   : > { %v3746_v29 = vsel %vm382_vm3, %v3687_v9, 0.0  ;;  %v3752_v1 = vsel %vm382_vm3, %v3690_v3, 0.0 }
 0x35c   : > { %v3715_v6 = vadd.f32 %v3714_v37, %v3713_v42 }
 0x35e   : > { %v3717_v0 = vadd.f32 %v3716_v25, %v3715_v6  ;;  %v3688_v6 = vmul.f32 %v3656_v44, %v3656_v44  ;;  %v3689_v25 = vmul.f32 %v3657_v24, %v3657_v24 }
 0x360   : > { %v3719_v31 = vadd.f32 %v3718_v15, %v3717_v0  ;;  %v3957_v0 = vrot.slane %v7510_v33, 4  ;;  %v3748_v63 = vsel %vm382_vm3, %v3688_v6, 0.0 }
 0x362   : > { %v3721_v18 = vadd.f32 %v3720_v54, %v3719_v31  ;;  %v3750_v31 = vsel %vm382_vm3, %v3689_v25, 0.0  ;;  %v3958_v35 = vadd.f32 %v3957_v0, %v7510_v33 }
 0x364   : > { %v3723_v32 = vadd.f32 %v3722_v62, %v3721_v18  ;;  %v3959_v18 = vrot.slane %v3958_v35, 2 }
 0x366   : > { %v3725_v57 = vadd.f32 %v3724_v53, %v3723_v32  ;;  %v3960_v62 = vadd.f32 %v3959_v18, %v3958_v35 }
 0x368   : > { %v3727_v46 = vadd.f32 %v3726_v41, %v3725_v57  ;;  %v3961_v4 = vrot.slane %v3960_v62, 1 }
 0x36a   : > { %v3729_v30 = vadd.f32 %v3728_v21, %v3727_v46  ;;  %v3962_v17 = vadd.f32 %v3961_v4, %v3960_v62 }
 0x36c   : > { %v3731_v61 = vadd.f32 %v3730_v52, %v3729_v30 }
 0x36e   : > { %v3733_v13 = vadd.f32 %v3732_v40, %v3731_v61 }
 0x370   : > { %v3735_v60 = vadd.f32 %v3734_v39, %v3733_v13 }
 0x372   : > { %v3737_v22 = vadd.f32 %v3736_v58, %v3735_v60 }
 0x374   : > { %v3739_v11 = vadd.f32 %v3738_v19, %v3737_v22 }
 0x376   : > { %v3741_v42 = vadd.f32 %v3740_v20, %v3739_v11 }
 0x378   : > { %v3743_v37 = vadd.f32 %v3742_v26, %v3741_v42 }
 0x37a   : > { %v3745_v50 = vadd.f32 %v3744_v34, %v3743_v37 }
 0x37c   : > { %v3747_v12 = vadd.f32 %v3746_v29, %v3745_v50 }
 0x37e   : > { %v3749_v15 = vadd.f32 %v3748_v63, %v3747_v12 }
 0x380   : > { %v3751_v10 = vadd.f32 %v3750_v31, %v3749_v15 }
 0x382   : > { %v3753_v54 = vadd.f32 %v3752_v1, %v3751_v10 }
 0x384   : > { %v3754_v49 = vrot.slane %v3753_v54, 4 }
 0x386   : > { %v3755_v43 = vadd.f32 %v3754_v49, %v3753_v54 }
 0x388   : > { %v3756_v32 = vrot.slane %v3755_v43, 2 }
 0x38a   : > { %v3757_v38 = vadd.f32 %v3756_v32, %v3755_v43 }
 0x38c   : > { %v3758_v53 = vrot.slane %v3757_v38, 1 }
 0x38e   : > { %v3759_v57 = vadd.f32 %v3758_v53, %v3757_v38 }
 0x390   : > { %v3963_v33 = vsel %vm918_vm1, %v7788_v47, %v3759_v57 }
 0x391   : > { %v3965_v55 = vsel %vm3964_vm7, %v3963_v33, %v7192_v2 }
 0x392   : > { %v3967_v41 = vsel %vm3966_vm8, %v3965_v55, %v3962_v17 }
 0x393   : > { %3969 = vst.msk [vmem:[%s348_s29] sm:$0xf] %vm3968_vm6, %v3967_v41 }
 0x394 PF: > { %s19_s27 = sadd.s32 1, %s5531_s27  }
 0x395   : > { %p16_p4 = scmp.ge.s32.totalorder %s19_s27, 4  }
 0x397   :  { %18 = sbr.rel (!%p16_p4) target bundleno = 1 (0x1), region = 106 }

</bundles_post_ra>
